<compile_context>
chip_gen: v5e
topology: v5e:2x2
jax: 0.10.0
libtpu: 0.0.40
codegen_flags: <defaults>
</compile_context>

<pallas_src>
import functools

import jax
import jax.numpy as jnp
from jax.experimental import pallas as pl
from jax.experimental.pallas import tpu as pltpu

NEG_SLOPE = 0.01          # PyTorch nn.LeakyReLU default
IN_F = 784
HID = 200
HID_PAD = 256             # hidden width zero-padded to a lane-dense multiple of 128
OUT_F = 10
OUT_PAD = 128             # output width zero-padded so the store is lane-dense

# Tri-state: None = not probed yet, True/False = whether pl.Buffered(1) works.
_SINGLE_BUFFER_WEIGHTS = None


def _leaky_relu(x):
    return jnp.where(x > 0, x, NEG_SLOPE * x)


def _round_up(n, m):
    return ((n + m - 1) // m) * m


@functools.lru_cache(maxsize=None)
def _default_block_m():
    """v7x (64 MiB VMEM, 3.2 TB/s HBM) wants the biggest tile to amortize the
    per-step overhead; ~1024 is the sweet spot on v5e/v6e."""
    try:
        vmem = pltpu.get_tpu_info().vmem_capacity_bytes
        return 2048 if vmem <= (64 * 1024 * 1024) else 1024
    except Exception:
        return 1024


def mlp_kernel(x_ref, w1_ref, b1_ref, w2_ref, b2_ref, w3_ref, b3_ref, o_ref):
    """Fused 3-layer MLP on one (block_m, 784) batch tile.

    Weights are in the compute dtype (bf16 by default, or f32); accumulation and
    the bias-add / LeakyReLU epilogue are always f32.
    """
    cdt = w1_ref.dtype

    x = x_ref[...].astype(cdt)                                        # (BM, 784)
    h = jnp.dot(x, w1_ref[...], preferred_element_type=jnp.float32)   # (BM, 256)
    h = _leaky_relu(h + b1_ref[...])

    h = jnp.dot(h.astype(cdt), w2_ref[...],
                preferred_element_type=jnp.float32)                   # (BM, 256)
    h = _leaky_relu(h + b2_ref[...])

    h = jnp.dot(h.astype(cdt), w3_ref[...],
                preferred_element_type=jnp.float32)                   # (BM, 128)
    h = _leaky_relu(h + b3_ref[...])

    o_ref[...] = h.astype(o_ref.dtype)


def prepare_params(params, compute_dtype=jnp.bfloat16):
    """One-time prep: transpose to (in,out), zero-pad hidden 200->256 and output
    10->128, cast weights to the compute dtype.  Biases stay f32 (f32 epilogue).
    The zero padding is exact: padded hidden units are 0 after LeakyReLU and
    multiply only zero rows of the next weight matrix; padded output columns are
    sliced off in the wrapper."""
    pad_h = HID_PAD - HID
    pad_o = OUT_PAD - OUT_F
    w1 = jnp.pad(params["w1"].T, ((0, 0), (0, pad_h))).astype(compute_dtype)       # (784, 256)
    w2 = jnp.pad(params["w2"].T, ((0, pad_h), (0, pad_h))).astype(compute_dtype)   # (256, 256)
    w3 = jnp.pad(params["w3"].T, ((0, pad_h), (0, pad_o))).astype(compute_dtype)   # (256, 128)
    b1 = jnp.pad(params["b1"], (0, pad_h)).reshape(1, HID_PAD).astype(jnp.float32)
    b2 = jnp.pad(params["b2"], (0, pad_h)).reshape(1, HID_PAD).astype(jnp.float32)
    b3 = jnp.pad(params["b3"], (0, pad_o)).reshape(1, OUT_PAD).astype(jnp.float32)
    return (w1, b1, w2, b2, w3, b3)


def _vmem_limit_bytes(bm, x_itemsize, w_itemsize, out_itemsize):
    """Per-step VMEM footprint + 25% headroom, capped at 48 MiB (leaves Mosaic
    internal-scratch headroom even on v7x's 64 MiB), floored at the smallest
    known-good default scoped limit (16 MiB)."""
    x_tile = bm * IN_F * x_itemsize * 2                              # double-buffered x tile
    weights = ((IN_F * HID_PAD + HID_PAD * HID_PAD + HID_PAD * OUT_PAD) * w_itemsize
               + (2 * HID_PAD + OUT_PAD) * 4) * 2                    # weights+biases (<=2 buffers)
    live = bm * IN_F * w_itemsize + 3 * bm * HID_PAD * 4             # in-kernel temporaries
    out_tile = bm * OUT_PAD * out_itemsize * 2                       # double-buffered out tile
    need = x_tile + weights + live + out_tile
    return min(48 * 1024 * 1024, max(16 * 1024 * 1024, int(need * 1.25)))


def _call_mlp(x, prepared, bm, Bp, single_buffer_weights):
    """Build and invoke the pallas_call for an already-padded (Bp, 784) x."""
    w1, b1, w2, b2, w3, b3 = prepared
    # Constant index maps -> weights never re-DMA; single-buffer them to free VMEM.
    res = ({"pipeline_mode": pl.Buffered(buffer_count=1)}
           if single_buffer_weights else {})

    in_specs = [
        pl.BlockSpec((bm, IN_F), lambda i: (i, 0)),                # x tile over batch
        pl.BlockSpec((IN_F, HID_PAD), lambda i: (0, 0), **res),    # w1 (full, resident)
        pl.BlockSpec((1, HID_PAD), lambda i: (0, 0), **res),       # b1
        pl.BlockSpec((HID_PAD, HID_PAD), lambda i: (0, 0), **res),  # w2
        pl.BlockSpec((1, HID_PAD), lambda i: (0, 0), **res),       # b2
        pl.BlockSpec((HID_PAD, OUT_PAD), lambda i: (0, 0), **res),  # w3
        pl.BlockSpec((1, OUT_PAD), lambda i: (0, 0), **res),       # b3
    ]

    vmem_limit = _vmem_limit_bytes(
        bm,
        x_itemsize=jnp.dtype(x.dtype).itemsize,
        w_itemsize=jnp.dtype(w1.dtype).itemsize,
        out_itemsize=4,
    )

    return pl.pallas_call(
        mlp_kernel,
        out_shape=jax.ShapeDtypeStruct((Bp, OUT_PAD), jnp.float32),
        grid=(Bp // bm,),
        in_specs=in_specs,
        out_specs=pl.BlockSpec((bm, OUT_PAD), lambda i: (i, 0)),
        compiler_params=pltpu.CompilerParams(
            dimension_semantics=("parallel",),
            vmem_limit_bytes=vmem_limit,
        ),
    )(x, w1, b1, w2, b2, w3, b3)


def full_connection_forward(x, prepared, *, block_m=None):
    """x: (B, 784) float32 or bfloat16. prepared: output of prepare_params
    (called once). Returns (B, 10) float32."""
    global _SINGLE_BUFFER_WEIGHTS

    if block_m is None:
        block_m = _default_block_m()

    B = x.shape[0]
    b_up = _round_up(B, 128)
    bm = min(block_m, b_up)
    # Guarantee >= 2 balanced grid steps when the batch spans more than one
    # 128-row tile, so both v7x TensorCores get work (no effect on v5e/v6e).
    if b_up >= 2 * 128:
        bm = min(bm, _round_up(pl.cdiv(B, 2), 128))
    bm = max(bm, 128)

    Bp = _round_up(B, bm)
    if Bp != B:
        x = jnp.pad(x, ((0, Bp - B), (0, 0)))

    if _SINGLE_BUFFER_WEIGHTS is None:
        # One-time probe: single-buffered resident weights, falling back to the
        # default double-buffering if this JAX version rejects Buffered(1).
        try:
            out = jax.block_until_ready(_call_mlp(x, prepared, bm, Bp, True))
            _SINGLE_BUFFER_WEIGHTS = True
        except Exception:
            _SINGLE_BUFFER_WEIGHTS = False
            out = _call_mlp(x, prepared, bm, Bp, False)
    else:
        out = _call_mlp(x, prepared, bm, Bp, _SINGLE_BUFFER_WEIGHTS)

    return out[:B, :OUT_F]


def init_params(key):
    """Deterministic init mimicking PyTorch's default Linear init
    (uniform in +/- 1/sqrt(fan_in)); PyTorch-shaped (out, in) weights."""
    def linear_init(k, fan_out, fan_in):
        kw, kb = jax.random.split(k)
        bound = 1.0 / jnp.sqrt(fan_in)
        w = jax.random.uniform(kw, (fan_out, fan_in), jnp.float32, -bound, bound)
        b = jax.random.uniform(kb, (fan_out,), jnp.float32, -bound, bound)
        return w, b

    k1, k2, k3 = jax.random.split(key, 3)
    w1, b1 = linear_init(k1, HID, IN_F)
    w2, b2 = linear_init(k2, HID, HID)
    w3, b3 = linear_init(k3, OUT_F, HID)
    return {"w1": w1, "b1": b1, "w2": w2, "b2": b2, "w3": w3, "b3": b3}


def reference_forward(x, p):
    h = _leaky_relu(x @ p["w1"].T + p["b1"])
    h = _leaky_relu(h @ p["w2"].T + p["b2"])
    h = _leaky_relu(h @ p["w3"].T + p["b3"])
    return h


if __name__ == "__main__":
    key = jax.random.PRNGKey(0)
    kx, kp = jax.random.split(key)

    B = 8
    x = jax.random.normal(kx, (B, 784), jnp.float32)
    params = init_params(kp)
    ref = reference_forward(x, params)

    # Default path: bf16 matmuls, f32 accumulation + epilogue (all TPU gens).
    prep = prepare_params(params)
    out = jax.block_until_ready(full_connection_forward(x, prep))
    assert out.shape == (B, OUT_F)
    assert jnp.allclose(out, ref, atol=5e-2, rtol=5e-2), "bf16 mismatch vs reference"

    # Exact-f32 path (optional).
    prep_f32 = prepare_params(params, compute_dtype=jnp.float32)
    out_f32 = jax.block_until_ready(full_connection_forward(x, prep_f32))
    assert out_f32.shape == (B, OUT_F)
    assert jnp.allclose(out_f32, ref, atol=1e-5, rtol=1e-5), "f32 mismatch vs reference"

    # Multi-tile path: exercises >=2 grid steps + batch zero-padding/slicing.
    B2 = 160
    x2 = jax.random.normal(jax.random.PRNGKey(1), (B2, 784), jnp.float32)
    ref2 = reference_forward(x2, params)
    out2 = jax.block_until_ready(full_connection_forward(x2, prep))
    assert out2.shape == (B2, OUT_F)
    assert jnp.allclose(out2, ref2, atol=5e-2, rtol=5e-2), "multi-tile mismatch vs reference"

    print("KERNEL_OK")
</pallas_src>

<mosaic_0001>
module attributes {stable_mosaic.version = 11 : i64} {
  func.func @mlp_kernel(%arg0: i32, %arg1: memref<128x784xf32, #tpu.memory_space<vmem>>, %arg2: memref<784x256xbf16, #tpu.memory_space<vmem>>, %arg3: memref<1x256xf32, #tpu.memory_space<vmem>>, %arg4: memref<256x256xbf16, #tpu.memory_space<vmem>>, %arg5: memref<1x256xf32, #tpu.memory_space<vmem>>, %arg6: memref<256x128xbf16, #tpu.memory_space<vmem>>, %arg7: memref<1x128xf32, #tpu.memory_space<vmem>>, %arg8: memref<128x128xf32, #tpu.memory_space<vmem>>) attributes {dimension_semantics = [#tpu.dimension_semantics<parallel>], iteration_bounds = array<i64: 1>, scalar_prefetch = 0 : i64, scratch_operands = 0 : i64, tpu.core_type = #tpu.core_type<tc>, window_params = [{transform_indices = @transform_0, window_bounds = array<i64: 128, 784>}, {pipeline_mode = #tpu.pipeline_mode<synchronous>, transform_indices = @transform_1, window_bounds = array<i64: 784, 256>}, {pipeline_mode = #tpu.pipeline_mode<synchronous>, transform_indices = @transform_2, window_bounds = array<i64: 1, 256>}, {pipeline_mode = #tpu.pipeline_mode<synchronous>, transform_indices = @transform_3, window_bounds = array<i64: 256, 256>}, {pipeline_mode = #tpu.pipeline_mode<synchronous>, transform_indices = @transform_4, window_bounds = array<i64: 1, 256>}, {pipeline_mode = #tpu.pipeline_mode<synchronous>, transform_indices = @transform_5, window_bounds = array<i64: 256, 128>}, {pipeline_mode = #tpu.pipeline_mode<synchronous>, transform_indices = @transform_6, window_bounds = array<i64: 1, 128>}, {transform_indices = @transform_7, window_bounds = array<i64: 128, 128>}]} {
    %c0 = arith.constant 0 : index
    %c0_0 = arith.constant 0 : index
    %0 = vector.load %arg1[%c0, %c0_0] : memref<128x784xf32, #tpu.memory_space<vmem>>, vector<128x784xf32>
    %1 = arith.truncf %0 : vector<128x784xf32> to vector<128x784xbf16>
    %c0_1 = arith.constant 0 : index
    %c0_2 = arith.constant 0 : index
    %2 = vector.load %arg2[%c0_1, %c0_2] : memref<784x256xbf16, #tpu.memory_space<vmem>>, vector<784x256xbf16>
    %cst = arith.constant dense<0.000000e+00> : vector<128x256xf32>
    %3 = tpu.matmul %1, %2, %cst {dimension_numbers = #tpu.dot_dimension_numbers<[1], [0], [0], [1], [0, 0, 1, 1], [], []>} : vector<128x784xbf16>, vector<784x256xbf16>, vector<128x256xf32> -> vector<128x256xf32>
    %c0_3 = arith.constant 0 : index
    %c0_4 = arith.constant 0 : index
    %4 = vector.load %arg3[%c0_3, %c0_4] : memref<1x256xf32, #tpu.memory_space<vmem>>, vector<1x256xf32>
    %5 = vector.broadcast %4 : vector<1x256xf32> to vector<128x256xf32>
    %6 = arith.addf %3, %5 : vector<128x256xf32>
    %cst_5 = arith.constant 0.000000e+00 : f32
    %7 = vector.broadcast %cst_5 : f32 to vector<128x256xf32>
    %8 = arith.cmpf ogt, %6, %7 : vector<128x256xf32>
    %cst_6 = arith.constant 0.00999999977 : f32
    %9 = vector.broadcast %cst_6 : f32 to vector<128x256xf32>
    %10 = arith.mulf %9, %6 : vector<128x256xf32>
    %11 = arith.select %8, %6, %10 : vector<128x256xi1>, vector<128x256xf32>
    %12 = arith.truncf %11 : vector<128x256xf32> to vector<128x256xbf16>
    %c0_7 = arith.constant 0 : index
    %c0_8 = arith.constant 0 : index
    %13 = vector.load %arg4[%c0_7, %c0_8] : memref<256x256xbf16, #tpu.memory_space<vmem>>, vector<256x256xbf16>
    %cst_9 = arith.constant dense<0.000000e+00> : vector<128x256xf32>
    %14 = tpu.matmul %12, %13, %cst_9 {dimension_numbers = #tpu.dot_dimension_numbers<[1], [0], [0], [1], [0, 0, 1, 1], [], []>} : vector<128x256xbf16>, vector<256x256xbf16>, vector<128x256xf32> -> vector<128x256xf32>
    %c0_10 = arith.constant 0 : index
    %c0_11 = arith.constant 0 : index
    %15 = vector.load %arg5[%c0_10, %c0_11] : memref<1x256xf32, #tpu.memory_space<vmem>>, vector<1x256xf32>
    %16 = vector.broadcast %15 : vector<1x256xf32> to vector<128x256xf32>
    %17 = arith.addf %14, %16 : vector<128x256xf32>
    %cst_12 = arith.constant 0.000000e+00 : f32
    %18 = vector.broadcast %cst_12 : f32 to vector<128x256xf32>
    %19 = arith.cmpf ogt, %17, %18 : vector<128x256xf32>
    %cst_13 = arith.constant 0.00999999977 : f32
    %20 = vector.broadcast %cst_13 : f32 to vector<128x256xf32>
    %21 = arith.mulf %20, %17 : vector<128x256xf32>
    %22 = arith.select %19, %17, %21 : vector<128x256xi1>, vector<128x256xf32>
    %23 = arith.truncf %22 : vector<128x256xf32> to vector<128x256xbf16>
    %c0_14 = arith.constant 0 : index
    %c0_15 = arith.constant 0 : index
    %24 = vector.load %arg6[%c0_14, %c0_15] : memref<256x128xbf16, #tpu.memory_space<vmem>>, vector<256x128xbf16>
    %cst_16 = arith.constant dense<0.000000e+00> : vector<128x128xf32>
    %25 = tpu.matmul %23, %24, %cst_16 {dimension_numbers = #tpu.dot_dimension_numbers<[1], [0], [0], [1], [0, 0, 1, 1], [], []>} : vector<128x256xbf16>, vector<256x128xbf16>, vector<128x128xf32> -> vector<128x128xf32>
    %c0_17 = arith.constant 0 : index
    %c0_18 = arith.constant 0 : index
    %26 = vector.load %arg7[%c0_17, %c0_18] : memref<1x128xf32, #tpu.memory_space<vmem>>, vector<1x128xf32>
    %27 = vector.broadcast %26 : vector<1x128xf32> to vector<128x128xf32>
    %28 = arith.addf %25, %27 : vector<128x128xf32>
    %cst_19 = arith.constant 0.000000e+00 : f32
    %29 = vector.broadcast %cst_19 : f32 to vector<128x128xf32>
    %30 = arith.cmpf ogt, %28, %29 : vector<128x128xf32>
    %cst_20 = arith.constant 0.00999999977 : f32
    %31 = vector.broadcast %cst_20 : f32 to vector<128x128xf32>
    %32 = arith.mulf %31, %28 : vector<128x128xf32>
    %33 = arith.select %30, %28, %32 : vector<128x128xi1>, vector<128x128xf32>
    %c0_21 = arith.constant 0 : index
    %c0_22 = arith.constant 0 : index
    %34 = vector.load %arg8[%c0_21, %c0_22] : memref<128x128xf32, #tpu.memory_space<vmem>>, vector<128x128xf32>
    tpu.vector_store %arg8[%c0_21, %c0_22], %33 {strides = array<i32>} : memref<128x128xf32, #tpu.memory_space<vmem>>, vector<128x128xf32>,
    return
  }
  func.func @transform_0(%arg0: i32) -> (i32, i32) {
    %c0_i32 = arith.constant 0 : i32
    %c0_i32_0 = arith.constant 0 : i32
    return %arg0, %c0_i32 : i32, i32
  }
  func.func @transform_1(%arg0: i32) -> (i32, i32) {
    %c0_i32 = arith.constant 0 : i32
    %c0_i32_0 = arith.constant 0 : i32
    %c0_i32_1 = arith.constant 0 : i32
    return %c0_i32, %c0_i32_0 : i32, i32
  }
  func.func @transform_2(%arg0: i32) -> (i32, i32) {
    %c0_i32 = arith.constant 0 : i32
    %c0_i32_0 = arith.constant 0 : i32
    %c0_i32_1 = arith.constant 0 : i32
    return %c0_i32, %c0_i32_0 : i32, i32
  }
  func.func @transform_3(%arg0: i32) -> (i32, i32) {
    %c0_i32 = arith.constant 0 : i32
    %c0_i32_0 = arith.constant 0 : i32
    %c0_i32_1 = arith.constant 0 : i32
    return %c0_i32, %c0_i32_0 : i32, i32
  }
  func.func @transform_4(%arg0: i32) -> (i32, i32) {
    %c0_i32 = arith.constant 0 : i32
    %c0_i32_0 = arith.constant 0 : i32
    %c0_i32_1 = arith.constant 0 : i32
    return %c0_i32, %c0_i32_0 : i32, i32
  }
  func.func @transform_5(%arg0: i32) -> (i32, i32) {
    %c0_i32 = arith.constant 0 : i32
    %c0_i32_0 = arith.constant 0 : i32
    %c0_i32_1 = arith.constant 0 : i32
    return %c0_i32, %c0_i32_0 : i32, i32
  }
  func.func @transform_6(%arg0: i32) -> (i32, i32) {
    %c0_i32 = arith.constant 0 : i32
    %c0_i32_0 = arith.constant 0 : i32
    %c0_i32_1 = arith.constant 0 : i32
    return %c0_i32, %c0_i32_0 : i32, i32
  }
  func.func @transform_7(%arg0: i32) -> (i32, i32) {
    %c0_i32 = arith.constant 0 : i32
    %c0_i32_0 = arith.constant 0 : i32
    return %arg0, %c0_i32 : i32, i32
  }
}

module attributes {stable_mosaic.version = 11 : i64} {
  func.func @mlp_kernel(%arg0: i32, %arg1: memref<128x784xf32, #tpu.memory_space<vmem>>, %arg2: memref<784x256xbf16, #tpu.memory_space<vmem>>, %arg3: memref<1x256xf32, #tpu.memory_space<vmem>>, %arg4: memref<256x256xbf16, #tpu.memory_space<vmem>>, %arg5: memref<1x256xf32, #tpu.memory_space<vmem>>, %arg6: memref<256x128xbf16, #tpu.memory_space<vmem>>, %arg7: memref<1x128xf32, #tpu.memory_space<vmem>>, %arg8: memref<128x128xf32, #tpu.memory_space<vmem>>) attributes {dimension_semantics = [#tpu.dimension_semantics<parallel>], iteration_bounds = array<i64: 1>, scalar_prefetch = 0 : i64, scratch_operands = 0 : i64, tpu.core_type = #tpu.core_type<tc>, window_params = [{transform_indices = @transform_0, window_bounds = array<i64: 128, 784>}, {pipeline_mode = #tpu.pipeline_mode<synchronous>, transform_indices = @transform_1, window_bounds = array<i64: 784, 256>}, {pipeline_mode = #tpu.pipeline_mode<synchronous>, transform_indices = @transform_2, window_bounds = array<i64: 1, 256>}, {pipeline_mode = #tpu.pipeline_mode<synchronous>, transform_indices = @transform_3, window_bounds = array<i64: 256, 256>}, {pipeline_mode = #tpu.pipeline_mode<synchronous>, transform_indices = @transform_4, window_bounds = array<i64: 1, 256>}, {pipeline_mode = #tpu.pipeline_mode<synchronous>, transform_indices = @transform_5, window_bounds = array<i64: 256, 128>}, {pipeline_mode = #tpu.pipeline_mode<synchronous>, transform_indices = @transform_6, window_bounds = array<i64: 1, 128>}, {transform_indices = @transform_7, window_bounds = array<i64: 128, 128>}]} {
    %c0 = arith.constant 0 : index
    %c0_0 = arith.constant 0 : index
    %0 = vector.load %arg1[%c0, %c0_0] : memref<128x784xf32, #tpu.memory_space<vmem>>, vector<128x784xf32>
    %1 = arith.truncf %0 : vector<128x784xf32> to vector<128x784xbf16>
    %c0_1 = arith.constant 0 : index
    %c0_2 = arith.constant 0 : index
    %2 = vector.load %arg2[%c0_1, %c0_2] : memref<784x256xbf16, #tpu.memory_space<vmem>>, vector<784x256xbf16>
    %cst = arith.constant dense<0.000000e+00> : vector<128x256xf32>
    %3 = tpu.matmul %1, %2, %cst {dimension_numbers = #tpu.dot_dimension_numbers<[1], [0], [0], [1], [0, 0, 1, 1], [], []>} : vector<128x784xbf16>, vector<784x256xbf16>, vector<128x256xf32> -> vector<128x256xf32>
    %c0_3 = arith.constant 0 : index
    %c0_4 = arith.constant 0 : index
    %4 = vector.load %arg3[%c0_3, %c0_4] : memref<1x256xf32, #tpu.memory_space<vmem>>, vector<1x256xf32>
    %5 = vector.broadcast %4 : vector<1x256xf32> to vector<128x256xf32>
    %6 = arith.addf %3, %5 : vector<128x256xf32>
    %cst_5 = arith.constant 0.000000e+00 : f32
    %7 = vector.broadcast %cst_5 : f32 to vector<128x256xf32>
    %8 = arith.cmpf ogt, %6, %7 : vector<128x256xf32>
    %cst_6 = arith.constant 0.00999999977 : f32
    %9 = vector.broadcast %cst_6 : f32 to vector<128x256xf32>
    %10 = arith.mulf %9, %6 : vector<128x256xf32>
    %11 = arith.select %8, %6, %10 : vector<128x256xi1>, vector<128x256xf32>
    %12 = arith.truncf %11 : vector<128x256xf32> to vector<128x256xbf16>
    %c0_7 = arith.constant 0 : index
    %c0_8 = arith.constant 0 : index
    %13 = vector.load %arg4[%c0_7, %c0_8] : memref<256x256xbf16, #tpu.memory_space<vmem>>, vector<256x256xbf16>
    %cst_9 = arith.constant dense<0.000000e+00> : vector<128x256xf32>
    %14 = tpu.matmul %12, %13, %cst_9 {dimension_numbers = #tpu.dot_dimension_numbers<[1], [0], [0], [1], [0, 0, 1, 1], [], []>} : vector<128x256xbf16>, vector<256x256xbf16>, vector<128x256xf32> -> vector<128x256xf32>
    %c0_10 = arith.constant 0 : index
    %c0_11 = arith.constant 0 : index
    %15 = vector.load %arg5[%c0_10, %c0_11] : memref<1x256xf32, #tpu.memory_space<vmem>>, vector<1x256xf32>
    %16 = vector.broadcast %15 : vector<1x256xf32> to vector<128x256xf32>
    %17 = arith.addf %14, %16 : vector<128x256xf32>
    %cst_12 = arith.constant 0.000000e+00 : f32
    %18 = vector.broadcast %cst_12 : f32 to vector<128x256xf32>
    %19 = arith.cmpf ogt, %17, %18 : vector<128x256xf32>
    %cst_13 = arith.constant 0.00999999977 : f32
    %20 = vector.broadcast %cst_13 : f32 to vector<128x256xf32>
    %21 = arith.mulf %20, %17 : vector<128x256xf32>
    %22 = arith.select %19, %17, %21 : vector<128x256xi1>, vector<128x256xf32>
    %23 = arith.truncf %22 : vector<128x256xf32> to vector<128x256xbf16>
    %c0_14 = arith.constant 0 : index
    %c0_15 = arith.constant 0 : index
    %24 = vector.load %arg6[%c0_14, %c0_15] : memref<256x128xbf16, #tpu.memory_space<vmem>>, vector<256x128xbf16>
    %cst_16 = arith.constant dense<0.000000e+00> : vector<128x128xf32>
    %25 = tpu.matmul %23, %24, %cst_16 {dimension_numbers = #tpu.dot_dimension_numbers<[1], [0], [0], [1], [0, 0, 1, 1], [], []>} : vector<128x256xbf16>, vector<256x128xbf16>, vector<128x128xf32> -> vector<128x128xf32>
    %c0_17 = arith.constant 0 : index
    %c0_18 = arith.constant 0 : index
    %26 = vector.load %arg7[%c0_17, %c0_18] : memref<1x128xf32, #tpu.memory_space<vmem>>, vector<1x128xf32>
    %27 = vector.broadcast %26 : vector<1x128xf32> to vector<128x128xf32>
    %28 = arith.addf %25, %27 : vector<128x128xf32>
    %cst_19 = arith.constant 0.000000e+00 : f32
    %29 = vector.broadcast %cst_19 : f32 to vector<128x128xf32>
    %30 = arith.cmpf ogt, %28, %29 : vector<128x128xf32>
    %cst_20 = arith.constant 0.00999999977 : f32
    %31 = vector.broadcast %cst_20 : f32 to vector<128x128xf32>
    %32 = arith.mulf %31, %28 : vector<128x128xf32>
    %33 = arith.select %30, %28, %32 : vector<128x128xi1>, vector<128x128xf32>
    %c0_21 = arith.constant 0 : index
    %c0_22 = arith.constant 0 : index
    %34 = vector.load %arg8[%c0_21, %c0_22] : memref<128x128xf32, #tpu.memory_space<vmem>>, vector<128x128xf32>
    tpu.vector_store %arg8[%c0_21, %c0_22], %33 {strides = array<i32>} : memref<128x128xf32, #tpu.memory_space<vmem>>, vector<128x128xf32>,
    return
  }
  func.func @transform_0(%arg0: i32) -> (i32, i32) {
    %c0_i32 = arith.constant 0 : i32
    %c0_i32_0 = arith.constant 0 : i32
    return %arg0, %c0_i32 : i32, i32
  }
  func.func @transform_1(%arg0: i32) -> (i32, i32) {
    %c0_i32 = arith.constant 0 : i32
    %c0_i32_0 = arith.constant 0 : i32
    %c0_i32_1 = arith.constant 0 : i32
    return %c0_i32, %c0_i32_0 : i32, i32
  }
  func.func @transform_2(%arg0: i32) -> (i32, i32) {
    %c0_i32 = arith.constant 0 : i32
    %c0_i32_0 = arith.constant 0 : i32
    %c0_i32_1 = arith.constant 0 : i32
    return %c0_i32, %c0_i32_0 : i32, i32
  }
  func.func @transform_3(%arg0: i32) -> (i32, i32) {
    %c0_i32 = arith.constant 0 : i32
    %c0_i32_0 = arith.constant 0 : i32
    %c0_i32_1 = arith.constant 0 : i32
    return %c0_i32, %c0_i32_0 : i32, i32
  }
  func.func @transform_4(%arg0: i32) -> (i32, i32) {
    %c0_i32 = arith.constant 0 : i32
    %c0_i32_0 = arith.constant 0 : i32
    %c0_i32_1 = arith.constant 0 : i32
    return %c0_i32, %c0_i32_0 : i32, i32
  }
  func.func @transform_5(%arg0: i32) -> (i32, i32) {
    %c0_i32 = arith.constant 0 : i32
    %c0_i32_0 = arith.constant 0 : i32
    %c0_i32_1 = arith.constant 0 : i32
    return %c0_i32, %c0_i32_0 : i32, i32
  }
  func.func @transform_6(%arg0: i32) -> (i32, i32) {
    %c0_i32 = arith.constant 0 : i32
    %c0_i32_0 = arith.constant 0 : i32
    %c0_i32_1 = arith.constant 0 : i32
    return %c0_i32, %c0_i32_0 : i32, i32
  }
  func.func @transform_7(%arg0: i32) -> (i32, i32) {
    %c0_i32 = arith.constant 0 : i32
    %c0_i32_0 = arith.constant 0 : i32
    return %arg0, %c0_i32 : i32, i32
  }
}

</mosaic_0001>

<bundles_post_ra>
// kernel: tpu_custom_call.1
= control target key start
LH: loop header
LB: loop body
LE: loop exit
PB: predicated region body
PF: predicated region fallthrough
CT: control target
= control target key end

     0   :  { %s4945_s0 = inlined_call_operand.vmem [shape: f32[128,784], index: 0, kind: input, shape index: {}]   ;;  %s4946_s1 = inlined_call_operand.vmem [shape: bf16[784,256], index: 1, kind: input, shape index: {}]   ;;  %s4947_s2 = inlined_call_operand.vmem [shape: f32[1,256], index: 2, kind: input, shape index: {}]   ;;  %s4948_s3 = inlined_call_operand.vmem [shape: bf16[256,256], index: 3, kind: input, shape index: {}]   ;;  %s4949_s4 = inlined_call_operand.vmem [shape: f32[1,256], index: 4, kind: input, shape index: {}]   ;;  %s4950_s5 = inlined_call_operand.vmem [shape: bf16[256,128], index: 5, kind: input, shape index: {}]   ;;  %s4951_s6 = inlined_call_operand.vmem [shape: f32[1,128], index: 6, kind: input, shape index: {}]   ;;  %s4952_s7 = inlined_call_operand.hbm [shape: f32[128,128], index: 7, kind: output, shape index: {}]  }
   0x1   :  { %v2489_v0 = vld [vmem:[%s4946_s1 + $0x70] sm:$0xf]  ;;  %v3046_v1 = vld [vmem:[%s4946_s1 + $0x74] sm:$0xf0]  ;;  %v2481_v11 = vld [vmem:[%s4946_s1 + $0x60] sm:$0xf] }
   0x2   :  { %v2553_v2 = vld [vmem:[%s4946_s1 + $0xf0] sm:$0xf]  ;;  %v2490_v3 = vor.u32 %v3046_v1, %v2489_v0  ;;  %v3062_v4 = vld [vmem:[%s4946_s1 + $0xf4] sm:$0xf0]  ;;  %v3044_v13 = vld [vmem:[%s4946_s1 + $0x64] sm:$0xf0] }
   0x3   :  { %v2617_v5 = vld [vmem:[%s4946_s1 + $0x170] sm:$0xf]  ;;  %v3078_v6 = vld [vmem:[%s4946_s1 + $0x174] sm:$0xf0]  ;;  %v2554_v7 = vor.u32 %v3062_v4, %v2553_v2  ;;  %v2545_v14 = vld [vmem:[%s4946_s1 + $0xe0] sm:$0xf]  ;;  %v2482_v16 = vor.u32 %v3044_v13, %v2481_v11 }
   0x4   :  { %v2618_v8 = vor.u32 %v3078_v6, %v2617_v5  ;;  %v2681_v9 = vld [vmem:[%s4946_s1 + $0x1f0] sm:$0xf]  ;;  %v3094_v10 = vld [vmem:[%s4946_s1 + $0x1f4] sm:$0xf0]  ;;  %815 = vmatpush.bf16.msra.mxu0 %v2490_v3  ;;  %v3060_v15 = vld [vmem:[%s4946_s1 + $0xe4] sm:$0xf0] }
   0x5   :  { %v2682_v12 = vor.u32 %v3094_v10, %v2681_v9  ;;  %864 = vmatpush.bf16.msra.mxu1 %v2554_v7  ;;  %v2546_v17 = vor.u32 %v3060_v15, %v2545_v14  ;;  %v2609_v18 = vld [vmem:[%s4946_s1 + $0x160] sm:$0xf]  ;;  %v3076_v19 = vld [vmem:[%s4946_s1 + $0x164] sm:$0xf0]  ;;  %v2473_v23 = vld [vmem:[%s4946_s1 + $0x50] sm:$0xf] }
   0x6   :  { %913 = vmatpush.bf16.msra.mxu2 %v2618_v8  ;;  %v2673_v20 = vld [vmem:[%s4946_s1 + $0x1e0] sm:$0xf]  ;;  %v2610_v21 = vor.u32 %v3076_v19, %v2609_v18  ;;  %v3092_v22 = vld [vmem:[%s4946_s1 + $0x1e4] sm:$0xf0]  ;;  %v3042_v24 = vld [vmem:[%s4946_s1 + $0x54] sm:$0xf0] }
   0x7   :  { %962 = vmatpush.bf16.msra.mxu3 %v2682_v12  ;;  %v2674_v25 = vor.u32 %v3092_v22, %v2673_v20  ;;  %v2537_v26 = vld [vmem:[%s4946_s1 + $0xd0] sm:$0xf]  ;;  %v3058_v27 = vld [vmem:[%s4946_s1 + $0xd4] sm:$0xf0]  ;;  %v2474_v29 = vor.u32 %v3042_v24, %v2473_v23  ;;  %v2465_v35 = vld [vmem:[%s4946_s1 + $0x40] sm:$0xf] }
   0x8   :  { %v2601_v28 = vld [vmem:[%s4946_s1 + $0x150] sm:$0xf]  ;;  %816 = vmatpush.bf16.msra.mxu0 %v2482_v16  ;;  %v3074_v30 = vld [vmem:[%s4946_s1 + $0x154] sm:$0xf0]  ;;  %v2538_v33 = vor.u32 %v3058_v27, %v2537_v26  ;;  %v3040_v36 = vld [vmem:[%s4946_s1 + $0x44] sm:$0xf0] }
   0x9   :  { %v2665_v31 = vld [vmem:[%s4946_s1 + $0x1d0] sm:$0xf]  ;;  %v3090_v32 = vld [vmem:[%s4946_s1 + $0x1d4] sm:$0xf0]  ;;  %865 = vmatpush.bf16.msra.mxu1 %v2546_v17  ;;  %v2602_v34 = vor.u32 %v3074_v30, %v2601_v28  ;;  %v2529_v37 = vld [vmem:[%s4946_s1 + $0xc0] sm:$0xf]  ;;  %v2466_v44 = vor.u32 %v3040_v36, %v2465_v35 }
   0xa   :  { %914 = vmatpush.bf16.msra.mxu2 %v2610_v21  ;;  %v2666_v38 = vor.u32 %v3090_v32, %v2665_v31  ;;  %v3056_v39 = vld [vmem:[%s4946_s1 + $0xc4] sm:$0xf0]  ;;  %v2593_v40 = vld [vmem:[%s4946_s1 + $0x140] sm:$0xf]  ;;  %v2457_v47 = vld [vmem:[%s4946_s1 + $0x30] sm:$0xf] }
   0xb   :  { %963 = vmatpush.bf16.msra.mxu3 %v2674_v25  ;;  %v3072_v41 = vld [vmem:[%s4946_s1 + $0x144] sm:$0xf0]  ;;  %v2657_v42 = vld [vmem:[%s4946_s1 + $0x1c0] sm:$0xf]  ;;  %v2530_v45 = vor.u32 %v3056_v39, %v2529_v37  ;;  %v3038_v48 = vld [vmem:[%s4946_s1 + $0x34] sm:$0xf0] }
   0xc   :  { %v3088_v43 = vld [vmem:[%s4946_s1 + $0x1c4] sm:$0xf0]  ;;  %817 = vmatpush.bf16.msra.mxu0 %v2474_v29  ;;  %v2594_v46 = vor.u32 %v3072_v41, %v2593_v40  ;;  %v2521_v49 = vld [vmem:[%s4946_s1 + $0xb0] sm:$0xf]  ;;  %v3054_v51 = vld [vmem:[%s4946_s1 + $0xb4] sm:$0xf0]  ;;  %v2458_v56 = vor.u32 %v3038_v48, %v2457_v47 }
   0xd   :  { %866 = vmatpush.bf16.msra.mxu1 %v2538_v33  ;;  %v2658_v50 = vor.u32 %v3088_v43, %v2657_v42  ;;  %v2585_v52 = vld [vmem:[%s4946_s1 + $0x130] sm:$0xf]  ;;  %v3070_v53 = vld [vmem:[%s4946_s1 + $0x134] sm:$0xf0]  ;;  %v2522_v57 = vor.u32 %v3054_v51, %v2521_v49  ;;  %v2449_v59 = vld [vmem:[%s4946_s1 + $0x20] sm:$0xf] }
   0xe   :  { %915 = vmatpush.bf16.msra.mxu2 %v2602_v34  ;;  %v2649_v54 = vld [vmem:[%s4946_s1 + $0x1b0] sm:$0xf]  ;;  %v3086_v55 = vld [vmem:[%s4946_s1 + $0x1b4] sm:$0xf0]  ;;  %v2586_v58 = vor.u32 %v3070_v53, %v2585_v52  ;;  %v3036_v60 = vld [vmem:[%s4946_s1 + $0x24] sm:$0xf0] }
   0xf   :  { %964 = vmatpush.bf16.msra.mxu3 %v2666_v38  ;;  %v2513_v61 = vld [vmem:[%s4946_s1 + $0xa0] sm:$0xf]  ;;  %v2650_v62 = vor.u32 %v3086_v55, %v2649_v54  ;;  %v3052_v63 = vld [vmem:[%s4946_s1 + $0xa4] sm:$0xf0]  ;;  %v2450_v4 = vor.u32 %v3036_v60, %v2449_v59  ;;  %v2441_v7 = vld [vmem:[%s4946_s1 + $0x10] sm:$0xf] }
  0x10   :  { %818 = vmatpush.bf16.msra.mxu0 %v2466_v44  ;;  %v2577_v0 = vld [vmem:[%s4946_s1 + $0x120] sm:$0xf]  ;;  %v3068_v1 = vld [vmem:[%s4946_s1 + $0x124] sm:$0xf0]  ;;  %v2514_v5 = vor.u32 %v3052_v63, %v2513_v61  ;;  %v3034_v8 = vld [vmem:[%s4946_s1 + $0x14] sm:$0xf0] }
  0x11   :  { %867 = vmatpush.bf16.msra.mxu1 %v2530_v45  ;;  %v2641_v2 = vld [vmem:[%s4946_s1 + $0x1a0] sm:$0xf]  ;;  %v3084_v3 = vld [vmem:[%s4946_s1 + $0x1a4] sm:$0xf0]  ;;  %v2578_v6 = vor.u32 %v3068_v1, %v2577_v0  ;;  %v2505_v9 = vld [vmem:[%s4946_s1 + $0x90] sm:$0xf]  ;;  %v2442_v16 = vor.u32 %v3034_v8, %v2441_v7 }
  0x12   :  { %916 = vmatpush.bf16.msra.mxu2 %v2594_v46  ;;  %v2642_v10 = vor.u32 %v3084_v3, %v2641_v2  ;;  %v3050_v11 = vld [vmem:[%s4946_s1 + $0x94] sm:$0xf0]  ;;  %v2569_v12 = vld [vmem:[%s4946_s1 + $0x110] sm:$0xf]  ;;  %v2433_v17 = vld [vmem:[%s4946_s1] sm:$0xf] }
  0x13   :  { %965 = vmatpush.bf16.msra.mxu3 %v2658_v50  ;;  %v3066_v13 = vld [vmem:[%s4946_s1 + $0x114] sm:$0xf0]  ;;  %v2633_v14 = vld [vmem:[%s4946_s1 + $0x190] sm:$0xf]  ;;  %v3032_v18 = vld [vmem:[%s4946_s1 + $0x4] sm:$0xf0]  ;;  %v2506_v20 = vor.u32 %v3050_v11, %v2505_v9 }
  0x14   :  { %819 = vmatpush.bf16.msra.mxu0 %v2458_v56  ;;  %v3082_v15 = vld [vmem:[%s4946_s1 + $0x194] sm:$0xf0]  ;;  %v2497_v19 = vld [vmem:[%s4946_s1 + $0x80] sm:$0xf]  ;;  %v2570_v21 = vor.u32 %v3066_v13, %v2569_v12  ;;  %v3048_v22 = vld [vmem:[%s4946_s1 + $0x84] sm:$0xf0]  ;;  %v2434_v32 = vor.u32 %v3032_v18, %v2433_v17 }
  0x15   :  { %868 = vmatpush.bf16.msra.mxu1 %v2522_v57  ;;  %v2561_v23 = vld [vmem:[%s4946_s1 + $0x100] sm:$0xf]  ;;  %v3064_v24 = vld [vmem:[%s4946_s1 + $0x104] sm:$0xf0]  ;;  %v2634_v25 = vor.u32 %v3082_v15, %v2633_v14  ;;  %v35_v29 = vld [vmem:[%s4945_s0 + $0x38] sm:$0xff]  ;;  %v2498_v36 = vor.u32 %v3048_v22, %v2497_v19 }
  0x16   :  { %917 = vmatpush.bf16.msra.mxu2 %v2586_v58  ;;  %v2625_v26 = vld [vmem:[%s4946_s1 + $0x180] sm:$0xf]  ;;  %v3080_v27 = vld [vmem:[%s4946_s1 + $0x184] sm:$0xf0]  ;;  %v2745_v30 = vld [vmem:[%s4946_s1 + $0x270] sm:$0xf]  ;;  %v2562_v37 = vor.u32 %v3064_v24, %v2561_v23 }
  0x17   :  { %966 = vmatpush.bf16.msra.mxu3 %v2650_v62  ;;  %v28_v28 = vld [vmem:[%s4945_s0] sm:$0xff]  ;;  %v3110_v31 = vld [vmem:[%s4946_s1 + $0x274] sm:$0xf0]  ;;  %v29_v33 = vld [vmem:[%s4945_s0 + $0x8] sm:$0xff]  ;;  %v2626_v41 = vor.u32 %v3080_v27, %v2625_v26 }
  0x18   :  { %820 = vmatpush.bf16.msra.mxu0 %v2450_v4  ;;  %v2809_v34 = vld [vmem:[%s4946_s1 + $0x2f0] sm:$0xf]  ;;  %v3126_v35 = vld [vmem:[%s4946_s1 + $0x2f4] sm:$0xf0]  ;;  %v36_v38 = vld [vmem:[%s4945_s0 + $0x40] sm:$0xff]  ;;  %v2746_v42 = vor.u32 %v3110_v31, %v2745_v30  ;;  %v3482_v46 = vpack.c.bf16 %v35_v29, %v28_v28 }
  0x19   :  { %869 = vmatpush.bf16.msra.mxu1 %v2514_v5  ;;  %v30_v39 = vld [vmem:[%s4945_s0 + $0x10] sm:$0xff]  ;;  %v37_v40 = vld [vmem:[%s4945_s0 + $0x48] sm:$0xff]  ;;  %v31_v43 = vld [vmem:[%s4945_s0 + $0x18] sm:$0xff]  ;;  %v2810_v47 = vor.u32 %v3126_v35, %v2809_v34 }
  0x1a   :  { %918 = vmatpush.bf16.msra.mxu2 %v2578_v6  ;;  %v38_v44 = vld [vmem:[%s4945_s0 + $0x50] sm:$0xff]  ;;  %v2737_v45 = vld [vmem:[%s4946_s1 + $0x260] sm:$0xf]  ;;  %v3108_v48 = vld [vmem:[%s4946_s1 + $0x264] sm:$0xf0] }
  0x1b   :  { %967 = vmatpush.bf16.msra.mxu3 %v2642_v10 }
  0x1c   :  { %821 = vmatpush.bf16.msra.mxu0 %v2442_v16 }
  0x1d   :  { %870 = vmatpush.bf16.msra.mxu1 %v2506_v20 }
  0x1e   :  { %919 = vmatpush.bf16.msra.mxu2 %v2570_v21 }
  0x1f   :  { %968 = vmatpush.bf16.msra.mxu3 %v2634_v25 }
  0x20   :  { %12 = vsyncpa [#allocation3], 0  ;;  %822 = vmatpush.bf16.msra.mxu0 %v2434_v32  ;;  %v3487_v49 = vpack.c.bf16 %v36_v38, %v29_v33  ;;  %v3489_v50 = vpack.c.bf16 %v37_v40, %v30_v39  ;;  %v2801_v51 = vld [vmem:[%s4946_s1 + $0x2e0] sm:$0xf]  ;;  %v3124_v52 = vld [vmem:[%s4946_s1 + $0x2e4] sm:$0xf0]  ;;  %v3497_v53 = vpack.c.bf16 %v38_v44, %v31_v43  ;;  %v2738_v54 = vor.u32 %v3108_v48, %v2737_v45 }
  0x21   :  { %871 = vmatpush.bf16.msra.mxu1 %v2498_v36  ;;  %v2802_v55 = vor.u32 %v3124_v52, %v2801_v51  ;;  %v2729_v56 = vld [vmem:[%s4946_s1 + $0x250] sm:$0xf]  ;;  %v3106_v57 = vld [vmem:[%s4946_s1 + $0x254] sm:$0xf0]  ;;  %v49_v63 = vld [vmem:[%s4945_s0 + $0xa8] sm:$0xff]  ;;  %vm790_vm0 = vcmask 130048  }
  0x22   :  { %920 = vmatpush.bf16.msra.mxu2 %v2562_v37  ;;  %v2793_v58 = vld [vmem:[%s4946_s1 + $0x2d0] sm:$0xf]  ;;  %v3122_v59 = vld [vmem:[%s4946_s1 + $0x2d4] sm:$0xf0]  ;;  %v2730_v60 = vor.u32 %v3106_v57, %v2729_v56  ;;  %v44_v2 = vld [vmem:[%s4945_s0 + $0x80] sm:$0xff]  ;;  %s2419_s29 = sshll.u32 %s4952_s7, 4  ;;  %s2420_s29 = int_to_ptr.hbm [resolvable:$true] %s2419_s29 }
  0x23   :  { %969 = vmatpush.bf16.msra.mxu3 %v2626_v41  ;;  %823 = vmatmul.bf16.vlgmr.msra.gmra.mxu0 %v3482_v46  ;;  %v2794_v61 = vor.u32 %v3122_v59, %v2793_v58  ;;  %v42_v62 = vld [vmem:[%s4945_s0 + $0x70] sm:$0xff]  ;;  %v43_v0 = vld [vmem:[%s4945_s0 + $0x78] sm:$0xff]  ;;  %v45_v4 = vld [vmem:[%s4945_s0 + $0x88] sm:$0xff]  ;;  %s3209_s30 = smov 128   ;;  %s3210_s8 = smov 8  }
  0x24   :  { %1011 = vmatpush.bf16.msrb.mxu0 %v2746_v42  ;;  %872 = vmatmul.bf16.vlgmr.msra.gmra.mxu1 %v3487_v49  ;;  %v50_v1 = vld [vmem:[%s4945_s0 + $0xb0] sm:$0xff]  ;;  %v51_v3 = vld [vmem:[%s4945_s0 + $0xb8] sm:$0xff]  ;;  %v52_v5 = vld [vmem:[%s4945_s0 + $0xc0] sm:$0xff]  ;;  %v3539_v6 = vpack.c.bf16 %v49_v63, %v42_v62 }
  0x25   :  { %1060 = vmatpush.bf16.msrb.mxu1 %v2810_v47  ;;  %921 = vmatmul.bf16.vlgmr.msra.gmra.mxu2 %v3489_v50  ;;  %v3541_v7 = vpack.c.bf16 %v50_v1, %v43_v0  ;;  %v3543_v8 = vpack.c.bf16 %v51_v3, %v44_v2  ;;  %v3545_v9 = vpack.c.bf16 %v52_v5, %v45_v4  ;;  %v2721_v10 = vld [vmem:[%s4946_s1 + $0x240] sm:$0xf]  ;;  %v3104_v11 = vld [vmem:[%s4946_s1 + $0x244] sm:$0xf0]  ;;  %v63_v17 = vld [vmem:[%s4945_s0 + $0x118] sm:$0xff] }
  0x26   :  { %970 = vmatmul.bf16.vlgmr.msra.gmra.mxu3 %v3497_v53  ;;  %v2722_v12 = vor.u32 %v3104_v11, %v2721_v10  ;;  %v2785_v13 = vld [vmem:[%s4946_s1 + $0x2c0] sm:$0xf]  ;;  %v3120_v14 = vld [vmem:[%s4946_s1 + $0x2c4] sm:$0xf0]  ;;  %v58_v20 = vld [vmem:[%s4945_s0 + $0xf0] sm:$0xff] }
  0x27   :  { %v2786_v15 = vor.u32 %v3120_v14, %v2785_v13  ;;  %v56_v16 = vld [vmem:[%s4945_s0 + $0xe0] sm:$0xff]  ;;  %v57_v18 = vld [vmem:[%s4945_s0 + $0xe8] sm:$0xff]  ;;  %v59_v22 = vld [vmem:[%s4945_s0 + $0xf8] sm:$0xff] }
  0x28   :  { %1012 = vmatpush.bf16.msrb.mxu0 %v2738_v54  ;;  %v64_v19 = vld [vmem:[%s4945_s0 + $0x120] sm:$0xff]  ;;  %v65_v21 = vld [vmem:[%s4945_s0 + $0x128] sm:$0xff]  ;;  %v66_v23 = vld [vmem:[%s4945_s0 + $0x130] sm:$0xff]  ;;  %v3587_v24 = vpack.c.bf16 %v63_v17, %v56_v16 }
  0x29   :  { %1061 = vmatpush.bf16.msrb.mxu1 %v2802_v55  ;;  %v3589_v25 = vpack.c.bf16 %v64_v19, %v57_v18  ;;  %v3591_v26 = vpack.c.bf16 %v65_v21, %v58_v20  ;;  %v3593_v27 = vpack.c.bf16 %v66_v23, %v59_v22  ;;  %v2713_v28 = vld [vmem:[%s4946_s1 + $0x230] sm:$0xf]  ;;  %v3102_v29 = vld [vmem:[%s4946_s1 + $0x234] sm:$0xf0]  ;;  %v77_v35 = vld [vmem:[%s4945_s0 + $0x188] sm:$0xff] }
  0x2a   :  { %v2714_v30 = vor.u32 %v3102_v29, %v2713_v28  ;;  %v2777_v31 = vld [vmem:[%s4946_s1 + $0x2b0] sm:$0xf]  ;;  %v3118_v32 = vld [vmem:[%s4946_s1 + $0x2b4] sm:$0xf0]  ;;  %v72_v38 = vld [vmem:[%s4945_s0 + $0x160] sm:$0xff] }
  0x2b   :  { %v2778_v33 = vor.u32 %v3118_v32, %v2777_v31  ;;  %v70_v34 = vld [vmem:[%s4945_s0 + $0x150] sm:$0xff]  ;;  %v71_v36 = vld [vmem:[%s4945_s0 + $0x158] sm:$0xff]  ;;  %v73_v40 = vld [vmem:[%s4945_s0 + $0x168] sm:$0xff] }
  0x2c   :  { %1013 = vmatpush.bf16.msrb.mxu0 %v2730_v60  ;;  %v78_v37 = vld [vmem:[%s4945_s0 + $0x190] sm:$0xff]  ;;  %v79_v39 = vld [vmem:[%s4945_s0 + $0x198] sm:$0xff]  ;;  %v80_v41 = vld [vmem:[%s4945_s0 + $0x1a0] sm:$0xff]  ;;  %v3635_v42 = vpack.c.bf16 %v77_v35, %v70_v34 }
  0x2d   :  { %1062 = vmatpush.bf16.msrb.mxu1 %v2794_v61  ;;  %v3637_v43 = vpack.c.bf16 %v78_v37, %v71_v36  ;;  %v3639_v44 = vpack.c.bf16 %v79_v39, %v72_v38  ;;  %v3641_v45 = vpack.c.bf16 %v80_v41, %v73_v40  ;;  %v2705_v47 = vld [vmem:[%s4946_s1 + $0x220] sm:$0xf]  ;;  %v3100_v48 = vld [vmem:[%s4946_s1 + $0x224] sm:$0xf0]  ;;  %v91_v57 = vld [vmem:[%s4945_s0 + $0x1f8] sm:$0xff] }
  0x2e   :  { %v2706_v51 = vor.u32 %v3100_v48, %v2705_v47  ;;  %v2769_v52 = vld [vmem:[%s4946_s1 + $0x2a0] sm:$0xf]  ;;  %v3116_v54 = vld [vmem:[%s4946_s1 + $0x2a4] sm:$0xf0]  ;;  %v86_v60 = vld [vmem:[%s4945_s0 + $0x1d0] sm:$0xff] }
  0x2f   :  { %v2770_v55 = vor.u32 %v3116_v54, %v2769_v52  ;;  %v84_v56 = vld [vmem:[%s4945_s0 + $0x1c0] sm:$0xff]  ;;  %v85_v58 = vld [vmem:[%s4945_s0 + $0x1c8] sm:$0xff]  ;;  %v87_v62 = vld [vmem:[%s4945_s0 + $0x1d8] sm:$0xff] }
  0x30   :  { %1014 = vmatpush.bf16.msrb.mxu0 %v2722_v12  ;;  %v92_v59 = vld [vmem:[%s4945_s0 + $0x200] sm:$0xff]  ;;  %v93_v61 = vld [vmem:[%s4945_s0 + $0x208] sm:$0xff]  ;;  %v94_v63 = vld [vmem:[%s4945_s0 + $0x210] sm:$0xff]  ;;  %v3683_v0 = vpack.c.bf16 %v91_v57, %v84_v56 }
  0x31   :  { %1063 = vmatpush.bf16.msrb.mxu1 %v2786_v15  ;;  %v3685_v1 = vpack.c.bf16 %v92_v59, %v85_v58  ;;  %v3687_v2 = vpack.c.bf16 %v93_v61, %v86_v60  ;;  %v3689_v3 = vpack.c.bf16 %v94_v63, %v87_v62  ;;  %v2697_v4 = vld [vmem:[%s4946_s1 + $0x210] sm:$0xf]  ;;  %v3098_v5 = vld [vmem:[%s4946_s1 + $0x214] sm:$0xf0]  ;;  %v3045_v10 = vld [vmem:[%s4946_s1 + $0x74] sm:$0xf] }
  0x32   :  { %v2698_v11 = vor.u32 %v3098_v5, %v2697_v4  ;;  %v2761_v12 = vld [vmem:[%s4946_s1 + $0x290] sm:$0xf]  ;;  %v3114_v13 = vld [vmem:[%s4946_s1 + $0x294] sm:$0xf0]  ;;  %v2491_v14 = vld [vmem:[%s4946_s1 + $0x78] sm:$0xf0] }
  0x33   :  { %828 = vmatmul.bf16.gmra.mxu0 %v3539_v6  ;;  %v2762_v15 = vor.u32 %v3114_v13, %v2761_v12  ;;  %v2494_v16 = vor.u32 %v3045_v10, %v2491_v14  ;;  %v3043_v17 = vld [vmem:[%s4946_s1 + $0x64] sm:$0xf]  ;;  %v2483_v18 = vld [vmem:[%s4946_s1 + $0x68] sm:$0xf0]  ;;  %v3041_v20 = vld [vmem:[%s4946_s1 + $0x54] sm:$0xf] }
  0x34   :  { %877 = vmatmul.bf16.gmra.mxu1 %v3541_v7  ;;  %1015 = vmatpush.bf16.msrb.mxu0 %v2714_v30  ;;  %v2486_v19 = vor.u32 %v3043_v17, %v2483_v18  ;;  %v2475_v21 = vld [vmem:[%s4946_s1 + $0x58] sm:$0xf0]  ;;  %v98_v22 = vld [vmem:[%s4945_s0 + $0x230] sm:$0xff]  ;;  %v105_v23 = vld [vmem:[%s4945_s0 + $0x268] sm:$0xff] }
  0x35   :  { %926 = vmatmul.bf16.gmra.mxu2 %v3543_v8  ;;  %1064 = vmatpush.bf16.msrb.mxu1 %v2778_v33  ;;  %v99_v28 = vld [vmem:[%s4945_s0 + $0x238] sm:$0xff]  ;;  %v2478_v29 = vor.u32 %v3041_v20, %v2475_v21  ;;  %v106_v30 = vld [vmem:[%s4945_s0 + $0x270] sm:$0xff]  ;;  %v100_v31 = vld [vmem:[%s4945_s0 + $0x240] sm:$0xff]  ;;  %v3749_v35 = vpack.c.bf16 %v105_v23, %v98_v22 }
  0x36   :  { %975 = vmatmul.bf16.gmra.mxu3 %v3545_v9  ;;  %v107_v32 = vld [vmem:[%s4945_s0 + $0x278] sm:$0xff]  ;;  %v101_v33 = vld [vmem:[%s4945_s0 + $0x248] sm:$0xff]  ;;  %v108_v34 = vld [vmem:[%s4945_s0 + $0x280] sm:$0xff]  ;;  %v3757_v38 = vpack.c.bf16 %v106_v30, %v99_v28 }
  0x37   :  { %1158 = vmatpush.bf16.msrb.mxu3 %v2494_v16  ;;  %v3039_v36 = vld [vmem:[%s4946_s1 + $0x44] sm:$0xf]  ;;  %v2467_v37 = vld [vmem:[%s4946_s1 + $0x48] sm:$0xf0]  ;;  %v3759_v39 = vpack.c.bf16 %v107_v32, %v100_v31  ;;  %v3761_v40 = vpack.c.bf16 %v108_v34, %v101_v33  ;;  %v2689_v47 = vld [vmem:[%s4946_s1 + $0x200] sm:$0xf] }
  0x38   :  { %1016 = vmatpush.bf16.msrb.mxu0 %v2706_v51  ;;  %v2470_v41 = vor.u32 %v3039_v36, %v2467_v37  ;;  %v3096_v48 = vld [vmem:[%s4946_s1 + $0x204] sm:$0xf0]  ;;  %v3037_v51 = vld [vmem:[%s4946_s1 + $0x34] sm:$0xf]  ;;  %v2753_v54 = vld [vmem:[%s4946_s1 + $0x280] sm:$0xf] }
  0x39   :  { %1065 = vmatpush.bf16.msrb.mxu1 %v2770_v55  ;;  %v2690_v52 = vor.u32 %v3096_v48, %v2689_v47  ;;  %v3112_v55 = vld [vmem:[%s4946_s1 + $0x284] sm:$0xf0]  ;;  %v2459_v56 = vld [vmem:[%s4946_s1 + $0x38] sm:$0xf0]  ;;  %v2817_v59 = vld [vmem:[%s4946_s1 + $0x300] sm:$0xf] }
  0x3a   :  { %v2754_v57 = vor.u32 %v3112_v55, %v2753_v54  ;;  %v2462_v58 = vor.u32 %v3037_v51, %v2459_v56  ;;  %v3128_v60 = vld [vmem:[%s4946_s1 + $0x304] sm:$0xf0]  ;;  %v3035_v62 = vld [vmem:[%s4946_s1 + $0x24] sm:$0xf]  ;;  %v2451_v63 = vld [vmem:[%s4946_s1 + $0x28] sm:$0xf0] }
  0x3b   :  { %1159 = vmatpush.bf16.msrb.mxu3 %v2486_v19  ;;  %v2818_v61 = vor.u32 %v3128_v60, %v2817_v59  ;;  %v2454_v4 = vor.u32 %v3035_v62, %v2451_v63  ;;  %v3033_v5 = vld [vmem:[%s4946_s1 + $0x14] sm:$0xf]  ;;  %v2443_v10 = vld [vmem:[%s4946_s1 + $0x18] sm:$0xf0]  ;;  %v113_v13 = vld [vmem:[%s4945_s0 + $0x2a8] sm:$0xff] }
  0x3c   :  { %1017 = vmatpush.bf16.msrb.mxu0 %v2698_v11  ;;  %v112_v11 = vld [vmem:[%s4945_s0 + $0x2a0] sm:$0xff]  ;;  %v119_v12 = vld [vmem:[%s4945_s0 + $0x2d8] sm:$0xff]  ;;  %v121_v16 = vld [vmem:[%s4945_s0 + $0x2e8] sm:$0xff]  ;;  %v2446_v19 = vor.u32 %v3033_v5, %v2443_v10 }
  0x3d   :  { %1066 = vmatpush.bf16.msrb.mxu1 %v2762_v15  ;;  %1116 = vmatpush.bf16.msrb.mxu2 %v2818_v61  ;;  %v120_v14 = vld [vmem:[%s4945_s0 + $0x2e0] sm:$0xff]  ;;  %v114_v15 = vld [vmem:[%s4945_s0 + $0x2b0] sm:$0xff]  ;;  %v115_v17 = vld [vmem:[%s4945_s0 + $0x2b8] sm:$0xff]  ;;  %v3827_v20 = vpack.c.bf16 %v119_v12, %v112_v11 }
  0x3e   :  { %v122_v18 = vld [vmem:[%s4945_s0 + $0x2f0] sm:$0xff]  ;;  %v3829_v21 = vpack.c.bf16 %v120_v14, %v113_v13  ;;  %v3831_v22 = vpack.c.bf16 %v121_v16, %v114_v15  ;;  %v3031_v23 = vld [vmem:[%s4946_s1 + $0x4] sm:$0xf]  ;;  %v2435_v28 = vld [vmem:[%s4946_s1 + $0x8] sm:$0xf0] }
  0x3f   :  { %1160 = vmatpush.bf16.msrb.mxu3 %v2478_v29  ;;  %v3839_v29 = vpack.c.bf16 %v122_v18, %v115_v17  ;;  %v2438_v30 = vor.u32 %v3031_v23, %v2435_v28  ;;  %v3061_v31 = vld [vmem:[%s4946_s1 + $0xf4] sm:$0xf]  ;;  %v2555_v32 = vld [vmem:[%s4946_s1 + $0xf8] sm:$0xf0]  ;;  %v133_v47 = vld [vmem:[%s4945_s0 + $0x348] sm:$0xff] }
  0x40   :  { %1018 = vmatpush.bf16.msrb.mxu0 %v2690_v52  ;;  %v2558_v33 = vor.u32 %v3061_v31, %v2555_v32  ;;  %v3077_v34 = vld [vmem:[%s4946_s1 + $0x174] sm:$0xf]  ;;  %v2619_v36 = vld [vmem:[%s4946_s1 + $0x178] sm:$0xf0]  ;;  %v128_v52 = vld [vmem:[%s4945_s0 + $0x320] sm:$0xff] }
  0x41   :  { %1067 = vmatpush.bf16.msrb.mxu1 %v2754_v57  ;;  %v2622_v37 = vor.u32 %v3077_v34, %v2619_v36  ;;  %v127_v48 = vld [vmem:[%s4945_s0 + $0x318] sm:$0xff]  ;;  %v134_v51 = vld [vmem:[%s4945_s0 + $0x350] sm:$0xff]  ;;  %v129_v55 = vld [vmem:[%s4945_s0 + $0x328] sm:$0xff] }
  0x42   :  { %v135_v54 = vld [vmem:[%s4945_s0 + $0x358] sm:$0xff]  ;;  %v136_v56 = vld [vmem:[%s4945_s0 + $0x360] sm:$0xff]  ;;  %v2547_v62 = vld [vmem:[%s4946_s1 + $0xe8] sm:$0xf0] }
  0x43   :  { %833 = vmatmul.bf16.gmra.mxu0 %v3587_v24  ;;  %1161 = vmatpush.bf16.msrb.mxu3 %v2470_v41  ;;  %v126_v41 = vld [vmem:[%s4945_s0 + $0x310] sm:$0xff]  ;;  %v3885_v59 = vpack.c.bf16 %v135_v54, %v128_v52  ;;  %v3887_v60 = vpack.c.bf16 %v136_v56, %v129_v55  ;;  %v3059_v61 = vld [vmem:[%s4946_s1 + $0xe4] sm:$0xf]  ;;  %v2611_v5 = vld [vmem:[%s4946_s1 + $0x168] sm:$0xf0] }
  0x44   :  { %882 = vmatmul.bf16.gmra.mxu1 %v3589_v25  ;;  %1207 = vmatpush.bf16.msra.mxu0 %v2558_v33  ;;  %v3881_v57 = vpack.c.bf16 %v133_v47, %v126_v41  ;;  %v2550_v63 = vor.u32 %v3059_v61, %v2547_v62  ;;  %v294_v11 = vld [vmem:[%s4947_s2] sm:$0x3]  ;;  %v39_v13 = vld [vmem:[%s4945_s0 + $0x58] sm:$0xff]  ;;  %v33_v14 = vld [vmem:[%s4945_s0 + $0x28] sm:$0xff] }
  0x45   :  { %931 = vmatmul.bf16.gmra.mxu2 %v3591_v26  ;;  %1256 = vmatpush.bf16.msra.mxu1 %v2622_v37  ;;  %4971 = vst [vmem:[#allocation5_spill] sm:$0xff] %v3887_v60  ;;  %v32_v12 = vld [vmem:[%s4945_s0 + $0x20] sm:$0xff]  ;;  %v3917_v15 = vperm.slane %v294_v11, 0  ;;  %v34_v17 = vld [vmem:[%s4945_s0 + $0x30] sm:$0xff]  ;;  %v41_v18 = vld [vmem:[%s4945_s0 + $0x68] sm:$0xff] }
  0x46   :  { %980 = vmatmul.bf16.gmra.mxu3 %v3593_v27  ;;  %v40_v16 = vld [vmem:[%s4945_s0 + $0x60] sm:$0xff]  ;;  %v3057_v34 = vld [vmem:[%s4946_s1 + $0xd4] sm:$0xf]  ;;  %v2539_v36 = vld [vmem:[%s4946_s1 + $0xd8] sm:$0xf0] }
  0x47   :  { %1162 = vmatpush.bf16.msrb.mxu3 %v2462_v58  ;;  %v3883_v58 = vpack.c.bf16 %v134_v51, %v127_v48  ;;  %v3930_v28 = vpack.c.bf16 %v40_v16, %v33_v14  ;;  %v2542_v37 = vor.u32 %v3057_v34, %v2539_v36  ;;  %v3073_v41 = vld [vmem:[%s4946_s1 + $0x154] sm:$0xf]  ;;  %v2603_v47 = vld [vmem:[%s4946_s1 + $0x158] sm:$0xf0]  ;;  %v48_v11 = vld [vmem:[%s4945_s0 + $0xa0] sm:$0xff] }
  0x48   :  { %1208 = vmatpush.bf16.msra.mxu0 %v2550_v63  ;;  %v2606_v48 = vor.u32 %v3073_v41, %v2603_v47  ;;  %v46_v63 = vld [vmem:[%s4945_s0 + $0x90] sm:$0xff]  ;;  %v2531_v41 = vld [vmem:[%s4946_s1 + $0xc8] sm:$0xf0] }
  0x49   :  { %4972 = vst [vmem:[#allocation6_spill] sm:$0xff] %v3930_v28 }
  0x4b   :  { %1163 = vmatpush.bf16.msrb.mxu3 %v2454_v4  ;;  %v3075_v4 = vld [vmem:[%s4946_s1 + $0x164] sm:$0xf] }
  0x4c   :  { %v2614_v10 = vor.u32 %v3075_v4, %v2611_v5  ;;  %1209 = vmatpush.bf16.msra.mxu0 %v2542_v37  ;;  %v53_v4 = vld [vmem:[%s4945_s0 + $0xc8] sm:$0xff]  ;;  %v47_v5 = vld [vmem:[%s4945_s0 + $0x98] sm:$0xff]  ;;  %v3055_v37 = vld [vmem:[%s4946_s1 + $0xc4] sm:$0xf] }
  0x4d   :  { %v3973_v14 = vpack.c.bf16 %v53_v4, %v46_v63  ;;  %v2534_v47 = vor.u32 %v3055_v37, %v2531_v41 }
  0x4e   :  { %1257 = vmatpush.bf16.msra.mxu1 %v2614_v10  ;;  %v54_v10 = vld [vmem:[%s4945_s0 + $0xd0] sm:$0xff] }
  0x4f   :  { %1164 = vmatpush.bf16.msrb.mxu3 %v2446_v19  ;;  %v3928_v19 = vpack.c.bf16 %v39_v13, %v32_v12  ;;  %v55_v12 = vld [vmem:[%s4945_s0 + $0xd8] sm:$0xff] }
  0x50   :  { %1210 = vmatpush.bf16.msra.mxu0 %v2534_v47 }
  0x52   :  { %1258 = vmatpush.bf16.msra.mxu1 %v2606_v48  ;;  %v3071_v48 = vld [vmem:[%s4946_s1 + $0x144] sm:$0xf] }
  0x53   :  { %838 = vmatmul.bf16.gmra.mxu0 %v3635_v42  ;;  %1165 = vmatpush.bf16.msrb.mxu3 %v2438_v30  ;;  %v3932_v30 = vpack.c.bf16 %v41_v18, %v34_v17 }
  0x54   :  { %887 = vmatmul.bf16.gmra.mxu1 %v3637_v43 }
  0x55   :  { %936 = vmatmul.bf16.gmra.mxu2 %v3639_v44  ;;  %4973 = vst [vmem:[#allocation7_spill] sm:$0xff] %v3932_v30 }
  0x56   :  { %985 = vmatmul.bf16.gmra.mxu3 %v3641_v45 }
  0x63   :  { %843 = vmatmul.bf16.gmra.mxu0 %v3683_v0 }
  0x64   :  { %892 = vmatmul.bf16.gmra.mxu1 %v3685_v1 }
  0x65   :  { %941 = vmatmul.bf16.gmra.mxu2 %v3687_v2 }
  0x66   :  { %990 = vmatmul.bf16.gmra.mxu3 %v3689_v3 }
  0x73   :  { %848 = vmatmul.bf16.gmra.mxu0 %v3749_v35 }
  0x74   :  { %897 = vmatmul.bf16.gmra.mxu1 %v3757_v38 }
  0x75   :  { %946 = vmatmul.bf16.gmra.mxu2 %v3759_v39 }
  0x76   :  { %995 = vmatmul.bf16.gmra.mxu3 %v3761_v40 }
  0x83   :  { %853 = vmatmul.bf16.gmra.mxu0 %v3827_v20 }
  0x84   :  { %902 = vmatmul.bf16.gmra.mxu1 %v3829_v21 }
  0x85   :  { %951 = vmatmul.bf16.gmra.mxu2 %v3831_v22 }
  0x86   :  { %1000 = vmatmul.bf16.gmra.mxu3 %v3839_v29 }
  0x93   :  { %858 = vmatmul.bf16.gmra.mxu0 %v3881_v57 }
  0x94   :  { %907 = vmatmul.bf16.gmra.mxu1 %v3883_v58 }
  0x95   :  { %956 = vmatmul.bf16.gmra.mxu2 %v3885_v59 }
  0x96   :  { %1005 = vmatmul.bf16.gmra.mxu3 %v3887_v60 }
  0xa0   :  { %v824_v23 = vpop.f32.mrf.mxu0 }
  0xa1   :  { %v825_v31 = vadd.f32 %v824_v23, %v3917_v15  ;;  %v873_v32 = vpop.f32.mrf.mxu1  ;;  %v3975_v23 = vpack.c.bf16 %v54_v10, %v47_v5  ;;  %v60_v5 = vld [vmem:[%s4945_s0 + $0x100] sm:$0xff]  ;;  %v67_v10 = vld [vmem:[%s4945_s0 + $0x138] sm:$0xff] }
  0xa3   :  { %v874_v33 = vadd.f32 %v873_v32, %v825_v31  ;;  %1019 = vmatmul.bf16.vlgmr.msrb.gmra.mxu0 %v3928_v19  ;;  %4974 = vst [vmem:[#allocation8_spill] sm:$0xff] %v3975_v23  ;;  %v3977_v31 = vpack.c.bf16 %v55_v12, %v48_v11  ;;  %v61_v11 = vld [vmem:[%s4945_s0 + $0x108] sm:$0xff]  ;;  %v68_v12 = vld [vmem:[%s4945_s0 + $0x140] sm:$0xff] }
  0xa4   :  { %1068 = vmatmul.bf16.vlgmr.msrb.gmra.mxu1 %v3930_v28  ;;  %v4022_v37 = vpack.c.bf16 %v68_v12, %v61_v11 }
  0xa5   :  { %2823 = vmatmul.msk.bf16.vlgmr.msrb.gmra.mxu2 %vm790_vm0, %v3932_v30  ;;  %4975 = vst [vmem:[#allocation9_spill] sm:$0xff] %v3977_v31 }
  0xa6   :  { %1166 = vmatmul.bf16.vlgmr.msrb.gmra.mxu3 %v3482_v46  ;;  %4976 = vst [vmem:[#allocation10_spill] sm:$0xff] %v4022_v37 }
  0xa8   :  { %v922_v51 = vpop.f32.mrf.mxu2  ;;  %v826_v54 = vpop.f32.mrf.mxu0 }
  0xa9   :  { %v923_v52 = vadd.f32 %v922_v51, %v874_v33  ;;  %v971_v55 = vpop.f32.mrf.mxu3  ;;  %v827_v56 = vadd.f32 %v826_v54, %v3917_v15  ;;  %v875_v61 = vpop.f32.mrf.mxu1  ;;  %v2595_v51 = vld [vmem:[%s4946_s1 + $0x148] sm:$0xf0] }
  0xab   :  { %v3953_v46 = vadd.f32 %v971_v55, %v923_v52  ;;  %v876_v62 = vadd.f32 %v875_v61, %v827_v56  ;;  %v2598_v52 = vor.u32 %v3071_v48, %v2595_v51 }
  0xad   :  { %1259 = vmatpush.bf16.msra.mxu1 %v2598_v52 }
  0xb0   :  { %v924_v13 = vpop.f32.mrf.mxu2  ;;  %v829_v17 = vpop.f32.mrf.mxu0 }
  0xb1   :  { %v925_v16 = vadd.f32 %v924_v13, %v876_v62  ;;  %v973_v18 = vpop.f32.mrf.mxu3  ;;  %v830_v32 = vadd.f32 %v829_v17, %v3917_v15  ;;  %v878_v33 = vpop.f32.mrf.mxu1  ;;  %v62_v13 = vld [vmem:[%s4945_s0 + $0x110] sm:$0xff] }
  0xb3   :  { %v3980_v34 = vadd.f32 %v973_v18, %v925_v16  ;;  %v879_v36 = vadd.f32 %v878_v33, %v830_v32  ;;  %1024 = vmatmul.bf16.gmra.mxu0 %v3973_v14  ;;  %v69_v16 = vld [vmem:[%s4945_s0 + $0x148] sm:$0xff]  ;;  %v4020_v18 = vpack.c.bf16 %v67_v10, %v60_v5 }
  0xb4   :  { %1073 = vmatmul.bf16.gmra.mxu1 %v3975_v23  ;;  %v4024_v41 = vpack.c.bf16 %v69_v16, %v62_v13 }
  0xb5   :  { %2824 = vmatmul.msk.bf16.gmra.mxu2 %vm790_vm0, %v3977_v31 }
  0xb6   :  { %1171 = vmatmul.bf16.gmra.mxu3 %v3539_v6  ;;  %4977 = vst [vmem:[#allocation11_spill] sm:$0xff] %v4024_v41 }
  0xb8   :  { %v927_v54 = vpop.f32.mrf.mxu2  ;;  %v831_v56 = vpop.f32.mrf.mxu0 }
  0xb9   :  { %v928_v55 = vadd.f32 %v927_v54, %v879_v36  ;;  %v976_v61 = vpop.f32.mrf.mxu3  ;;  %v832_v62 = vadd.f32 %v831_v56, %v3917_v15  ;;  %v880_v63 = vpop.f32.mrf.mxu1  ;;  %v3053_v54 = vld [vmem:[%s4946_s1 + $0xb4] sm:$0xf] }
  0xbb   :  { %v4000_v6 = vadd.f32 %v976_v61, %v928_v55  ;;  %v881_v4 = vadd.f32 %v880_v63, %v832_v62  ;;  %v2523_v55 = vld [vmem:[%s4946_s1 + $0xb8] sm:$0xf0]  ;;  %v3069_v61 = vld [vmem:[%s4946_s1 + $0x134] sm:$0xf] }
  0xbc   :  { %v2526_v56 = vor.u32 %v3053_v54, %v2523_v55  ;;  %v2587_v62 = vld [vmem:[%s4946_s1 + $0x138] sm:$0xf0] }
  0xbd   :  { %v2590_v63 = vor.u32 %v3069_v61, %v2587_v62 }
  0xbe   :  { %1211 = vmatpush.bf16.msra.mxu0 %v2526_v56 }
  0xbf   :  { %1260 = vmatpush.bf16.msra.mxu1 %v2590_v63 }
  0xc0   :  { %v929_v17 = vpop.f32.mrf.mxu2  ;;  %v834_v33 = vpop.f32.mrf.mxu0 }
  0xc1   :  { %v930_v32 = vadd.f32 %v929_v17, %v881_v4  ;;  %v978_v36 = vpop.f32.mrf.mxu3  ;;  %v835_v47 = vadd.f32 %v834_v33, %v3917_v15  ;;  %v883_v48 = vpop.f32.mrf.mxu1  ;;  %v74_v17 = vld [vmem:[%s4945_s0 + $0x170] sm:$0xff]  ;;  %v75_v33 = vld [vmem:[%s4945_s0 + $0x178] sm:$0xff] }
  0xc3   :  { %v4027_v51 = vadd.f32 %v978_v36, %v930_v32  ;;  %v884_v52 = vadd.f32 %v883_v48, %v835_v47  ;;  %1029 = vmatmul.bf16.gmra.mxu0 %v4020_v18  ;;  %v81_v32 = vld [vmem:[%s4945_s0 + $0x1a8] sm:$0xff]  ;;  %v82_v36 = vld [vmem:[%s4945_s0 + $0x1b0] sm:$0xff]  ;;  %v76_v47 = vld [vmem:[%s4945_s0 + $0x180] sm:$0xff] }
  0xc4   :  { %1078 = vmatmul.bf16.gmra.mxu1 %v4022_v37  ;;  %v83_v48 = vld [vmem:[%s4945_s0 + $0x1b8] sm:$0xff]  ;;  %v4067_v54 = vpack.c.bf16 %v81_v32, %v74_v17  ;;  %v4069_v62 = vpack.c.bf16 %v82_v36, %v75_v33  ;;  %v3067_v17 = vld [vmem:[%s4946_s1 + $0x124] sm:$0xf]  ;;  %v2579_v32 = vld [vmem:[%s4946_s1 + $0x128] sm:$0xf0] }
  0xc5   :  { %2825 = vmatmul.msk.bf16.gmra.mxu2 %vm790_vm0, %v4024_v41  ;;  %v4071_v63 = vpack.c.bf16 %v83_v48, %v76_v47  ;;  %v2582_v33 = vor.u32 %v3067_v17, %v2579_v32 }
  0xc6   :  { %1176 = vmatmul.bf16.gmra.mxu3 %v3587_v24  ;;  %4978 = vst [vmem:[#allocation12_spill] sm:$0xff] %v4069_v62 }
  0xc7   :  { %4979 = vst [vmem:[#allocation13_spill] sm:$0xff] %v4071_v63  ;;  %1261 = vmatpush.bf16.msra.mxu1 %v2582_v33 }
  0xc8   :  { %v932_v4 = vpop.f32.mrf.mxu2  ;;  %v836_v10 = vpop.f32.mrf.mxu0 }
  0xc9   :  { %v933_v5 = vadd.f32 %v932_v4, %v884_v52  ;;  %v981_v11 = vpop.f32.mrf.mxu3  ;;  %v837_v12 = vadd.f32 %v836_v10, %v3917_v15  ;;  %v885_v13 = vpop.f32.mrf.mxu1 }
  0xcb   :  { %v4047_v24 = vadd.f32 %v981_v11, %v933_v5  ;;  %v886_v16 = vadd.f32 %v885_v13, %v837_v12  ;;  %v3051_v12 = vld [vmem:[%s4946_s1 + $0xa4] sm:$0xf]  ;;  %v2515_v13 = vld [vmem:[%s4946_s1 + $0xa8] sm:$0xf0] }
  0xd0   :  { %v934_v52 = vpop.f32.mrf.mxu2  ;;  %v839_v56 = vpop.f32.mrf.mxu0 }
  0xd1   :  { %v935_v55 = vadd.f32 %v934_v52, %v886_v16  ;;  %v983_v61 = vpop.f32.mrf.mxu3  ;;  %v840_v4 = vadd.f32 %v839_v56, %v3917_v15  ;;  %v888_v5 = vpop.f32.mrf.mxu1  ;;  %v2518_v16 = vor.u32 %v3051_v12, %v2515_v13  ;;  %v96_v12 = vld [vmem:[%s4945_s0 + $0x220] sm:$0xff]  ;;  %v90_v13 = vld [vmem:[%s4945_s0 + $0x1f0] sm:$0xff] }
  0xd3   :  { %v4074_v10 = vadd.f32 %v983_v61, %v935_v55  ;;  %v889_v11 = vadd.f32 %v888_v5, %v840_v4  ;;  %1034 = vmatmul.bf16.gmra.mxu0 %v4067_v54  ;;  %v88_v4 = vld [vmem:[%s4945_s0 + $0x1e0] sm:$0xff]  ;;  %v95_v5 = vld [vmem:[%s4945_s0 + $0x218] sm:$0xff] }
  0xd4   :  { %1083 = vmatmul.bf16.gmra.mxu1 %v4069_v62  ;;  %1212 = vmatpush.bf16.msra.mxu0 %v2518_v16  ;;  %v97_v16 = vld [vmem:[%s4945_s0 + $0x228] sm:$0xff]  ;;  %v4114_v32 = vpack.c.bf16 %v95_v5, %v88_v4  ;;  %v3093_v4 = vld [vmem:[%s4946_s1 + $0x1f4] sm:$0xf] }
  0xd5   :  { %2826 = vmatmul.msk.bf16.gmra.mxu2 %vm790_vm0, %v4071_v63  ;;  %v3049_v5 = vld [vmem:[%s4946_s1 + $0x94] sm:$0xf] }
  0xd6   :  { %1181 = vmatmul.bf16.gmra.mxu3 %v3635_v42 }
  0xd8   :  { %v937_v36 = vpop.f32.mrf.mxu2  ;;  %v841_v48 = vpop.f32.mrf.mxu0 }
  0xd9   :  { %v938_v47 = vadd.f32 %v937_v36, %v889_v11  ;;  %v986_v52 = vpop.f32.mrf.mxu3  ;;  %v842_v55 = vadd.f32 %v841_v48, %v3917_v15  ;;  %v890_v56 = vpop.f32.mrf.mxu1  ;;  %v89_v11 = vld [vmem:[%s4945_s0 + $0x1e8] sm:$0xff] }
  0xda   :  { %v4116_v48 = vpack.c.bf16 %v96_v12, %v89_v11  ;;  %v2507_v11 = vld [vmem:[%s4946_s1 + $0x98] sm:$0xf0] }
  0xdb   :  { %v4094_v42 = vadd.f32 %v986_v52, %v938_v47  ;;  %v891_v61 = vadd.f32 %v890_v56, %v842_v55  ;;  %v4118_v52 = vpack.c.bf16 %v97_v16, %v90_v13  ;;  %v3109_v13 = vld [vmem:[%s4946_s1 + $0x274] sm:$0xf]  ;;  %v2510_v16 = vor.u32 %v3049_v5, %v2507_v11 }
  0xdc   :  { %4980 = vst [vmem:[#allocation14_spill] sm:$0xff] %v4116_v48 }
  0xdd   :  { %4981 = vst [vmem:[#allocation15_spill] sm:$0xff] %v4118_v52  ;;  %1213 = vmatpush.bf16.msra.mxu0 %v2510_v16  ;;  %v2667_v16 = vld [vmem:[%s4946_s1 + $0x1d8] sm:$0xf0] }
  0xe0   :  { %v939_v17 = vpop.f32.mrf.mxu2  ;;  %v844_v36 = vpop.f32.mrf.mxu0 }
  0xe1   :  { %v940_v33 = vadd.f32 %v939_v17, %v891_v61  ;;  %v988_v47 = vpop.f32.mrf.mxu3  ;;  %v845_v55 = vadd.f32 %v844_v36, %v3917_v15  ;;  %v893_v56 = vpop.f32.mrf.mxu1  ;;  %v2683_v61 = vld [vmem:[%s4946_s1 + $0x1f8] sm:$0xf0]  ;;  %v3065_v17 = vld [vmem:[%s4946_s1 + $0x114] sm:$0xf] }
  0xe2   :  { %v2686_v12 = vor.u32 %v3093_v4, %v2683_v61  ;;  %v2747_v36 = vld [vmem:[%s4946_s1 + $0x278] sm:$0xf0] }
  0xe3   :  { %v4121_v63 = vadd.f32 %v988_v47, %v940_v33  ;;  %v894_v62 = vadd.f32 %v893_v56, %v845_v55  ;;  %1039 = vmatmul.bf16.gmra.mxu0 %v4114_v32  ;;  %v2571_v33 = vld [vmem:[%s4946_s1 + $0x118] sm:$0xf0]  ;;  %v2750_v55 = vor.u32 %v3109_v13, %v2747_v36  ;;  %v2675_v56 = vld [vmem:[%s4946_s1 + $0x1e8] sm:$0xf0] }
  0xe4   :  { %1088 = vmatmul.bf16.gmra.mxu1 %v4116_v48  ;;  %1305 = vmatpush.bf16.msra.mxu2 %v2686_v12  ;;  %v2574_v47 = vor.u32 %v3065_v17, %v2571_v33  ;;  %v3107_v12 = vld [vmem:[%s4946_s1 + $0x264] sm:$0xf]  ;;  %v2739_v13 = vld [vmem:[%s4946_s1 + $0x268] sm:$0xf0] }
  0xe5   :  { %2827 = vmatmul.msk.bf16.gmra.mxu2 %vm790_vm0, %v4118_v52  ;;  %1354 = vmatpush.bf16.msra.mxu3 %v2750_v55  ;;  %v2742_v36 = vor.u32 %v3107_v12, %v2739_v13  ;;  %v102_v55 = vld [vmem:[%s4945_s0 + $0x250] sm:$0xff]  ;;  %v111_v12 = vld [vmem:[%s4945_s0 + $0x298] sm:$0xff] }
  0xe6   :  { %1186 = vmatmul.bf16.gmra.mxu3 %v3683_v0  ;;  %v3091_v0 = vld [vmem:[%s4946_s1 + $0x1e4] sm:$0xf]  ;;  %1262 = vmatpush.bf16.msra.mxu1 %v2574_v47 }
  0xe7   :  { %v2678_v61 = vor.u32 %v3091_v0, %v2675_v56  ;;  %v109_v0 = vld [vmem:[%s4945_s0 + $0x288] sm:$0xff]  ;;  %v103_v56 = vld [vmem:[%s4945_s0 + $0x258] sm:$0xff] }
  0xe8   :  { %v942_v4 = vpop.f32.mrf.mxu2  ;;  %v846_v11 = vpop.f32.mrf.mxu0 }
  0xe9   :  { %v943_v5 = vadd.f32 %v942_v4, %v894_v62  ;;  %v991_v52 = vpop.f32.mrf.mxu3  ;;  %v847_v17 = vadd.f32 %v846_v11, %v3917_v15  ;;  %v895_v33 = vpop.f32.mrf.mxu1  ;;  %1306 = vmatpush.bf16.msra.mxu2 %v2678_v61  ;;  %v3089_v62 = vld [vmem:[%s4946_s1 + $0x1d4] sm:$0xf]  ;;  %1355 = vmatpush.bf16.msra.mxu3 %v2742_v36  ;;  %v2731_v61 = vld [vmem:[%s4946_s1 + $0x258] sm:$0xf0]  ;;  %v104_v11 = vld [vmem:[%s4945_s0 + $0x260] sm:$0xff] }
  0xea   :  { %v3105_v4 = vld [vmem:[%s4946_s1 + $0x254] sm:$0xf]  ;;  %v4207_v30 = vpack.c.bf16 %v111_v12, %v104_v11  ;;  %v2651_v11 = vld [vmem:[%s4946_s1 + $0x1b8] sm:$0xf0] }
  0xeb   :  { %v4165_v48 = vadd.f32 %v991_v52, %v943_v5  ;;  %v896_v47 = vadd.f32 %v895_v33, %v847_v17  ;;  %v2670_v52 = vor.u32 %v3089_v62, %v2667_v16  ;;  %v110_v5 = vld [vmem:[%s4945_s0 + $0x290] sm:$0xff]  ;;  %v2734_v13 = vor.u32 %v3105_v4, %v2731_v61  ;;  %v3087_v17 = vld [vmem:[%s4946_s1 + $0x1c4] sm:$0xf]  ;;  %v2659_v33 = vld [vmem:[%s4946_s1 + $0x1c8] sm:$0xf0] }
  0xec   :  { %v4203_v62 = vpack.c.bf16 %v109_v0, %v102_v55  ;;  %v2662_v16 = vor.u32 %v3087_v17, %v2659_v33  ;;  %v4205_v23 = vpack.c.bf16 %v110_v5, %v103_v56  ;;  %4983 = vst [vmem:[#allocation17_spill] sm:$0xff] %v4207_v30  ;;  %v2723_v4 = vld [vmem:[%s4946_s1 + $0x248] sm:$0xf0]  ;;  %v3085_v5 = vld [vmem:[%s4946_s1 + $0x1b4] sm:$0xf] }
  0xed   :  { %1307 = vmatpush.bf16.msra.mxu2 %v2670_v52  ;;  %1356 = vmatpush.bf16.msra.mxu3 %v2734_v13  ;;  %v3103_v52 = vld [vmem:[%s4946_s1 + $0x244] sm:$0xf]  ;;  %v3101_v12 = vld [vmem:[%s4946_s1 + $0x234] sm:$0xf]  ;;  %v2563_v33 = vld [vmem:[%s4946_s1 + $0x108] sm:$0xf0] }
  0xee   :  { %4982 = vst [vmem:[#allocation16_spill] sm:$0xff] %v4205_v23  ;;  %v3063_v17 = vld [vmem:[%s4946_s1 + $0x104] sm:$0xf] }
  0xf0   :  { %v944_v36 = vpop.f32.mrf.mxu2  ;;  %v849_v37 = vpop.f32.mrf.mxu0 }
  0xf1   :  { %v945_v41 = vadd.f32 %v944_v36, %v896_v47  ;;  %v993_v31 = vpop.f32.mrf.mxu3  ;;  %v850_v55 = vadd.f32 %v849_v37, %v3917_v15  ;;  %v898_v0 = vpop.f32.mrf.mxu1  ;;  %1308 = vmatpush.bf16.msra.mxu2 %v2662_v16  ;;  %v2726_v47 = vor.u32 %v3103_v52, %v2723_v4  ;;  %v2499_v37 = vld [vmem:[%s4946_s1 + $0x88] sm:$0xf0]  ;;  %v2715_v36 = vld [vmem:[%s4946_s1 + $0x238] sm:$0xf0]  ;;  %v2566_v16 = vor.u32 %v3063_v17, %v2563_v33 }
  0xf2   :  { %v2718_v52 = vor.u32 %v3101_v12, %v2715_v36  ;;  %v2643_v4 = vld [vmem:[%s4946_s1 + $0x1a8] sm:$0xf0]  ;;  %v2635_v33 = vld [vmem:[%s4946_s1 + $0x198] sm:$0xf0] }
  0xf3   :  { %v4216_v61 = vadd.f32 %v993_v31, %v945_v41  ;;  %v899_v56 = vadd.f32 %v898_v0, %v850_v55  ;;  %1044 = vmatmul.bf16.gmra.mxu0 %v4203_v62  ;;  %v3047_v31 = vld [vmem:[%s4946_s1 + $0x84] sm:$0xf]  ;;  %v2654_v41 = vor.u32 %v3085_v5, %v2651_v11  ;;  %1357 = vmatpush.bf16.msra.mxu3 %v2726_v47 }
  0xf4   :  { %1093 = vmatmul.bf16.gmra.mxu1 %v4205_v23  ;;  %v2502_v13 = vor.u32 %v3047_v31, %v2499_v37  ;;  %v3099_v47 = vld [vmem:[%s4946_s1 + $0x224] sm:$0xf]  ;;  %v2707_v37 = vld [vmem:[%s4946_s1 + $0x228] sm:$0xf0] }
  0xf5   :  { %2828 = vmatmul.msk.bf16.gmra.mxu2 %vm790_vm0, %v4207_v30  ;;  %1263 = vmatpush.bf16.msra.mxu1 %v2566_v16  ;;  %v116_v16 = vld [vmem:[%s4945_s0 + $0x2c0] sm:$0xff] }
  0xf6   :  { %1191 = vmatmul.bf16.gmra.mxu3 %v3749_v35  ;;  %1309 = vmatpush.bf16.msra.mxu2 %v2654_v41  ;;  %v3083_v35 = vld [vmem:[%s4946_s1 + $0x1a4] sm:$0xf] }
  0xf7   :  { %1214 = vmatpush.bf16.msra.mxu0 %v2502_v13  ;;  %v2646_v0 = vor.u32 %v3083_v35, %v2643_v4  ;;  %1358 = vmatpush.bf16.msra.mxu3 %v2718_v52  ;;  %v2710_v13 = vor.u32 %v3099_v47, %v2707_v37  ;;  %v123_v35 = vld [vmem:[%s4945_s0 + $0x2f8] sm:$0xff]  ;;  %v117_v4 = vld [vmem:[%s4945_s0 + $0x2c8] sm:$0xff]  ;;  %v3079_v37 = vld [vmem:[%s4946_s1 + $0x184] sm:$0xf] }
  0xf8   :  { %v947_v55 = vpop.f32.mrf.mxu2  ;;  %v851_v11 = vpop.f32.mrf.mxu0 }
  0xf9   :  { %v948_v5 = vadd.f32 %v947_v55, %v899_v56  ;;  %v996_v31 = vpop.f32.mrf.mxu3  ;;  %v852_v41 = vadd.f32 %v851_v11, %v3917_v15  ;;  %v900_v12 = vpop.f32.mrf.mxu1  ;;  %v3081_v56 = vld [vmem:[%s4946_s1 + $0x194] sm:$0xf] }
  0xfa   :  { %1310 = vmatpush.bf16.msra.mxu2 %v2646_v0  ;;  %v2638_v52 = vor.u32 %v3081_v56, %v2635_v33  ;;  %v3097_v55 = vld [vmem:[%s4946_s1 + $0x214] sm:$0xf]  ;;  %v2699_v0 = vld [vmem:[%s4946_s1 + $0x218] sm:$0xf0]  ;;  %v4298_v56 = vpack.c.bf16 %v123_v35, %v116_v16 }
  0xfb   :  { %v4260_v17 = vadd.f32 %v996_v31, %v948_v5  ;;  %v901_v36 = vadd.f32 %v900_v12, %v852_v41  ;;  %v124_v5 = vld [vmem:[%s4945_s0 + $0x300] sm:$0xff]  ;;  %v118_v11 = vld [vmem:[%s4945_s0 + $0x2d0] sm:$0xff]  ;;  %v125_v31 = vld [vmem:[%s4945_s0 + $0x308] sm:$0xff]  ;;  %1359 = vmatpush.bf16.msra.mxu3 %v2710_v13  ;;  %v2702_v47 = vor.u32 %v3097_v55, %v2699_v0 }
  0xfc   :  { %v2627_v41 = vld [vmem:[%s4946_s1 + $0x188] sm:$0xf0]  ;;  %v4300_v60 = vpack.c.bf16 %v124_v5, %v117_v4  ;;  %v4302_v13 = vpack.c.bf16 %v125_v31, %v118_v11  ;;  %v3125_v5 = vld [vmem:[%s4946_s1 + $0x2f4] sm:$0xf] }
  0xfd   :  { %v2630_v33 = vor.u32 %v3079_v37, %v2627_v41  ;;  %v2691_v55 = vld [vmem:[%s4946_s1 + $0x208] sm:$0xf0] }
  0xfe   :  { %1311 = vmatpush.bf16.msra.mxu2 %v2638_v52  ;;  %4984 = vst [vmem:[#allocation18_spill] sm:$0xff] %v4300_v60  ;;  %v3095_v52 = vld [vmem:[%s4946_s1 + $0x204] sm:$0xf]  ;;  %v2819_v11 = vld [vmem:[%s4946_s1 + $0x308] sm:$0xf0] }
  0xff   :  { %4985 = vst [vmem:[#allocation19_spill] sm:$0xff] %v4302_v13  ;;  %1360 = vmatpush.bf16.msra.mxu3 %v2702_v47 }
 0x100   :  { %v949_v12 = vpop.f32.mrf.mxu2  ;;  %v854_v23 = vpop.f32.mrf.mxu0 }
 0x101   :  { %v950_v30 = vadd.f32 %v949_v12, %v901_v36  ;;  %v998_v28 = vpop.f32.mrf.mxu3  ;;  %v855_v0 = vadd.f32 %v854_v23, %v3917_v15  ;;  %v903_v16 = vpop.f32.mrf.mxu1  ;;  %v2694_v36 = vor.u32 %v3095_v52, %v2691_v55  ;;  %v3127_v23 = vld [vmem:[%s4946_s1 + $0x304] sm:$0xf] }
 0x102   :  { %1312 = vmatpush.bf16.msra.mxu2 %v2630_v33  ;;  %v2822_v31 = vor.u32 %v3127_v23, %v2819_v11 }
 0x103   :  { %v4311_v35 = vadd.f32 %v998_v28, %v950_v30  ;;  %v904_v4 = vadd.f32 %v903_v16, %v855_v0  ;;  %1049 = vmatmul.bf16.gmra.mxu0 %v4298_v56  ;;  %v2811_v28 = vld [vmem:[%s4946_s1 + $0x2f8] sm:$0xf0]  ;;  %1361 = vmatpush.bf16.msra.mxu3 %v2694_v36  ;;  %v130_v0 = vld [vmem:[%s4945_s0 + $0x330] sm:$0xff]  ;;  %v137_v16 = vld [vmem:[%s4945_s0 + $0x368] sm:$0xff] }
 0x104   :  { %1098 = vmatmul.bf16.gmra.mxu1 %v4300_v60  ;;  %v2814_v30 = vor.u32 %v3125_v5, %v2811_v28  ;;  %v131_v36 = vld [vmem:[%s4945_s0 + $0x338] sm:$0xff]  ;;  %v132_v5 = vld [vmem:[%s4945_s0 + $0x340] sm:$0xff]  ;;  %v4351_v23 = vpack.c.bf16 %v137_v16, %v130_v0  ;;  %v2803_v0 = vld [vmem:[%s4946_s1 + $0x2e8] sm:$0xf0] }
 0x105   :  { %2829 = vmatmul.msk.bf16.gmra.mxu2 %vm790_vm0, %v4302_v13  ;;  %1459 = vmatpush.bf16.msrb.mxu1 %v2822_v31  ;;  %v139_v28 = vld [vmem:[%s4945_s0 + $0x378] sm:$0xff] }
 0x106   :  { %1196 = vmatmul.bf16.gmra.mxu3 %v3827_v20  ;;  %1403 = vmatpush.bf16.msrb.mxu0 %v2814_v30  ;;  %4986 = vst [vmem:[#allocation20_spill] sm:$0xff] %v4351_v23 }
 0x108   :  { %v952_v47 = vpop.f32.mrf.mxu2  ;;  %v856_v41 = vpop.f32.mrf.mxu0 }
 0x109   :  { %v953_v37 = vadd.f32 %v952_v47, %v904_v4  ;;  %v1001_v12 = vpop.f32.mrf.mxu3  ;;  %v857_v33 = vadd.f32 %v856_v41, %v3917_v15  ;;  %v905_v20 = vpop.f32.mrf.mxu1  ;;  %v138_v4 = vld [vmem:[%s4945_s0 + $0x370] sm:$0xff]  ;;  %v4355_v41 = vpack.c.bf16 %v139_v28, %v132_v5 }
 0x10b   :  { %v4331_v52 = vadd.f32 %v1001_v12, %v953_v37  ;;  %v906_v55 = vadd.f32 %v905_v20, %v857_v33  ;;  %v4353_v37 = vpack.c.bf16 %v138_v4, %v131_v36  ;;  %4988 = vst [vmem:[#allocation22_spill] sm:$0xff] %v4355_v41 }
 0x10d   :  { %4987 = vst [vmem:[#allocation21_spill] sm:$0xff] %v4353_v37 }
 0x110   :  { %v954_v30 = vpop.f32.mrf.mxu2  ;;  %v859_v31 = vpop.f32.mrf.mxu0 }
 0x111   :  { %v955_v11 = vadd.f32 %v954_v30, %v906_v55  ;;  %v1003_v47 = vpop.f32.mrf.mxu3  ;;  %v860_v12 = vadd.f32 %v859_v31, %v3917_v15  ;;  %v908_v33 = vpop.f32.mrf.mxu1  ;;  %v3123_v55 = vld [vmem:[%s4946_s1 + $0x2e4] sm:$0xf] }
 0x112   :  { %v2806_v16 = vor.u32 %v3123_v55, %v2803_v0 }
 0x113   :  { %v4358_v20 = vadd.f32 %v1003_v47, %v955_v11  ;;  %v909_v13 = vadd.f32 %v908_v33, %v860_v12  ;;  %1054 = vmatmul.bf16.gmra.mxu0 %v4351_v23 }
 0x114   :  { %1103 = vmatmul.bf16.gmra.mxu1 %v4353_v37  ;;  %1404 = vmatpush.bf16.msrb.mxu0 %v2806_v16 }
 0x115   :  { %2830 = vmatmul.msk.bf16.gmra.mxu2 %vm790_vm0, %v4355_v41 }
 0x116   :  { %1201 = vmatmul.bf16.gmra.mxu3 %v3881_v57 }
 0x118   :  { %v957_v36 = vpop.f32.mrf.mxu2  ;;  %v861_v5 = vpop.f32.mrf.mxu0 }
 0x119   :  { %v958_v4 = vadd.f32 %v957_v36, %v909_v13  ;;  %v1006_v28 = vpop.f32.mrf.mxu3  ;;  %v862_v30 = vadd.f32 %v861_v5, %v3917_v15  ;;  %v910_v11 = vpop.f32.mrf.mxu1  ;;  %v3121_v15 = vld [vmem:[%s4946_s1 + $0x2d4] sm:$0xf]  ;;  %v2795_v13 = vld [vmem:[%s4946_s1 + $0x2d8] sm:$0xf0] }
 0x11b   :  { %v4372_v31 = vadd.f32 %v1006_v28, %v958_v4  ;;  %v911_v57 = vadd.f32 %v910_v11, %v862_v30 }
 0x120   :  { %v959_v47 = vpop.f32.mrf.mxu2  ;;  %v1020_v41 = vpop.f32.mrf.mxu0 }
 0x121   :  { %v960_v12 = vadd.f32 %v959_v47, %v911_v57  ;;  %v1008_v33 = vpop.f32.mrf.mxu3  ;;  %v1021_v37 = vadd.f32 %v1020_v41, %v3953_v46  ;;  %v1069_v60 = vpop.f32.mrf.mxu1  ;;  %v2798_v46 = vor.u32 %v3121_v15, %v2795_v13 }
 0x123   :  { %v4375_v23 = vadd.f32 %v1008_v33, %v960_v12  ;;  %v1070_v55 = vadd.f32 %v1069_v60, %v1021_v37  ;;  %1215 = vmatmul.bf16.vlgmr.msra.gmra.mxu0 %v3487_v49 }
 0x124   :  { %1264 = vmatmul.bf16.vlgmr.msra.gmra.mxu1 %v3489_v50  ;;  %1405 = vmatpush.bf16.msrb.mxu0 %v2798_v46 }
 0x125   :  { %1313 = vmatmul.bf16.vlgmr.msra.gmra.mxu2 %v3497_v53 }
 0x126   :  { %1362 = vmatmul.bf16.vlgmr.msra.gmra.mxu3 %v3928_v19 }
 0x128   :  { %v1118_v41 = vpop.f32.mrf.mxu2  ;;  %v1022_v37 = vpop.f32.mrf.mxu0 }
 0x129   :  { %v1119_v60 = vadd.f32 %v1118_v41, %v1070_v55  ;;  %v1023_v49 = vadd.f32 %v1022_v37, %v3980_v34  ;;  %v1071_v50 = vpop.f32.mrf.mxu1  ;;  %v3119_v34 = vld [vmem:[%s4946_s1 + $0x2c4] sm:$0xf] }
 0x12b   :  { %v1072_v0 = vadd.f32 %v1071_v50, %v1023_v49  ;;  %v1533_v16 = vmul.f32 0.01, %v1119_v60  ;;  %vm1501_vm1 = vcmp.gt.f32.partialorder %v1119_v60, 0.0 }
 0x12d   :  { %v1565_v11 = vsel %vm1501_vm1, %v1119_v60, %v1533_v16 }
 0x130   :  { %v1120_v53 = vpop.f32.mrf.mxu2  ;;  %v1025_v4 = vpop.f32.mrf.mxu0 }
 0x131   :  { %v1121_v36 = vadd.f32 %v1120_v53, %v1072_v0  ;;  %v1026_v5 = vadd.f32 %v1025_v4, %v4000_v6  ;;  %v1074_v28 = vpop.f32.mrf.mxu1  ;;  %v2787_v6 = vld [vmem:[%s4946_s1 + $0x2c8] sm:$0xf0]  ;;  %v2779_v0 = vld [vmem:[%s4946_s1 + $0x2b8] sm:$0xf0] }
 0x132   :  { %v2790_v12 = vor.u32 %v3119_v34, %v2787_v6 }
 0x133   :  { %vm1503_vm2 = vcmp.gt.f32.partialorder %v1121_v36, 0.0  ;;  %v1535_v30 = vmul.f32 0.01, %v1121_v36  ;;  %v1075_v19 = vadd.f32 %v1074_v28, %v1026_v5  ;;  %1220 = vmatmul.bf16.gmra.mxu0 %v3541_v7 }
 0x134   :  { %1269 = vmatmul.bf16.gmra.mxu1 %v3543_v8  ;;  %1406 = vmatpush.bf16.msrb.mxu0 %v2790_v12 }
 0x135   :  { %v1567_v57 = vsel %vm1503_vm2, %v1121_v36, %v1535_v30  ;;  %1318 = vmatmul.bf16.gmra.mxu2 %v3545_v9  ;;  %v4416_v30 = vpop.f32.mrf.mxu3 }
 0x136   :  { %v4398_v47 = vpack.c.bf16 %v1567_v57, %v1565_v11  ;;  %1367 = vmatmul.bf16.gmra.mxu3 %v3973_v14 }
 0x138   :  { %v1123_v7 = vpop.f32.mrf.mxu2  ;;  %v1027_v55 = vpop.f32.mrf.mxu0 }
 0x139   :  { %v1124_v33 = vadd.f32 %v1123_v7, %v1075_v19  ;;  %v1028_v8 = vadd.f32 %v1027_v55, %v4027_v51  ;;  %v1076_v9 = vpop.f32.mrf.mxu1  ;;  %v3117_v51 = vld [vmem:[%s4946_s1 + $0x2b4] sm:$0xf] }
 0x13a   :  { %v2782_v16 = vor.u32 %v3117_v51, %v2779_v0  ;;  %v2897_v0 = vld [vmem:[%s4948_s3 + $0x70] sm:$0xf] }
 0x13b   :  { %v1077_v15 = vadd.f32 %v1076_v9, %v1028_v8  ;;  %v1537_v46 = vmul.f32 0.01, %v1124_v33  ;;  %vm1505_vm3 = vcmp.gt.f32.partialorder %v1124_v33, 0.0 }
 0x13c   :  { %1407 = vmatpush.bf16.msrb.mxu0 %v2782_v16  ;;  %v2763_v16 = vld [vmem:[%s4946_s1 + $0x298] sm:$0xf0] }
 0x13d   :  { %v1569_v53 = vsel %vm1505_vm3, %v1124_v33, %v1537_v46  ;;  %v2771_v33 = vld [vmem:[%s4946_s1 + $0x2a8] sm:$0xf0] }
 0x140   :  { %v1125_v13 = vpop.f32.mrf.mxu2  ;;  %v1030_v60 = vpop.f32.mrf.mxu0 }
 0x141   :  { %v1126_v41 = vadd.f32 %v1125_v13, %v1077_v15  ;;  %v1031_v37 = vadd.f32 %v1030_v60, %v4047_v24  ;;  %v1079_v49 = vpop.f32.mrf.mxu1 }
 0x143   :  { %vm1507_vm4 = vcmp.gt.f32.partialorder %v1126_v41, 0.0  ;;  %v1539_v50 = vmul.f32 0.01, %v1126_v41  ;;  %v1080_v14 = vadd.f32 %v1079_v49, %v1031_v37  ;;  %1225 = vmatmul.bf16.gmra.mxu0 %v3589_v25 }
 0x144   :  { %1274 = vmatmul.bf16.gmra.mxu1 %v3591_v26 }
 0x145   :  { %1323 = vmatmul.bf16.gmra.mxu2 %v3593_v27  ;;  %v1571_v24 = vsel %vm1507_vm4, %v1126_v41, %v1539_v50 }
 0x146   :  { %1372 = vmatmul.bf16.gmra.mxu3 %v4020_v18  ;;  %v4413_v36 = vpack.c.bf16 %v1571_v24, %v1569_v53 }
 0x148   :  { %v1128_v25 = vpop.f32.mrf.mxu2  ;;  %v1032_v4 = vpop.f32.mrf.mxu0 }
 0x149   :  { %v1129_v26 = vadd.f32 %v1128_v25, %v1080_v14  ;;  %v1033_v27 = vadd.f32 %v1032_v4, %v4074_v10  ;;  %v1081_v5 = vpop.f32.mrf.mxu1  ;;  %v3115_v10 = vld [vmem:[%s4946_s1 + $0x2a4] sm:$0xf] }
 0x14a   :  { %v2774_v8 = vor.u32 %v3115_v10, %v2771_v33  ;;  %v2873_v10 = vld [vmem:[%s4948_s3 + $0x40] sm:$0xf] }
 0x14b   :  { %v1082_v28 = vadd.f32 %v1081_v5, %v1033_v27  ;;  %v1541_v11 = vmul.f32 0.01, %v1129_v26  ;;  %vm1509_vm5 = vcmp.gt.f32.partialorder %v1129_v26, 0.0 }
 0x14c   :  { %1408 = vmatpush.bf16.msrb.mxu0 %v2774_v8 }
 0x14d   :  { %v1573_v55 = vsel %vm1509_vm5, %v1129_v26, %v1541_v11 }
 0x150   :  { %v1130_v19 = vpop.f32.mrf.mxu2  ;;  %v1035_v34 = vpop.f32.mrf.mxu0 }
 0x151   :  { %v1131_v57 = vadd.f32 %v1130_v19, %v1082_v28  ;;  %v1036_v18 = vadd.f32 %v1035_v34, %v4094_v42  ;;  %v1084_v6 = vpop.f32.mrf.mxu1  ;;  %v2881_v34 = vld [vmem:[%s4948_s3 + $0x50] sm:$0xf] }
 0x153   :  { %vm1511_vm6 = vcmp.gt.f32.partialorder %v1131_v57, 0.0  ;;  %v1543_v12 = vmul.f32 0.01, %v1131_v57  ;;  %v1085_v7 = vadd.f32 %v1084_v6, %v1036_v18  ;;  %1230 = vmatmul.bf16.gmra.mxu0 %v3637_v43  ;;  %v3140_v6 = vld [vmem:[%s4948_s3 + $0x54] sm:$0xf0] }
 0x154   :  { %1279 = vmatmul.bf16.gmra.mxu1 %v3639_v44 }
 0x155   :  { %1328 = vmatmul.bf16.gmra.mxu2 %v3641_v45  ;;  %v1575_v42 = vsel %vm1511_vm6, %v1131_v57, %v1543_v12  ;;  %v4431_v45 = vpop.f32.mrf.mxu3  ;;  %v2882_v12 = vor.u32 %v3140_v6, %v2881_v34 }
 0x156   :  { %1377 = vmatmul.bf16.gmra.mxu3 %v4067_v54  ;;  %v4429_v9 = vpack.c.bf16 %v1575_v42, %v1573_v55 }
 0x158   :  { %v1133_v43 = vpop.f32.mrf.mxu2  ;;  %v1037_v15 = vpop.f32.mrf.mxu0 }
 0x159   :  { %v1134_v44 = vadd.f32 %v1133_v43, %v1085_v7  ;;  %v1038_v13 = vadd.f32 %v1037_v15, %v4121_v63  ;;  %v1086_v46 = vpop.f32.mrf.mxu1  ;;  %v3144_v63 = vld [vmem:[%s4948_s3 + $0x74] sm:$0xf0] }
 0x15a   :  { %v2898_v25 = vor.u32 %v3144_v63, %v2897_v0 }
 0x15b   :  { %v1087_v41 = vadd.f32 %v1086_v46, %v1038_v13  ;;  %v1545_v37 = vmul.f32 0.01, %v1134_v44  ;;  %vm1513_vm7 = vcmp.gt.f32.partialorder %v1134_v44, 0.0  ;;  %v2865_v46 = vld [vmem:[%s4948_s3 + $0x30] sm:$0xf] }
 0x15c   :  { %1811 = vmatpush.bf16.msrb.mxu2 %v2898_v25  ;;  %v2849_v25 = vld [vmem:[%s4948_s3 + $0x10] sm:$0xf] }
 0x15d   :  { %v4438_v53 = vpop.f32.mrf.mxu3  ;;  %v1577_v26 = vsel %vm1513_vm7, %v1134_v44, %v1545_v37  ;;  %v2755_v37 = vld [vmem:[%s4946_s1 + $0x288] sm:$0xf0] }
 0x160   :  { %v1135_v60 = vpop.f32.mrf.mxu2  ;;  %v1040_v50 = vpop.f32.mrf.mxu0 }
 0x161   :  { %v1136_v49 = vadd.f32 %v1135_v60, %v1087_v41  ;;  %v1041_v54 = vadd.f32 %v1040_v50, %v4165_v48  ;;  %v1089_v14 = vpop.f32.mrf.mxu1  ;;  %v3113_v48 = vld [vmem:[%s4946_s1 + $0x294] sm:$0xf]  ;;  %v3136_v60 = vld [vmem:[%s4948_s3 + $0x34] sm:$0xf0] }
 0x163   :  { %vm1515_vm8 = vcmp.gt.f32.partialorder %v1136_v49, 0.0  ;;  %v1547_v51 = vmul.f32 0.01, %v1136_v49  ;;  %v1090_v24 = vadd.f32 %v1089_v14, %v1041_v54  ;;  %1235 = vmatmul.bf16.gmra.mxu0 %v3685_v1  ;;  %v2766_v1 = vor.u32 %v3113_v48, %v2763_v16 }
 0x164   :  { %1284 = vmatmul.bf16.gmra.mxu1 %v3687_v2  ;;  %v2889_v2 = vld [vmem:[%s4948_s3 + $0x60] sm:$0xf] }
 0x165   :  { %1333 = vmatmul.bf16.gmra.mxu2 %v3689_v3  ;;  %v1579_v4 = vsel %vm1515_vm8, %v1136_v49, %v1547_v51  ;;  %v3142_v3 = vld [vmem:[%s4948_s3 + $0x64] sm:$0xf0]  ;;  %1409 = vmatpush.bf16.msrb.mxu0 %v2766_v1  ;;  %v4468_v7 = vpop.f32.mrf.mxu3  ;;  %v2866_v49 = vor.u32 %v3136_v60, %v2865_v46  ;;  %v3160_v60 = vld [vmem:[%s4948_s3 + $0xf4] sm:$0xf0] }
 0x166   :  { %1382 = vmatmul.bf16.gmra.mxu3 %v4114_v32  ;;  %v4453_v27 = vpack.c.bf16 %v1579_v4, %v1577_v26  ;;  %v2890_v28 = vor.u32 %v3142_v3, %v2889_v2  ;;  %v3132_v4 = vld [vmem:[%s4948_s3 + $0x14] sm:$0xf0]  ;;  %v2841_v2 = vld [vmem:[%s4948_s3] sm:$0xf] }
 0x167   :  { %v2850_v1 = vor.u32 %v3132_v4, %v2849_v25  ;;  %v3159_v25 = vld [vmem:[%s4948_s3 + $0xf4] sm:$0xf]  ;;  %v2963_v4 = vld [vmem:[%s4948_s3 + $0xf8] sm:$0xf0] }
 0x168   :  { %v1138_v5 = vpop.f32.mrf.mxu2  ;;  %v1042_v11 = vpop.f32.mrf.mxu0  ;;  %1812 = vmatpush.bf16.msrb.mxu2 %v2890_v28 }
 0x169   :  { %v1139_v19 = vadd.f32 %v1138_v5, %v1090_v24  ;;  %v1043_v57 = vadd.f32 %v1042_v11, %v4216_v61  ;;  %v1091_v32 = vpop.f32.mrf.mxu1  ;;  %v3138_v61 = vld [vmem:[%s4948_s3 + $0x44] sm:$0xf0] }
 0x16a   :  { %v2874_v55 = vor.u32 %v3138_v61, %v2873_v10 }
 0x16b   :  { %v1092_v18 = vadd.f32 %v1091_v32, %v1043_v57  ;;  %v1549_v42 = vmul.f32 0.01, %v1139_v19  ;;  %vm1517_vm9 = vcmp.gt.f32.partialorder %v1139_v19, 0.0 }
 0x16c   :  { %1813 = vmatpush.bf16.msrb.mxu2 %v2882_v12 }
 0x16d   :  { %v1581_v50 = vsel %vm1517_vm9, %v1139_v19, %v1549_v42  ;;  %v4501_v51 = vpop.f32.mrf.mxu3 }
 0x170   :  { %v1140_v33 = vpop.f32.mrf.mxu2  ;;  %v1045_v43 = vpop.f32.mrf.mxu0  ;;  %1814 = vmatpush.bf16.msrb.mxu2 %v2874_v55 }
 0x171   :  { %v1141_v8 = vadd.f32 %v1140_v33, %v1092_v18  ;;  %v1046_v44 = vadd.f32 %v1045_v43, %v4260_v17  ;;  %v1094_v15 = vpop.f32.mrf.mxu1  ;;  %v3111_v17 = vld [vmem:[%s4946_s1 + $0x284] sm:$0xf] }
 0x173   :  { %vm1519_vm10 = vcmp.gt.f32.partialorder %v1141_v8, 0.0  ;;  %v1551_v13 = vmul.f32 0.01, %v1141_v8  ;;  %v1095_v41 = vadd.f32 %v1094_v15, %v1046_v44  ;;  %1240 = vmatmul.bf16.gmra.mxu0 %v3757_v38  ;;  %v2758_v38 = vor.u32 %v3111_v17, %v2755_v37  ;;  %v4989_v17 = vld [vmem:[#allocation5_spill] sm:$0xff] }
 0x174   :  { %1289 = vmatmul.bf16.gmra.mxu1 %v3759_v39  ;;  %1815 = vmatpush.bf16.msrb.mxu2 %v2866_v49  ;;  %v2857_v39 = vld [vmem:[%s4948_s3 + $0x20] sm:$0xf] }
 0x175   :  { %1338 = vmatmul.bf16.gmra.mxu2 %v3761_v40  ;;  %v1583_v54 = vsel %vm1519_vm10, %v1141_v8, %v1551_v13  ;;  %v3134_v40 = vld [vmem:[%s4948_s3 + $0x24] sm:$0xf0]  ;;  %1410 = vmatpush.bf16.msrb.mxu0 %v2758_v38  ;;  %v4516_v57 = vpop.f32.mrf.mxu3 }
 0x176   :  { %1387 = vmatmul.bf16.gmra.mxu3 %v4203_v62  ;;  %v4493_v14 = vpack.c.bf16 %v1583_v54, %v1581_v50  ;;  %v2858_v24 = vor.u32 %v3134_v40, %v2857_v39  ;;  %v4990_v54 = vld [vmem:[#allocation20_spill] sm:$0xff] }
 0x178   :  { %v1143_v0 = vpop.f32.mrf.mxu2  ;;  %v1047_v48 = vpop.f32.mrf.mxu0  ;;  %1816 = vmatpush.bf16.msrb.mxu2 %v2858_v24 }
 0x179   :  { %v1144_v63 = vadd.f32 %v1143_v0, %v1095_v41  ;;  %v1048_v62 = vadd.f32 %v1047_v48, %v4311_v35  ;;  %v1096_v16 = vpop.f32.mrf.mxu1  ;;  %v3130_v35 = vld [vmem:[%s4948_s3 + $0x4] sm:$0xf0]  ;;  %v3181_v0 = vld [vmem:[%s4947_s2] sm:$0x3] }
 0x17a   :  { %v2842_v5 = vor.u32 %v3130_v35, %v2841_v2 }
 0x17b   :  { %v1097_v26 = vadd.f32 %v1096_v16, %v1048_v62  ;;  %v1553_v28 = vmul.f32 0.01, %v1144_v63  ;;  %vm1521_vm11 = vcmp.gt.f32.partialorder %v1144_v63, 0.0  ;;  %v3143_v62 = vld [vmem:[%s4948_s3 + $0x74] sm:$0xf] }
 0x17c   :  { %1817 = vmatpush.bf16.msrb.mxu2 %v2850_v1  ;;  %v2899_v16 = vld [vmem:[%s4948_s3 + $0x78] sm:$0xf0]  ;;  %v2966_v1 = vor.u32 %v3159_v25, %v2963_v4 }
 0x17d   :  { %v1585_v12 = vsel %vm1521_vm11, %v1144_v63, %v1553_v28  ;;  %v4526_v43 = vpop.f32.mrf.mxu3 }
 0x17e   :  { %1958 = vmatpush.bf16.msra.mxu1 %v2966_v1  ;;  %v3139_v1 = vld [vmem:[%s4948_s3 + $0x54] sm:$0xf] }
 0x180   :  { %v1145_v3 = vpop.f32.mrf.mxu2  ;;  %v1050_v11 = vpop.f32.mrf.mxu0  ;;  %1818 = vmatpush.bf16.msrb.mxu2 %v2842_v5 }
 0x181   :  { %v1146_v19 = vadd.f32 %v1145_v3, %v1097_v26  ;;  %v1051_v32 = vadd.f32 %v1050_v11, %v4331_v52  ;;  %v1099_v34 = vpop.f32.mrf.mxu1  ;;  %v2902_v26 = vor.u32 %v3143_v62, %v2899_v16 }
 0x183   :  { %vm1523_vm12 = vcmp.gt.f32.partialorder %v1146_v19, 0.0  ;;  %v1555_v18 = vmul.f32 0.01, %v1146_v19  ;;  %v1100_v6 = vadd.f32 %v1099_v34, %v1051_v32  ;;  %1245 = vmatmul.bf16.gmra.mxu0 %v3829_v21  ;;  %v4991_v34 = vld [vmem:[#allocation6_spill] sm:$0xff] }
 0x184   :  { %1294 = vmatmul.bf16.gmra.mxu1 %v3831_v22  ;;  %1909 = vmatpush.bf16.msra.mxu0 %v2902_v26 }
 0x185   :  { %1343 = vmatmul.bf16.gmra.mxu2 %v3839_v29  ;;  %v1587_v10 = vsel %vm1523_vm12, %v1146_v19, %v1555_v18  ;;  %v4538_v50 = vpop.f32.mrf.mxu3  ;;  %v2953_v18 = vld [vmem:[%s4948_s3 + $0xe0] sm:$0xf] }
 0x186   :  { %1392 = vmatmul.bf16.gmra.mxu3 %v4298_v56  ;;  %v4523_v61 = vpack.c.bf16 %v1587_v10, %v1585_v12 }
 0x188   :  { %v1148_v33 = vpop.f32.mrf.mxu2  ;;  %v1052_v52 = vpop.f32.mrf.mxu0 }
 0x189   :  { %v1149_v55 = vadd.f32 %v1148_v33, %v1100_v6  ;;  %v1053_v42 = vadd.f32 %v1052_v52, %v4358_v20  ;;  %v1101_v8 = vpop.f32.mrf.mxu1  ;;  %v2961_v20 = vld [vmem:[%s4948_s3 + $0xf0] sm:$0xf] }
 0x18a   :  { %v2962_v37 = vor.u32 %v3160_v60, %v2961_v20  ;;  %v4992_v6 = vld [vmem:[#allocation7_spill] sm:$0xff] }
 0x18b   :  { %v1102_v44 = vadd.f32 %v1101_v8, %v1053_v42  ;;  %v1557_v15 = vmul.f32 0.01, %v1149_v55  ;;  %vm1525_vm13 = vcmp.gt.f32.partialorder %v1149_v55, 0.0 }
 0x18c   :  { %1860 = vmatpush.bf16.msrb.mxu3 %v2962_v37 }
 0x18d   :  { %v4593_v60 = vpop.f32.mrf.mxu3 }
 0x190   :  { %v1150_v21 = vpop.f32.mrf.mxu2  ;;  %v1055_v13 = vpop.f32.mrf.mxu0 }
 0x191   :  { %v1151_v22 = vadd.f32 %v1150_v21, %v1102_v44  ;;  %v1056_v29 = vadd.f32 %v1055_v13, %v4372_v31  ;;  %v1104_v46 = vpop.f32.mrf.mxu1  ;;  %v1589_v31 = vsel %vm1525_vm13, %v1149_v55, %v1557_v15  ;;  %v3141_v13 = vld [vmem:[%s4948_s3 + $0x64] sm:$0xf] }
 0x193   :  { %vm1527_vm14 = vcmp.gt.f32.partialorder %v1151_v22, 0.0  ;;  %v1559_v56 = vmul.f32 0.01, %v1151_v22  ;;  %v1105_v41 = vadd.f32 %v1104_v46, %v1056_v29  ;;  %1250 = vmatmul.bf16.gmra.mxu0 %v3883_v58  ;;  %v2891_v29 = vld [vmem:[%s4948_s3 + $0x68] sm:$0xf0] }
 0x194   :  { %1299 = vmatmul.bf16.gmra.mxu1 %v3885_v59  ;;  %v4546_v59 = vperm.slane %v3181_v0, 1  ;;  %v3157_v46 = vld [vmem:[%s4948_s3 + $0xe4] sm:$0xf] }
 0x195   :  { %1348 = vmatmul.bf16.gmra.mxu2 %v4989_v17  ;;  %v1591_v49 = vsel %vm1527_vm14, %v1151_v22, %v1559_v56  ;;  %v2955_v56 = vld [vmem:[%s4948_s3 + $0xe8] sm:$0xf0]  ;;  %v4994_v0 = vld [vmem:[#allocation9_spill] sm:$0xff]  ;;  %v4609_v62 = vpop.f32.mrf.mxu3 }
 0x196   :  { %1397 = vmatmul.bf16.gmra.mxu3 %v4990_v54  ;;  %v4541_v58 = vpack.c.bf16 %v1591_v49, %v1589_v31  ;;  %v1170_v52 = vadd.f32 %v4431_v45, %v4546_v59  ;;  %v2894_v45 = vor.u32 %v3141_v13, %v2891_v29  ;;  %v2958_v20 = vor.u32 %v3157_v46, %v2955_v56  ;;  %v3137_v46 = vld [vmem:[%s4948_s3 + $0x44] sm:$0xf] }
 0x197   :  { %v3153_v56 = vld [vmem:[%s4948_s3 + $0xc4] sm:$0xf] }
 0x198   :  { %v1153_v38 = vpop.f32.mrf.mxu2  ;;  %v1057_v40 = vpop.f32.mrf.mxu0  ;;  %1910 = vmatpush.bf16.msra.mxu0 %v2894_v45  ;;  %1959 = vmatpush.bf16.msra.mxu1 %v2958_v20  ;;  %v2875_v45 = vld [vmem:[%s4948_s3 + $0x48] sm:$0xf0] }
 0x199   :  { %v1154_v39 = vadd.f32 %v1153_v38, %v1105_v41  ;;  %v1058_v24 = vadd.f32 %v1057_v40, %v4375_v23  ;;  %v1106_v63 = vpop.f32.mrf.mxu1  ;;  %v1168_v23 = vadd.f32 %v4416_v30, %v4546_v59  ;;  %v3158_v30 = vld [vmem:[%s4948_s3 + $0xe4] sm:$0xf0]  ;;  %v1173_v41 = vadd.f32 %v4438_v53, %v4546_v59  ;;  %v2945_v40 = vld [vmem:[%s4948_s3 + $0xd0] sm:$0xf]  ;;  %v3156_v53 = vld [vmem:[%s4948_s3 + $0xd4] sm:$0xf0] }
 0x19a   :  { %v2954_v12 = vor.u32 %v3158_v30, %v2953_v18  ;;  %v2939_v20 = vld [vmem:[%s4948_s3 + $0xc8] sm:$0xf0] }
 0x19b   :  { %v1107_v48 = vadd.f32 %v1106_v63, %v1058_v24  ;;  %v1561_v35 = vmul.f32 0.01, %v1154_v39  ;;  %vm1529_vm15 = vcmp.gt.f32.partialorder %v1154_v39, 0.0  ;;  %v2946_v24 = vor.u32 %v3156_v53, %v2945_v40 }
 0x19c   :  { %1861 = vmatpush.bf16.msrb.mxu3 %v2954_v12  ;;  %v1175_v63 = vadd.f32 %v4468_v7, %v4546_v59  ;;  %v3155_v7 = vld [vmem:[%s4948_s3 + $0xd4] sm:$0xf]  ;;  %v4995_v12 = vld [vmem:[#allocation10_spill] sm:$0xff] }
 0x19d   :  { %v1593_v10 = vsel %vm1529_vm15, %v1154_v39, %v1561_v35  ;;  %v4993_v39 = vld [vmem:[#allocation8_spill] sm:$0xff]  ;;  %v4629_v30 = vpop.f32.mrf.mxu3 }
 0x1a0   :  { %v1155_v2 = vpop.f32.mrf.mxu2  ;;  %v1216_v5 = vpop.f32.mrf.mxu0  ;;  %1862 = vmatpush.bf16.msrb.mxu3 %v2946_v24  ;;  %v2929_v24 = vld [vmem:[%s4948_s3 + $0xb0] sm:$0xf] }
 0x1a1   :  { %v1156_v3 = vadd.f32 %v1155_v2, %v1107_v48  ;;  %v1217_v28 = vadd.f32 %v1216_v5, %v1168_v23  ;;  %v1265_v19 = vpop.f32.mrf.mxu1  ;;  %v2883_v2 = vld [vmem:[%s4948_s3 + $0x58] sm:$0xf0]  ;;  %v1178_v5 = vadd.f32 %v4501_v51, %v4546_v59  ;;  %v3154_v51 = vld [vmem:[%s4948_s3 + $0xc4] sm:$0xf0] }
 0x1a2   :  { %v2886_v35 = vor.u32 %v3139_v1, %v2883_v2 }
 0x1a3   :  { %vm1531_vm1 = vcmp.gt.f32.partialorder %v1156_v3, 0.0  ;;  %v1563_v11 = vmul.f32 0.01, %v1156_v3  ;;  %v1266_v32 = vadd.f32 %v1265_v19, %v1217_v28  ;;  %1411 = vmatmul.bf16.vlgmr.msrb.gmra.mxu0 %v4991_v34 }
 0x1a4   :  { %2831 = vmatmul.msk.bf16.vlgmr.msrb.gmra.mxu1 %vm790_vm0, %v4992_v6  ;;  %1911 = vmatpush.bf16.msra.mxu0 %v2886_v35 }
 0x1a5   :  { %1819 = vmatmul.bf16.vlgmr.msrb.gmra.mxu2 %v4398_v47  ;;  %v1595_v33 = vsel %vm1531_vm1, %v1156_v3, %v1563_v11  ;;  %v2947_v3 = vld [vmem:[%s4948_s3 + $0xd8] sm:$0xf0] }
 0x1a6   :  { %v4573_v55 = vpack.c.bf16 %v1595_v33, %v1593_v10  ;;  %v2950_v28 = vor.u32 %v3155_v7, %v2947_v3  ;;  %v2937_v10 = vld [vmem:[%s4948_s3 + $0xc0] sm:$0xf]  ;;  %v4996_v33 = vld [vmem:[#allocation11_spill] sm:$0xff] }
 0x1a7   :  { %v3135_v3 = vld [vmem:[%s4948_s3 + $0x34] sm:$0xf] }
 0x1a8   :  { %v1314_v42 = vpop.f32.mrf.mxu2  ;;  %v1218_v44 = vpop.f32.mrf.mxu0  ;;  %1960 = vmatpush.bf16.msra.mxu1 %v2950_v28  ;;  %v3151_v28 = vld [vmem:[%s4948_s3 + $0xb4] sm:$0xf] }
 0x1a9   :  { %v4577_v8 = vadd.f32 %v1314_v42, %v1266_v32  ;;  %v1219_v21 = vadd.f32 %v1218_v44, %v1170_v52  ;;  %v1267_v15 = vpop.f32.mrf.mxu1  ;;  %v2938_v52 = vor.u32 %v3154_v51, %v2937_v10  ;;  %v1180_v42 = vadd.f32 %v4516_v57, %v4546_v59  ;;  %v4654_v57 = vpop.f32.mrf.mxu3 }
 0x1ab   :  { %v1268_v22 = vadd.f32 %v1267_v15, %v1219_v21  ;;  %1863 = vmatpush.bf16.msrb.mxu3 %v2938_v52 }
 0x1b0   :  { %v1316_v17 = vpop.f32.mrf.mxu2  ;;  %v1221_v31 = vpop.f32.mrf.mxu0 }
 0x1b1   :  { %v4595_v37 = vadd.f32 %v1316_v17, %v1268_v22  ;;  %v1222_v49 = vadd.f32 %v1221_v31, %v1173_v41  ;;  %v1270_v54 = vpop.f32.mrf.mxu1  ;;  %v2878_v41 = vor.u32 %v3137_v46, %v2875_v45  ;;  %v1183_v17 = vadd.f32 %v4526_v43, %v4546_v59  ;;  %v3152_v43 = vld [vmem:[%s4948_s3 + $0xb4] sm:$0xf0]  ;;  %v3133_v45 = vld [vmem:[%s4948_s3 + $0x24] sm:$0xf] }
 0x1b2   :  { %v2942_v31 = vor.u32 %v3153_v56, %v2939_v20  ;;  %v2859_v56 = vld [vmem:[%s4948_s3 + $0x28] sm:$0xf0] }
 0x1b3   :  { %v1271_v38 = vadd.f32 %v1270_v54, %v1222_v49  ;;  %1416 = vmatmul.bf16.gmra.mxu0 %v4993_v39  ;;  %v2862_v20 = vor.u32 %v3133_v45, %v2859_v56 }
 0x1b4   :  { %2832 = vmatmul.msk.bf16.gmra.mxu1 %vm790_vm0, %v4994_v0  ;;  %1912 = vmatpush.bf16.msra.mxu0 %v2878_v41  ;;  %v4997_v0 = vld [vmem:[#allocation12_spill] sm:$0xff]  ;;  %v3149_v41 = vld [vmem:[%s4948_s3 + $0xa4] sm:$0xf] }
 0x1b5   :  { %1824 = vmatmul.bf16.gmra.mxu2 %v4413_v36  ;;  %1961 = vmatpush.bf16.msra.mxu1 %v2942_v31  ;;  %v1193_v31 = vadd.f32 %v4629_v30, %v4546_v59  ;;  %v5002_v30 = vld [vmem:[#allocation17_spill] sm:$0xff] }
 0x1b8   :  { %v1319_v48 = vpop.f32.mrf.mxu2  ;;  %v1223_v25 = vpop.f32.mrf.mxu0 }
 0x1b9   :  { %v4611_v16 = vadd.f32 %v1319_v48, %v1271_v38  ;;  %v1224_v26 = vadd.f32 %v1223_v25, %v1175_v63  ;;  %v1272_v4 = vpop.f32.mrf.mxu1  ;;  %v4998_v63 = vld [vmem:[#allocation13_spill] sm:$0xff]  ;;  %v2930_v48 = vor.u32 %v3152_v43, %v2929_v24  ;;  %v4673_v25 = vpop.f32.mrf.mxu3  ;;  %v2913_v24 = vld [vmem:[%s4948_s3 + $0x90] sm:$0xf]  ;;  %v3148_v43 = vld [vmem:[%s4948_s3 + $0x94] sm:$0xf0] }
 0x1bb   :  { %v1273_v23 = vadd.f32 %v1272_v4, %v1224_v26  ;;  %1864 = vmatpush.bf16.msrb.mxu3 %v2930_v48  ;;  %v1185_v26 = vadd.f32 %v4538_v50, %v4546_v59  ;;  %v2914_v48 = vor.u32 %v3148_v43, %v2913_v24  ;;  %v5005_v24 = vld [vmem:[#allocation21_spill] sm:$0xff]  ;;  %v5006_v43 = vld [vmem:[#allocation22_spill] sm:$0xff] }
 0x1c0   :  { %v1321_v19 = vpop.f32.mrf.mxu2  ;;  %v1226_v32 = vpop.f32.mrf.mxu0 }
 0x1c1   :  { %v4627_v11 = vadd.f32 %v1321_v19, %v1273_v23  ;;  %v1227_v34 = vadd.f32 %v1226_v32, %v1178_v5  ;;  %v1275_v18 = vpop.f32.mrf.mxu1  ;;  %v2867_v5 = vld [vmem:[%s4948_s3 + $0x38] sm:$0xf0]  ;;  %v1188_v32 = vadd.f32 %v4593_v60, %v4546_v59  ;;  %v3150_v60 = vld [vmem:[%s4948_s3 + $0xa4] sm:$0xf0] }
 0x1c2   :  { %v2870_v50 = vor.u32 %v3135_v3, %v2867_v5  ;;  %v2931_v19 = vld [vmem:[%s4948_s3 + $0xb8] sm:$0xf0] }
 0x1c3   :  { %v1276_v6 = vadd.f32 %v1275_v18, %v1227_v34  ;;  %1421 = vmatmul.bf16.gmra.mxu0 %v4995_v12  ;;  %v2934_v34 = vor.u32 %v3151_v28, %v2931_v19  ;;  %v2915_v3 = vld [vmem:[%s4948_s3 + $0x98] sm:$0xf0]  ;;  %v1198_v28 = vadd.f32 %v4673_v25, %v4546_v59  ;;  %v3129_v19 = vld [vmem:[%s4948_s3 + $0x4] sm:$0xf]  ;;  %v5004_v25 = vld [vmem:[#allocation19_spill] sm:$0xff] }
 0x1c4   :  { %2833 = vmatmul.msk.bf16.gmra.mxu1 %vm790_vm0, %v4996_v33  ;;  %1913 = vmatpush.bf16.msra.mxu0 %v2870_v50 }
 0x1c5   :  { %1829 = vmatmul.bf16.gmra.mxu2 %v4429_v9  ;;  %1962 = vmatpush.bf16.msra.mxu1 %v2934_v34 }
 0x1c8   :  { %v1324_v44 = vpop.f32.mrf.mxu2  ;;  %v1228_v15 = vpop.f32.mrf.mxu0  ;;  %1914 = vmatpush.bf16.msra.mxu0 %v2862_v20  ;;  %v3145_v20 = vld [vmem:[%s4948_s3 + $0x84] sm:$0xf] }
 0x1c9   :  { %v4643_v21 = vadd.f32 %v1324_v44, %v1276_v6  ;;  %v1229_v22 = vadd.f32 %v1228_v15, %v1180_v42  ;;  %v1277_v13 = vpop.f32.mrf.mxu1  ;;  %v4693_v6 = vpop.f32.mrf.mxu3  ;;  %v4999_v42 = vld [vmem:[#allocation14_spill] sm:$0xff]  ;;  %v2921_v44 = vld [vmem:[%s4948_s3 + $0xa0] sm:$0xf]  ;;  %v5000_v15 = vld [vmem:[#allocation15_spill] sm:$0xff] }
 0x1cb   :  { %v1278_v29 = vadd.f32 %v1277_v13, %v1229_v22  ;;  %v2922_v22 = vor.u32 %v3150_v60, %v2921_v44  ;;  %v2905_v44 = vld [vmem:[%s4948_s3 + $0x80] sm:$0xf]  ;;  %v3146_v60 = vld [vmem:[%s4948_s3 + $0x84] sm:$0xf0] }
 0x1cc   :  { %v2906_v45 = vor.u32 %v3146_v60, %v2905_v44 }
 0x1cd   :  { %1865 = vmatpush.bf16.msrb.mxu3 %v2922_v22 }
 0x1d0   :  { %v1326_v49 = vpop.f32.mrf.mxu2  ;;  %v1231_v38 = vpop.f32.mrf.mxu0 }
 0x1d1   :  { %v4661_v54 = vadd.f32 %v1326_v49, %v1278_v29  ;;  %v1232_v39 = vadd.f32 %v1231_v38, %v1183_v17  ;;  %v1280_v40 = vpop.f32.mrf.mxu1  ;;  %v1202_v46 = vpop.f32.mrf.mxu3  ;;  %v2923_v17 = vld [vmem:[%s4948_s3 + $0xa8] sm:$0xf0]  ;;  %1866 = vmatpush.bf16.msrb.mxu3 %v2914_v48 }
 0x1d2   :  { %v2926_v49 = vor.u32 %v3149_v41, %v2923_v17  ;;  %v1203_v41 = vadd.f32 %v1202_v46, %v4546_v59  ;;  %v2907_v17 = vld [vmem:[%s4948_s3 + $0x88] sm:$0xf0] }
 0x1d3   :  { %v1281_v53 = vadd.f32 %v1280_v40, %v1232_v39  ;;  %1426 = vmatmul.bf16.gmra.mxu0 %v4997_v0  ;;  %v5001_v0 = vld [vmem:[#allocation16_spill] sm:$0xff] }
 0x1d4   :  { %2834 = vmatmul.msk.bf16.gmra.mxu1 %vm790_vm0, %v4998_v63 }
 0x1d5   :  { %1834 = vmatmul.bf16.gmra.mxu2 %v4453_v27  ;;  %1963 = vmatpush.bf16.msra.mxu1 %v2926_v49 }
 0x1d6   :  { %1867 = vmatpush.bf16.msrb.mxu3 %v2906_v45 }
 0x1d8   :  { %v1329_v4 = vpop.f32.mrf.mxu2  ;;  %v1233_v1 = vpop.f32.mrf.mxu0 }
 0x1d9   :  { %v4677_v23 = vadd.f32 %v1329_v4, %v1281_v53  ;;  %v1234_v2 = vadd.f32 %v1233_v1, %v1185_v26  ;;  %v1282_v7 = vpop.f32.mrf.mxu1  ;;  %v4736_v63 = vpop.f32.mrf.mxu3  ;;  %v3131_v1 = vld [vmem:[%s4948_s3 + $0x14] sm:$0xf] }
 0x1db   :  { %v1283_v35 = vadd.f32 %v1282_v7, %v1234_v2  ;;  %v2851_v2 = vld [vmem:[%s4948_s3 + $0x18] sm:$0xf0] }
 0x1dc   :  { %v2854_v7 = vor.u32 %v3131_v1, %v2851_v2 }
 0x1de   :  { %1915 = vmatpush.bf16.msra.mxu0 %v2854_v7 }
 0x1e0   :  { %v1331_v18 = vpop.f32.mrf.mxu2  ;;  %v1236_v10 = vpop.f32.mrf.mxu0 }
 0x1e1   :  { %v4695_v12 = vadd.f32 %v1331_v18, %v1283_v35  ;;  %v1237_v51 = vadd.f32 %v1236_v10, %v1188_v32  ;;  %v1285_v33 = vpop.f32.mrf.mxu1  ;;  %v3147_v35 = vld [vmem:[%s4948_s3 + $0x94] sm:$0xf]  ;;  %v1363_v50 = vpop.f32.mrf.mxu3  ;;  %v2843_v32 = vld [vmem:[%s4948_s3 + $0x8] sm:$0xf0] }
 0x1e2   :  { %v2918_v5 = vor.u32 %v3147_v35, %v2915_v3  ;;  %v2846_v34 = vor.u32 %v3129_v19, %v2843_v32  ;;  %v1364_v2 = vadd.f32 %v1363_v50, %v4577_v8  ;;  %v3168_v3 = vld [vmem:[%s4950_s5 + $0x38] sm:$0xff] }
 0x1e3   :  { %v4697_v52 = vadd.f32 %v1285_v33, %v1237_v51  ;;  %1431 = vmatmul.bf16.gmra.mxu0 %v4999_v42  ;;  %v5003_v42 = vld [vmem:[#allocation18_spill] sm:$0xff]  ;;  %2251 = vmatpush.bf16.msra.mxu2 %v3168_v3 }
 0x1e4   :  { %2835 = vmatmul.msk.bf16.gmra.mxu1 %vm790_vm0, %v5000_v15  ;;  %1916 = vmatpush.bf16.msra.mxu0 %v2846_v34  ;;  %v3176_v34 = vld [vmem:[%s4950_s5 + $0x78] sm:$0xff] }
 0x1e5   :  { %1839 = vmatmul.bf16.gmra.mxu2 %v4493_v14  ;;  %1964 = vmatpush.bf16.msra.mxu1 %v2918_v5 }
 0x1e6   :  { %2300 = vmatpush.bf16.msra.mxu3 %v3176_v34 }
 0x1e8   :  { %v4709_v13 = vpop.f32.mrf.mxu0 }
 0x1e9   :  { %v4711_v29 = vpop.f32.mrf.mxu1  ;;  %v1365_v15 = vpop.f32.mrf.mxu3 }
 0x1f0   :  { %v1241_v38 = vpop.f32.mrf.mxu0 }
 0x1f1   :  { %v1242_v39 = vadd.f32 %v1241_v38, %v1193_v31  ;;  %v1290_v40 = vpop.f32.mrf.mxu1  ;;  %v2910_v31 = vor.u32 %v3145_v20, %v2907_v17 }
 0x1f3   :  { %v4727_v53 = vadd.f32 %v1290_v40, %v1242_v39  ;;  %1436 = vmatmul.bf16.gmra.mxu0 %v5001_v0  ;;  %1965 = vmatpush.bf16.msra.mxu1 %v2910_v31  ;;  %v1368_v40 = vpop.f32.mrf.mxu3 }
 0x1f4   :  { %2836 = vmatmul.msk.bf16.gmra.mxu1 %vm790_vm0, %v5002_v30  ;;  %v1369_v60 = vadd.f32 %v1368_v40, %v4611_v16 }
 0x1f5   :  { %1844 = vmatmul.bf16.gmra.mxu2 %v4523_v61 }
 0x1f8   :  { %v4741_v26 = vpop.f32.mrf.mxu0 }
 0x1f9   :  { %v4743_v4 = vpop.f32.mrf.mxu1 }
 0x1fb   :  { %v1370_v48 = vpop.f32.mrf.mxu3 }
 0x1fc   :  { %v1371_v20 = vadd.f32 %v1370_v48, %v4627_v11 }
 0x200   :  { %v1246_v18 = vpop.f32.mrf.mxu0 }
 0x201   :  { %v1247_v10 = vadd.f32 %v1246_v18, %v1198_v28  ;;  %v1295_v51 = vpop.f32.mrf.mxu1  ;;  %v1366_v28 = vadd.f32 %v1365_v15, %v4595_v37 }
 0x203   :  { %v4765_v33 = vadd.f32 %v1295_v51, %v1247_v10  ;;  %1441 = vmatmul.bf16.gmra.mxu0 %v5003_v42  ;;  %v1373_v5 = vpop.f32.mrf.mxu3 }
 0x204   :  { %2837 = vmatmul.msk.bf16.gmra.mxu1 %vm790_vm0, %v5004_v25  ;;  %v1374_v48 = vadd.f32 %v1373_v5, %v4643_v21  ;;  %v3174_v21 = vld [vmem:[%s4950_s5 + $0x68] sm:$0xff] }
 0x205   :  { %1849 = vmatmul.bf16.gmra.mxu2 %v4541_v58 }
 0x208   :  { %v4777_v22 = vpop.f32.mrf.mxu0 }
 0x209   :  { %v4779_v56 = vpop.f32.mrf.mxu1 }
 0x20b   :  { %v1375_v25 = vpop.f32.mrf.mxu3 }
 0x210   :  { %v1251_v49 = vpop.f32.mrf.mxu0 }
 0x211   :  { %v1252_v38 = vadd.f32 %v1251_v49, %v1203_v41  ;;  %v1300_v39 = vpop.f32.mrf.mxu1  ;;  %v3167_v41 = vld [vmem:[%s4950_s5 + $0x30] sm:$0xff] }
 0x212   :  { %2252 = vmatpush.bf16.msra.mxu2 %v3167_v41  ;;  %v3175_v49 = vld [vmem:[%s4950_s5 + $0x70] sm:$0xff] }
 0x213   :  { %v4788_v0 = vadd.f32 %v1300_v39, %v1252_v38  ;;  %1446 = vmatmul.bf16.gmra.mxu0 %v5005_v24  ;;  %v1378_v39 = vpop.f32.mrf.mxu3  ;;  %2301 = vmatpush.bf16.msra.mxu3 %v3175_v49 }
 0x214   :  { %2838 = vmatmul.msk.bf16.gmra.mxu1 %vm790_vm0, %v5006_v43 }
 0x215   :  { %1854 = vmatmul.bf16.gmra.mxu2 %v4573_v55 }
 0x217   :  { %2302 = vmatpush.bf16.msra.mxu3 %v3174_v21 }
 0x218   :  { %v4794_v46 = vpop.f32.mrf.mxu0 }
 0x219   :  { %v4796_v30 = vpop.f32.mrf.mxu1 }
 0x220   :  { %v1412_v1 = vpop.f32.mrf.mxu0 }
 0x221   :  { %v1461_v7 = vpop.f32.mrf.mxu1  ;;  %v1413_v35 = vadd.f32 %v1412_v1, %v1364_v2 }
 0x223   :  { %1917 = vmatmul.bf16.vlgmr.msra.gmra.mxu0 %v4398_v47  ;;  %v1462_v19 = vadd.f32 %v1461_v7, %v1413_v35  ;;  %v1334_v35 = vpop.f32.mrf.mxu2 }
 0x225   :  { %v1534_v50 = vmul.f32 0.01, %v1462_v19  ;;  %vm1502_vm0 = vcmp.gt.f32.partialorder %v1462_v19, 0.0 }
 0x227   :  { %v1566_v51 = vsel %vm1502_vm0, %v1462_v19, %v1534_v50  ;;  %v3166_v19 = vld [vmem:[%s4950_s5 + $0x28] sm:$0xff] }
 0x228   :  { %v1414_v32 = vpop.f32.mrf.mxu0  ;;  %2253 = vmatpush.bf16.msra.mxu2 %v3166_v19 }
 0x229   :  { %v1415_v18 = vadd.f32 %v1414_v32, %v1366_v28  ;;  %v1463_v8 = vpop.f32.mrf.mxu1  ;;  %v1380_v28 = vpop.f32.mrf.mxu3  ;;  %v1376_v32 = vadd.f32 %v1375_v25, %v4661_v54 }
 0x22a   :  { %v1381_v41 = vadd.f32 %v1380_v28, %v4695_v12  ;;  %v1335_v12 = vadd.f32 %v1334_v35, %v4697_v52  ;;  %v3164_v52 = vld [vmem:[%s4950_s5 + $0x18] sm:$0xff] }
 0x22b   :  { %v1464_v10 = vadd.f32 %v1463_v8, %v1415_v18 }
 0x22d   :  { %vm1504_vm2 = vcmp.gt.f32.partialorder %v1464_v10, 0.0  ;;  %v1536_v47 = vmul.f32 0.01, %v1464_v10 }
 0x22f   :  { %v1568_v42 = vsel %vm1504_vm2, %v1464_v10, %v1536_v47 }
 0x230   :  { %v1598_v44 = vpack.c.bf16 %v1568_v42, %v1566_v51  ;;  %v1417_v37 = vpop.f32.mrf.mxu0 }
 0x231   :  { %v1466_v15 = vpop.f32.mrf.mxu1  ;;  %v1418_v45 = vadd.f32 %v1417_v37, %v1369_v60  ;;  %v1383_v51 = vpop.f32.mrf.mxu3  ;;  %v1379_v37 = vadd.f32 %v1378_v39, %v4677_v23  ;;  %v3173_v23 = vld [vmem:[%s4950_s5 + $0x60] sm:$0xff] }
 0x232   :  { %1868 = vmatmul.bf16.vlgmr.msrb.gmra.mxu3 %v1598_v44  ;;  %1966 = vmatmul.bf16.vlgmr.msra.gmra.mxu1 %v1598_v44 }
 0x233   :  { %1922 = vmatmul.bf16.gmra.mxu0 %v4413_v36  ;;  %v1467_v17 = vadd.f32 %v1466_v15, %v1418_v45  ;;  %v3165_v45 = vld [vmem:[%s4950_s5 + $0x20] sm:$0xff]  ;;  %2303 = vmatpush.bf16.msra.mxu3 %v3173_v23 }
 0x234   :  { %2254 = vmatpush.bf16.msra.mxu2 %v3165_v45 }
 0x235   :  { %v1538_v40 = vmul.f32 0.01, %v1467_v17  ;;  %vm1506_vm3 = vcmp.gt.f32.partialorder %v1467_v17, 0.0 }
 0x237   :  { %v1570_v43 = vsel %vm1506_vm3, %v1467_v17, %v1538_v40 }
 0x238   :  { %v1419_v31 = vpop.f32.mrf.mxu0  ;;  %2255 = vmatpush.bf16.msra.mxu2 %v3164_v52 }
 0x239   :  { %v1420_v16 = vadd.f32 %v1419_v31, %v1371_v20  ;;  %v1468_v38 = vpop.f32.mrf.mxu1  ;;  %v1385_v31 = vpop.f32.mrf.mxu3 }
 0x23b   :  { %v1469_v24 = vadd.f32 %v1468_v38, %v1420_v16 }
 0x23d   :  { %vm1508_vm4 = vcmp.gt.f32.partialorder %v1469_v24, 0.0  ;;  %v1540_v36 = vmul.f32 0.01, %v1469_v24 }
 0x23f   :  { %v1572_v1 = vsel %vm1508_vm4, %v1469_v24, %v1540_v36 }
 0x240   :  { %v1422_v2 = vpop.f32.mrf.mxu0  ;;  %v1600_v11 = vpack.c.bf16 %v1572_v1, %v1570_v43 }
 0x241   :  { %v1471_v7 = vpop.f32.mrf.mxu1  ;;  %v1423_v3 = vadd.f32 %v1422_v2, %v1374_v48  ;;  %v1388_v19 = vpop.f32.mrf.mxu3 }
 0x242   :  { %1873 = vmatmul.bf16.gmra.mxu3 %v1600_v11  ;;  %1971 = vmatmul.bf16.gmra.mxu1 %v1600_v11 }
 0x243   :  { %1927 = vmatmul.bf16.gmra.mxu0 %v4429_v9  ;;  %v1472_v34 = vadd.f32 %v1471_v7, %v1423_v3  ;;  %v1336_v9 = vpop.f32.mrf.mxu2  ;;  %v1384_v7 = vadd.f32 %v1383_v51, %v1335_v12 }
 0x245   :  { %v1542_v50 = vmul.f32 0.01, %v1472_v34  ;;  %vm1510_vm5 = vcmp.gt.f32.partialorder %v1472_v34, 0.0 }
 0x247   :  { %v1574_v42 = vsel %vm1510_vm5, %v1472_v34, %v1542_v50 }
 0x248   :  { %v1424_v18 = vpop.f32.mrf.mxu0 }
 0x249   :  { %v1425_v5 = vadd.f32 %v1424_v18, %v1376_v32  ;;  %v1473_v8 = vpop.f32.mrf.mxu1 }
 0x24b   :  { %v1474_v10 = vadd.f32 %v1473_v8, %v1425_v5  ;;  %v1339_v20 = vpop.f32.mrf.mxu2  ;;  %v1195_v5 = vadd.f32 %v4654_v57, %v4546_v59 }
 0x24d   :  { %vm1512_vm6 = vcmp.gt.f32.partialorder %v1474_v10, 0.0  ;;  %v1544_v47 = vmul.f32 0.01, %v1474_v10 }
 0x24f   :  { %v1576_v44 = vsel %vm1512_vm6, %v1474_v10, %v1544_v47  ;;  %v1390_v10 = vpop.f32.mrf.mxu3  ;;  %v1244_v47 = vadd.f32 %v4741_v26, %v1195_v5 }
 0x250   :  { %v1427_v54 = vpop.f32.mrf.mxu0  ;;  %v1602_v25 = vpack.c.bf16 %v1576_v44, %v1574_v42 }
 0x251   :  { %v1476_v60 = vpop.f32.mrf.mxu1  ;;  %v1428_v15 = vadd.f32 %v1427_v54, %v1379_v37  ;;  %v1293_v37 = vadd.f32 %v4743_v4, %v1244_v47  ;;  %v3171_v4 = vld [vmem:[%s4950_s5 + $0x50] sm:$0xff] }
 0x252   :  { %1878 = vmatmul.bf16.gmra.mxu3 %v1602_v25  ;;  %1976 = vmatmul.bf16.gmra.mxu1 %v1602_v25 }
 0x253   :  { %1932 = vmatmul.bf16.gmra.mxu0 %v4453_v27  ;;  %v1477_v17 = vadd.f32 %v1476_v60, %v1428_v15  ;;  %v1190_v27 = vadd.f32 %v4609_v62, %v4546_v59  ;;  %v1341_v3 = vpop.f32.mrf.mxu2 }
 0x254   :  { %v1342_v57 = vadd.f32 %v1341_v3, %v1293_v37  ;;  %v3161_v37 = vld [vmem:[%s4950_s5] sm:$0xff] }
 0x255   :  { %v1546_v39 = vmul.f32 0.01, %v1477_v17  ;;  %vm1514_vm7 = vcmp.gt.f32.partialorder %v1477_v17, 0.0  ;;  %v1239_v24 = vadd.f32 %v4709_v13, %v1190_v27 }
 0x257   :  { %v1578_v43 = vsel %vm1514_vm7, %v1477_v17, %v1546_v39  ;;  %v1288_v48 = vadd.f32 %v4711_v29, %v1239_v24  ;;  %v3172_v29 = vld [vmem:[%s4950_s5 + $0x58] sm:$0xff]  ;;  %v1393_v26 = vpop.f32.mrf.mxu3 }
 0x258   :  { %v1429_v49 = vpop.f32.mrf.mxu0  ;;  %2304 = vmatpush.bf16.msra.mxu3 %v3172_v29 }
 0x259   :  { %v1430_v16 = vadd.f32 %v1429_v49, %v1381_v41  ;;  %v1478_v38 = vpop.f32.mrf.mxu1  ;;  %v1337_v62 = vadd.f32 %v1336_v9, %v1288_v48  ;;  %v1340_v9 = vadd.f32 %v1339_v20, %v4727_v53  ;;  %v3163_v53 = vld [vmem:[%s4950_s5 + $0x10] sm:$0xff]  ;;  %v1391_v20 = vadd.f32 %v1390_v10, %v1342_v57 }
 0x25a   :  { %2256 = vmatpush.bf16.msra.mxu2 %v3163_v53 }
 0x25b   :  { %v1479_v40 = vadd.f32 %v1478_v38, %v1430_v16  ;;  %v1386_v13 = vadd.f32 %v1385_v31, %v1337_v62  ;;  %v1344_v8 = vpop.f32.mrf.mxu2  ;;  %v1389_v60 = vadd.f32 %v1388_v19, %v1340_v9 }
 0x25c   :  { %2305 = vmatpush.bf16.msra.mxu3 %v3171_v4  ;;  %v1345_v27 = vadd.f32 %v1344_v8, %v4765_v33  ;;  %v3170_v33 = vld [vmem:[%s4950_s5 + $0x48] sm:$0xff] }
 0x25d   :  { %vm1516_vm8 = vcmp.gt.f32.partialorder %v1479_v40, 0.0  ;;  %v1548_v36 = vmul.f32 0.01, %v1479_v40 }
 0x25e   :  { %v1394_v48 = vadd.f32 %v1393_v26, %v1345_v27 }
 0x25f   :  { %v1580_v1 = vsel %vm1516_vm8, %v1479_v40, %v1548_v36 }
 0x260   :  { %v1432_v2 = vpop.f32.mrf.mxu0  ;;  %v1604_v11 = vpack.c.bf16 %v1580_v1, %v1578_v43  ;;  %v1395_v43 = vpop.f32.mrf.mxu3  ;;  %2306 = vmatpush.bf16.msra.mxu3 %v3170_v33 }
 0x261   :  { %v1481_v28 = vpop.f32.mrf.mxu1  ;;  %v1433_v32 = vadd.f32 %v1432_v2, %v1384_v7 }
 0x262   :  { %1883 = vmatmul.bf16.gmra.mxu3 %v1604_v11  ;;  %1981 = vmatmul.bf16.gmra.mxu1 %v1604_v11 }
 0x263   :  { %1937 = vmatmul.bf16.gmra.mxu0 %v4493_v14  ;;  %v1482_v35 = vadd.f32 %v1481_v28, %v1433_v32  ;;  %v1346_v41 = vpop.f32.mrf.mxu2 }
 0x265   :  { %v1550_v14 = vmul.f32 0.01, %v1482_v35  ;;  %vm1518_vm9 = vcmp.gt.f32.partialorder %v1482_v35, 0.0 }
 0x267   :  { %v1582_v42 = vsel %vm1518_vm9, %v1482_v35, %v1550_v14  ;;  %v1205_v35 = vadd.f32 %v4736_v63, %v4546_v59 }
 0x268   :  { %v1434_v34 = vpop.f32.mrf.mxu0 }
 0x269   :  { %v1435_v18 = vadd.f32 %v1434_v34, %v1386_v13  ;;  %v1483_v21 = vpop.f32.mrf.mxu1  ;;  %v1398_v13 = vpop.f32.mrf.mxu3 }
 0x26b   :  { %v1484_v50 = vadd.f32 %v1483_v21, %v1435_v18  ;;  %v1349_v12 = vpop.f32.mrf.mxu2  ;;  %v1254_v21 = vadd.f32 %v4794_v46, %v1205_v35 }
 0x26c   :  { %v1350_v18 = vadd.f32 %v1349_v12, %v4788_v0 }
 0x26d   :  { %vm1520_vm10 = vcmp.gt.f32.partialorder %v1484_v50, 0.0  ;;  %v1552_v51 = vmul.f32 0.01, %v1484_v50  ;;  %v1303_v10 = vadd.f32 %v4796_v30, %v1254_v21 }
 0x26e   :  { %v1399_v9 = vadd.f32 %v1398_v13, %v1350_v18 }
 0x26f   :  { %v1584_v44 = vsel %vm1520_vm10, %v1484_v50, %v1552_v51 }
 0x270   :  { %v1437_v54 = vpop.f32.mrf.mxu0  ;;  %v1606_v25 = vpack.c.bf16 %v1584_v44, %v1582_v42 }
 0x271   :  { %v1486_v15 = vpop.f32.mrf.mxu1  ;;  %v1438_v45 = vadd.f32 %v1437_v54, %v1389_v60  ;;  %v1400_v0 = vpop.f32.mrf.mxu3 }
 0x272   :  { %1888 = vmatmul.bf16.gmra.mxu3 %v1606_v25  ;;  %1986 = vmatmul.bf16.gmra.mxu1 %v1606_v25 }
 0x273   :  { %1942 = vmatmul.bf16.gmra.mxu0 %v4523_v61  ;;  %v1487_v17 = vadd.f32 %v1486_v15, %v1438_v45  ;;  %v1200_v61 = vadd.f32 %v4693_v6, %v4546_v59  ;;  %v3162_v6 = vld [vmem:[%s4950_s5 + $0x8] sm:$0xff]  ;;  %v1351_v62 = vpop.f32.mrf.mxu2  ;;  %v3169_v15 = vld [vmem:[%s4950_s5 + $0x40] sm:$0xff] }
 0x274   :  { %2257 = vmatpush.bf16.msra.mxu2 %v3162_v6  ;;  %v1352_v59 = vadd.f32 %v1351_v62, %v1303_v10  ;;  %2307 = vmatpush.bf16.msra.mxu3 %v3169_v15 }
 0x275   :  { %v1554_v16 = vmul.f32 0.01, %v1487_v17  ;;  %vm1522_vm11 = vcmp.gt.f32.partialorder %v1487_v17, 0.0  ;;  %v1249_v39 = vadd.f32 %v4777_v22, %v1200_v61 }
 0x276   :  { %v1401_v42 = vadd.f32 %v1400_v0, %v1352_v59 }
 0x277   :  { %v1586_v24 = vsel %vm1522_vm11, %v1487_v17, %v1554_v16  ;;  %v1298_v11 = vadd.f32 %v4779_v56, %v1249_v39 }
 0x278   :  { %v1439_v31 = vpop.f32.mrf.mxu0  ;;  %2258 = vmatpush.bf16.msra.mxu2 %v3161_v37 }
 0x279   :  { %v1440_v49 = vadd.f32 %v1439_v31, %v1391_v20  ;;  %v1488_v23 = vpop.f32.mrf.mxu1  ;;  %v1347_v22 = vadd.f32 %v1346_v41, %v1298_v11  ;;  %v1645_v31 = vld [vmem:[%s4949_s4] sm:$0x3] }
 0x27a   :  { %v4885_v4 = vperm.slane %v1645_v31, 1 }
 0x27b   :  { %v1489_v38 = vadd.f32 %v1488_v23, %v1440_v49  ;;  %v1396_v28 = vadd.f32 %v1395_v43, %v1347_v22  ;;  %v1820_v63 = vpop.f32.mrf.mxu2 }
 0x27d   :  { %vm1524_vm12 = vcmp.gt.f32.partialorder %v1489_v38, 0.0  ;;  %v1556_v40 = vmul.f32 0.01, %v1489_v38 }
 0x27f   :  { %v1588_v36 = vsel %vm1524_vm12, %v1489_v38, %v1556_v40  ;;  %v4888_v38 = vperm.slane %v1645_v31, 0 }
 0x280   :  { %v1442_v1 = vpop.f32.mrf.mxu0  ;;  %v1608_v2 = vpack.c.bf16 %v1588_v36, %v1586_v24 }
 0x281   :  { %v1491_v7 = vpop.f32.mrf.mxu1  ;;  %v1443_v3 = vadd.f32 %v1442_v1, %v1394_v48  ;;  %v1821_v24 = vadd.f32 %v1820_v63, %v4888_v38 }
 0x282   :  { %1893 = vmatmul.bf16.gmra.mxu3 %v1608_v2  ;;  %1991 = vmatmul.bf16.gmra.mxu1 %v1608_v2 }
 0x283   :  { %1947 = vmatmul.bf16.gmra.mxu0 %v4541_v58  ;;  %v1492_v56 = vadd.f32 %v1491_v7, %v1443_v3  ;;  %v1822_v57 = vpop.f32.mrf.mxu2 }
 0x284   :  { %v1823_v7 = vadd.f32 %v1822_v57, %v4888_v38 }
 0x285   :  { %v1558_v34 = vmul.f32 0.01, %v1492_v56  ;;  %vm1526_vm13 = vcmp.gt.f32.partialorder %v1492_v56, 0.0 }
 0x287   :  { %v1590_v5 = vsel %vm1526_vm13, %v1492_v56, %v1558_v34 }
 0x288   :  { %v1444_v19 = vpop.f32.mrf.mxu0 }
 0x289   :  { %v1445_v32 = vadd.f32 %v1444_v19, %v1396_v28  ;;  %v1493_v52 = vpop.f32.mrf.mxu1 }
 0x28b   :  { %v1494_v29 = vadd.f32 %v1493_v52, %v1445_v32  ;;  %v1825_v20 = vpop.f32.mrf.mxu2 }
 0x28d   :  { %vm1528_vm14 = vcmp.gt.f32.partialorder %v1494_v29, 0.0  ;;  %v1560_v58 = vmul.f32 0.01, %v1494_v29 }
 0x28f   :  { %v1592_v8 = vsel %vm1528_vm14, %v1494_v29, %v1560_v58 }
 0x290   :  { %v1447_v14 = vpop.f32.mrf.mxu0  ;;  %v1610_v50 = vpack.c.bf16 %v1592_v8, %v1590_v5  ;;  %v1826_v8 = vadd.f32 %v1825_v20, %v4888_v38 }
 0x291   :  { %v1496_v47 = vpop.f32.mrf.mxu1  ;;  %v1448_v51 = vadd.f32 %v1447_v14, %v1399_v9 }
 0x292   :  { %1898 = vmatmul.bf16.gmra.mxu3 %v1610_v50  ;;  %1996 = vmatmul.bf16.gmra.mxu1 %v1610_v50 }
 0x293   :  { %1952 = vmatmul.bf16.gmra.mxu0 %v4573_v55  ;;  %v1497_v46 = vadd.f32 %v1496_v47, %v1448_v51  ;;  %v1827_v61 = vpop.f32.mrf.mxu2 }
 0x294   :  { %v1828_v59 = vadd.f32 %v1827_v61, %v4888_v38 }
 0x295   :  { %v1562_v30 = vmul.f32 0.01, %v1497_v46  ;;  %vm1530_vm15 = vcmp.gt.f32.partialorder %v1497_v46, 0.0 }
 0x297   :  { %v1594_v45 = vsel %vm1530_vm15, %v1497_v46, %v1562_v30 }
 0x298   :  { %v1449_v44 = vpop.f32.mrf.mxu0 }
 0x299   :  { %v1450_v54 = vadd.f32 %v1449_v44, %v1401_v42  ;;  %v1498_v25 = vpop.f32.mrf.mxu1 }
 0x29b   :  { %v1499_v60 = vadd.f32 %v1498_v25, %v1450_v54  ;;  %v1830_v48 = vpop.f32.mrf.mxu2 }
 0x29c   :  { %v1831_v20 = vadd.f32 %v1830_v48, %v4888_v38 }
 0x29d   :  { %vm1532_vm1 = vcmp.gt.f32.partialorder %v1499_v60, 0.0  ;;  %v1564_v55 = vmul.f32 0.01, %v1499_v60 }
 0x29f   :  { %v1596_v41 = vsel %vm1532_vm1, %v1499_v60, %v1564_v55 }
 0x2a0   :  { %v1918_v53 = vpop.f32.mrf.mxu0  ;;  %v1612_v26 = vpack.c.bf16 %v1596_v41, %v1594_v45 }
 0x2a1   :  { %v1919_v16 = vadd.f32 %v1918_v53, %v4885_v4 }
 0x2a2   :  { %1903 = vmatmul.bf16.gmra.mxu3 %v1612_v26  ;;  %2001 = vmatmul.bf16.gmra.mxu1 %v1612_v26 }
 0x2a3   :  { %v1832_v18 = vpop.f32.mrf.mxu2 }
 0x2a8   :  { %v1920_v17 = vpop.f32.mrf.mxu0 }
 0x2a9   :  { %v1921_v40 = vadd.f32 %v1920_v17, %v4885_v4 }
 0x2ab   :  { %v1835_v54 = vpop.f32.mrf.mxu2 }
 0x2af   :  { %v1967_v49 = vpop.f32.mrf.mxu1 }
 0x2b0   :  { %v1923_v23 = vpop.f32.mrf.mxu0  ;;  %v1968_v27 = vadd.f32 %v1967_v49, %v1919_v16 }
 0x2b1   :  { %v1924_v52 = vadd.f32 %v1923_v23, %v4885_v4 }
 0x2b2   :  { %v2040_v36 = vmul.f32 0.01, %v1968_v27  ;;  %vm2008_vm0 = vcmp.gt.f32.partialorder %v1968_v27, 0.0 }
 0x2b3   :  { %v1837_v23 = vpop.f32.mrf.mxu2 }
 0x2b4   :  { %v2072_v6 = vsel %vm2008_vm0, %v1968_v27, %v2040_v36  ;;  %v1833_v27 = vadd.f32 %v1832_v18, %v4888_v38 }
 0x2b5   :  { %v1869_v39 = vpop.f32.mrf.mxu3 }
 0x2b6   :  { %v1870_v2 = vadd.f32 %v1869_v39, %v1821_v24 }
 0x2b7   :  { %v1969_v12 = vpop.f32.mrf.mxu1 }
 0x2b8   :  { %v1970_v43 = vadd.f32 %v1969_v12, %v1921_v40  ;;  %v1925_v1 = vpop.f32.mrf.mxu0  ;;  %v2039_v28 = vmul.f32 0.01, %v1870_v2  ;;  %vm2007_vm3 = vcmp.gt.f32.partialorder %v1870_v2, 0.0 }
 0x2b9   :  { %v1926_v58 = vadd.f32 %v1925_v1, %v4885_v4 }
 0x2ba   :  { %vm2010_vm2 = vcmp.gt.f32.partialorder %v1970_v43, 0.0  ;;  %v2042_v11 = vmul.f32 0.01, %v1970_v43  ;;  %v2071_v13 = vsel %vm2007_vm3, %v1870_v2, %v2039_v28 }
 0x2bc   :  { %v2074_v33 = vsel %vm2010_vm2, %v1970_v43, %v2042_v11 }
 0x2bd   :  { %v2104_v22 = vpack.c.bf16 %v2074_v33, %v2072_v6  ;;  %v1871_v3 = vpop.f32.mrf.mxu3  ;;  %v1840_v33 = vpop.f32.mrf.mxu2 }
 0x2be   :  { %v1872_v56 = vadd.f32 %v1871_v3, %v1823_v7 }
 0x2bf   :  { %v1972_v19 = vpop.f32.mrf.mxu1  ;;  %2308 = vmatmul.bf16.vlgmr.msra.gmra.mxu3 %v2104_v22 }
 0x2c0   :  { %vm2009_vm4 = vcmp.gt.f32.partialorder %v1872_v56, 0.0  ;;  %v2041_v62 = vmul.f32 0.01, %v1872_v56  ;;  %v1928_v32 = vpop.f32.mrf.mxu0  ;;  %v1973_v29 = vadd.f32 %v1972_v19, %v1924_v52 }
 0x2c1   :  { %v1929_v60 = vadd.f32 %v1928_v32, %v4885_v4 }
 0x2c2   :  { %v2073_v35 = vsel %vm2009_vm4, %v1872_v56, %v2041_v62  ;;  %v2044_v14 = vmul.f32 0.01, %v1973_v29  ;;  %vm2012_vm5 = vcmp.gt.f32.partialorder %v1973_v29, 0.0  ;;  %v1836_v62 = vadd.f32 %v1835_v54, %v4888_v38 }
 0x2c3   :  { %v2103_v34 = vpack.c.bf16 %v2073_v35, %v2071_v13 }
 0x2c4   :  { %v2076_v63 = vsel %vm2012_vm5, %v1973_v29, %v2044_v14  ;;  %v1838_v29 = vadd.f32 %v1837_v23, %v4888_v38 }
 0x2c5   :  { %v1874_v21 = vpop.f32.mrf.mxu3  ;;  %2259 = vmatmul.bf16.vlgmr.msra.gmra.mxu2 %v2103_v34 }
 0x2c6   :  { %v1875_v9 = vadd.f32 %v1874_v21, %v1826_v8 }
 0x2c7   :  { %v1974_v5 = vpop.f32.mrf.mxu1 }
 0x2c8   :  { %v1975_v50 = vadd.f32 %v1974_v5, %v1926_v58  ;;  %v1930_v10 = vpop.f32.mrf.mxu0  ;;  %v2043_v46 = vmul.f32 0.01, %v1875_v9  ;;  %vm2011_vm7 = vcmp.gt.f32.partialorder %v1875_v9, 0.0  ;;  %v1842_v58 = vpop.f32.mrf.mxu2 }
 0x2c9   :  { %v1931_v53 = vadd.f32 %v1930_v10, %v4885_v4 }
 0x2ca   :  { %vm2014_vm6 = vcmp.gt.f32.partialorder %v1975_v50, 0.0  ;;  %v2046_v47 = vmul.f32 0.01, %v1975_v50  ;;  %v2075_v15 = vsel %vm2011_vm7, %v1875_v9, %v2043_v46 }
 0x2cc   :  { %v2078_v51 = vsel %vm2014_vm6, %v1975_v50, %v2046_v47 }
 0x2cd   :  { %v1876_v0 = vpop.f32.mrf.mxu3  ;;  %v2106_v42 = vpack.c.bf16 %v2078_v51, %v2076_v63 }
 0x2ce   :  { %v1877_v44 = vadd.f32 %v1876_v0, %v1828_v59 }
 0x2cf   :  { %v1977_v25 = vpop.f32.mrf.mxu1  ;;  %2313 = vmatmul.bf16.gmra.mxu3 %v2106_v42 }
 0x2d0   :  { %vm2013_vm8 = vcmp.gt.f32.partialorder %v1877_v44, 0.0  ;;  %v2045_v37 = vmul.f32 0.01, %v1877_v44  ;;  %v1933_v30 = vpop.f32.mrf.mxu0  ;;  %v1978_v45 = vadd.f32 %v1977_v25, %v1929_v60  ;;  %v1845_v54 = vpop.f32.mrf.mxu2 }
 0x2d1   :  { %v1934_v48 = vadd.f32 %v1933_v30, %v4885_v4 }
 0x2d2   :  { %v2077_v57 = vsel %vm2013_vm8, %v1877_v44, %v2045_v37  ;;  %v2048_v17 = vmul.f32 0.01, %v1978_v45  ;;  %vm2016_vm9 = vcmp.gt.f32.partialorder %v1978_v45, 0.0  ;;  %v1841_v37 = vadd.f32 %v1840_v33, %v4888_v38 }
 0x2d3   :  { %v2105_v55 = vpack.c.bf16 %v2077_v57, %v2075_v15 }
 0x2d4   :  { %v2080_v39 = vsel %vm2016_vm9, %v1978_v45, %v2048_v17  ;;  %v1843_v45 = vadd.f32 %v1842_v58, %v4888_v38 }
 0x2d5   :  { %v1879_v41 = vpop.f32.mrf.mxu3  ;;  %2264 = vmatmul.bf16.gmra.mxu2 %v2105_v55 }
 0x2d6   :  { %v1880_v61 = vadd.f32 %v1879_v41, %v1831_v20 }
 0x2d7   :  { %v1979_v26 = vpop.f32.mrf.mxu1 }
 0x2d8   :  { %v1980_v31 = vadd.f32 %v1979_v26, %v1931_v53  ;;  %v1935_v49 = vpop.f32.mrf.mxu0  ;;  %v2047_v36 = vmul.f32 0.01, %v1880_v61  ;;  %vm2015_vm11 = vcmp.gt.f32.partialorder %v1880_v61, 0.0 }
 0x2d9   :  { %v1936_v56 = vadd.f32 %v1935_v49, %v4885_v4 }
 0x2da   :  { %vm2018_vm10 = vcmp.gt.f32.partialorder %v1980_v31, 0.0  ;;  %v2050_v16 = vmul.f32 0.01, %v1980_v31  ;;  %v2079_v7 = vsel %vm2015_vm11, %v1880_v61, %v2047_v36  ;;  %v1847_v61 = vpop.f32.mrf.mxu2 }
 0x2dc   :  { %v2082_v40 = vsel %vm2018_vm10, %v1980_v31, %v2050_v16 }
 0x2dd   :  { %v1881_v12 = vpop.f32.mrf.mxu3  ;;  %v2108_v24 = vpack.c.bf16 %v2082_v40, %v2080_v39 }
 0x2de   :  { %v1882_v43 = vadd.f32 %v1881_v12, %v1833_v27 }
 0x2df   :  { %v1982_v1 = vpop.f32.mrf.mxu1  ;;  %2318 = vmatmul.bf16.gmra.mxu3 %v2108_v24 }
 0x2e0   :  { %vm2017_vm12 = vcmp.gt.f32.partialorder %v1882_v43, 0.0  ;;  %v2049_v2 = vmul.f32 0.01, %v1882_v43  ;;  %v1938_v11 = vpop.f32.mrf.mxu0  ;;  %v1983_v3 = vadd.f32 %v1982_v1, %v1934_v48 }
 0x2e1   :  { %v1939_v59 = vadd.f32 %v1938_v11, %v4885_v4 }
 0x2e2   :  { %v2081_v6 = vsel %vm2017_vm12, %v1882_v43, %v2049_v2  ;;  %v2052_v32 = vmul.f32 0.01, %v1983_v3  ;;  %vm2020_vm13 = vcmp.gt.f32.partialorder %v1983_v3, 0.0  ;;  %v1846_v2 = vadd.f32 %v1845_v54, %v4888_v38  ;;  %v1850_v33 = vpop.f32.mrf.mxu2 }
 0x2e3   :  { %v2107_v22 = vpack.c.bf16 %v2081_v6, %v2079_v7 }
 0x2e4   :  { %v2084_v18 = vsel %vm2020_vm13, %v1983_v3, %v2052_v32 }
 0x2e5   :  { %v1884_v28 = vpop.f32.mrf.mxu3  ;;  %2269 = vmatmul.bf16.gmra.mxu2 %v2107_v22  ;;  %v1848_v22 = vadd.f32 %v1847_v61, %v4888_v38 }
 0x2e6   :  { %v1885_v35 = vadd.f32 %v1884_v28, %v1836_v62 }
 0x2e7   :  { %v1984_v19 = vpop.f32.mrf.mxu1 }
 0x2e8   :  { %v1985_v52 = vadd.f32 %v1984_v19, %v1936_v56  ;;  %v1940_v13 = vpop.f32.mrf.mxu0  ;;  %v2051_v14 = vmul.f32 0.01, %v1885_v35  ;;  %vm2019_vm15 = vcmp.gt.f32.partialorder %v1885_v35, 0.0 }
 0x2e9   :  { %v1941_v44 = vadd.f32 %v1940_v13, %v4885_v4 }
 0x2ea   :  { %vm2022_vm14 = vcmp.gt.f32.partialorder %v1985_v52, 0.0  ;;  %v2054_v34 = vmul.f32 0.01, %v1985_v52  ;;  %v2083_v63 = vsel %vm2019_vm15, %v1885_v35, %v2051_v14 }
 0x2ec   :  { %v2086_v21 = vsel %vm2022_vm14, %v1985_v52, %v2054_v34 }
 0x2ed   :  { %v1886_v5 = vpop.f32.mrf.mxu3  ;;  %v2110_v8 = vpack.c.bf16 %v2086_v21, %v2084_v18 }
 0x2ee   :  { %v1887_v50 = vadd.f32 %v1886_v5, %v1838_v29  ;;  %v1852_v5 = vpop.f32.mrf.mxu2 }
 0x2ef   :  { %v1987_v10 = vpop.f32.mrf.mxu1  ;;  %2323 = vmatmul.bf16.gmra.mxu3 %v2110_v8 }
 0x2f0   :  { %vm2021_vm1 = vcmp.gt.f32.partialorder %v1887_v50, 0.0  ;;  %v2053_v9 = vmul.f32 0.01, %v1887_v50  ;;  %v1943_v47 = vpop.f32.mrf.mxu0  ;;  %v1988_v42 = vadd.f32 %v1987_v10, %v1939_v59  ;;  %v1851_v10 = vadd.f32 %v1850_v33, %v4888_v38  ;;  %v4924_v33 = vld [vmem:[%s4951_s6] ss:$0 sm:$0xff]  ;;  %s3208_s6 = smov [#allocation2]  }
 0x2f1   :  { %v1944_v16 = vadd.f32 %v1943_v47, %v4885_v4  ;;  %s2417_s26 = sshll.u32 %s3208_s6, 4  ;;  %s2418_s26 = int_to_ptr.vmem [resolvable:$true] %s2417_s26 }
 0x2f2   :  { %v2085_v51 = vsel %vm2021_vm1, %v1887_v50, %v2053_v9  ;;  %v2056_v30 = vmul.f32 0.01, %v1988_v42  ;;  %vm2024_vm0 = vcmp.gt.f32.partialorder %v1988_v42, 0.0 }
 0x2f3   :  { %v2109_v0 = vpack.c.bf16 %v2085_v51, %v2083_v63 }
 0x2f4   :  { %v2088_v41 = vsel %vm2024_vm0, %v1988_v42, %v2056_v30 }
 0x2f5   :  { %v1889_v46 = vpop.f32.mrf.mxu3  ;;  %2274 = vmatmul.bf16.gmra.mxu2 %v2109_v0  ;;  %v1853_v0 = vadd.f32 %v1852_v5, %v4888_v38 }
 0x2f6   :  { %v1890_v15 = vadd.f32 %v1889_v46, %v1841_v37  ;;  %v1855_v30 = vpop.f32.mrf.mxu2 }
 0x2f7   :  { %v1989_v25 = vpop.f32.mrf.mxu1 }
 0x2f8   :  { %v1990_v60 = vadd.f32 %v1989_v25, %v1941_v44  ;;  %v1945_v55 = vpop.f32.mrf.mxu0  ;;  %v2055_v17 = vmul.f32 0.01, %v1890_v15  ;;  %vm2023_vm3 = vcmp.gt.f32.partialorder %v1890_v15, 0.0 }
 0x2f9   :  { %v1946_v43 = vadd.f32 %v1945_v55, %v4885_v4 }
 0x2fa   :  { %vm2026_vm2 = vcmp.gt.f32.partialorder %v1990_v60, 0.0  ;;  %v2058_v57 = vmul.f32 0.01, %v1990_v60  ;;  %v2087_v27 = vsel %vm2023_vm3, %v1890_v15, %v2055_v17 }
 0x2fc   :  { %v2090_v53 = vsel %vm2026_vm2, %v1990_v60, %v2058_v57 }
 0x2fd   :  { %v1891_v26 = vpop.f32.mrf.mxu3  ;;  %v2112_v20 = vpack.c.bf16 %v2090_v53, %v2088_v41 }
 0x2fe   :  { %v1892_v31 = vadd.f32 %v1891_v26, %v1843_v45 }
 0x2ff   :  { %v1992_v49 = vpop.f32.mrf.mxu1  ;;  %2328 = vmatmul.bf16.gmra.mxu3 %v2112_v20 }
 0x300   :  { %vm2025_vm4 = vcmp.gt.f32.partialorder %v1892_v31, 0.0  ;;  %v2057_v23 = vmul.f32 0.01, %v1892_v31  ;;  %v1993_v12 = vadd.f32 %v1992_v49, %v1944_v16  ;;  %v1948_v24 = vpop.f32.mrf.mxu0  ;;  %v1856_v49 = vadd.f32 %v1855_v30, %v4888_v38  ;;  %v1857_v16 = vpop.f32.mrf.mxu2 }
 0x301   :  { %v1949_v34 = vadd.f32 %v1948_v24, %v4885_v4 }
 0x302   :  { %v2089_v39 = vsel %vm2025_vm4, %v1892_v31, %v2057_v23  ;;  %v2060_v11 = vmul.f32 0.01, %v1993_v12  ;;  %vm2028_vm5 = vcmp.gt.f32.partialorder %v1993_v12, 0.0 }
 0x303   :  { %v2111_v40 = vpack.c.bf16 %v2089_v39, %v2087_v27 }
 0x304   :  { %v2092_v3 = vsel %vm2028_vm5, %v1993_v12, %v2060_v11 }
 0x305   :  { %v1894_v36 = vpop.f32.mrf.mxu3  ;;  %2279 = vmatmul.bf16.gmra.mxu2 %v2111_v40  ;;  %v1858_v40 = vadd.f32 %v1857_v16, %v4888_v38 }
 0x306   :  { %v1895_v7 = vadd.f32 %v1894_v36, %v1846_v2 }
 0x307   :  { %v1994_v1 = vpop.f32.mrf.mxu1 }
 0x308   :  { %v1995_v48 = vadd.f32 %v1994_v1, %v1946_v43  ;;  %v2059_v62 = vmul.f32 0.01, %v1895_v7  ;;  %vm2027_vm7 = vcmp.gt.f32.partialorder %v1895_v7, 0.0  ;;  %v1950_v52 = vpop.f32.mrf.mxu0 }
 0x309   :  { %v1951_v14 = vadd.f32 %v1950_v52, %v4885_v4 }
 0x30a   :  { %vm2030_vm6 = vcmp.gt.f32.partialorder %v1995_v48, 0.0  ;;  %v2062_v6 = vmul.f32 0.01, %v1995_v48  ;;  %v2091_v29 = vsel %vm2027_vm7, %v1895_v7, %v2059_v62 }
 0x30c   :  { %v2094_v28 = vsel %vm2030_vm6, %v1995_v48, %v2062_v6 }
 0x30d   :  { %v1896_v56 = vpop.f32.mrf.mxu3  ;;  %v2114_v19 = vpack.c.bf16 %v2094_v28, %v2092_v3 }
 0x30e   :  { %v1897_v32 = vadd.f32 %v1896_v56, %v1848_v22 }
 0x30f   :  { %v1997_v13 = vpop.f32.mrf.mxu1  ;;  %2333 = vmatmul.bf16.gmra.mxu3 %v2114_v19 }
 0x310   :  { %vm2029_vm8 = vcmp.gt.f32.partialorder %v1897_v32, 0.0  ;;  %v2061_v35 = vmul.f32 0.01, %v1897_v32  ;;  %v1998_v58 = vadd.f32 %v1997_v13, %v1949_v34  ;;  %v1953_v59 = vpop.f32.mrf.mxu0 }
 0x311   :  { %v1954_v57 = vadd.f32 %v1953_v59, %v4885_v4 }
 0x312   :  { %v2093_v18 = vsel %vm2029_vm8, %v1897_v32, %v2061_v35  ;;  %v2064_v9 = vmul.f32 0.01, %v1998_v58  ;;  %vm2032_vm9 = vcmp.gt.f32.partialorder %v1998_v58, 0.0 }
 0x313   :  { %v2113_v21 = vpack.c.bf16 %v2093_v18, %v2091_v29 }
 0x314   :  { %v2096_v42 = vsel %vm2032_vm9, %v1998_v58, %v2064_v9 }
 0x315   :  { %v1899_v8 = vpop.f32.mrf.mxu3  ;;  %2284 = vmatmul.bf16.gmra.mxu2 %v2113_v21 }
 0x316   :  { %v1900_v63 = vadd.f32 %v1899_v8, %v1851_v10 }
 0x317   :  { %v1999_v50 = vpop.f32.mrf.mxu1 }
 0x318   :  { %v2000_v47 = vadd.f32 %v1999_v50, %v1951_v14  ;;  %v2063_v25 = vmul.f32 0.01, %v1900_v63  ;;  %vm2031_vm11 = vcmp.gt.f32.partialorder %v1900_v63, 0.0  ;;  %v1955_v41 = vpop.f32.mrf.mxu0 }
 0x319   :  { %v1956_v17 = vadd.f32 %v1955_v41, %v4885_v4 }
 0x31a   :  { %vm2034_vm10 = vcmp.gt.f32.partialorder %v2000_v47, 0.0  ;;  %v2066_v51 = vmul.f32 0.01, %v2000_v47  ;;  %v2095_v55 = vsel %vm2031_vm11, %v1900_v63, %v2063_v25 }
 0x31c   :  { %v2098_v46 = vsel %vm2034_vm10, %v2000_v47, %v2066_v51 }
 0x31d   :  { %v1901_v44 = vpop.f32.mrf.mxu3  ;;  %v2116_v54 = vpack.c.bf16 %v2098_v46, %v2096_v42 }
 0x31e   :  { %v1902_v37 = vadd.f32 %v1901_v44, %v1853_v0 }
 0x31f   :  { %v2002_v60 = vpop.f32.mrf.mxu1  ;;  %2338 = vmatmul.bf16.gmra.mxu3 %v2116_v54 }
 0x320   :  { %vm2033_vm12 = vcmp.gt.f32.partialorder %v1902_v37, 0.0  ;;  %v2065_v15 = vmul.f32 0.01, %v1902_v37  ;;  %v2003_v26 = vadd.f32 %v2002_v60, %v1954_v57 }
 0x322   :  { %v2097_v45 = vsel %vm2033_vm12, %v1902_v37, %v2065_v15  ;;  %v2068_v23 = vmul.f32 0.01, %v2003_v26  ;;  %vm2036_vm13 = vcmp.gt.f32.partialorder %v2003_v26, 0.0 }
 0x323   :  { %v2115_v53 = vpack.c.bf16 %v2097_v45, %v2095_v55 }
 0x324   :  { %v2100_v12 = vsel %vm2036_vm13, %v2003_v26, %v2068_v23 }
 0x325   :  { %v1904_v20 = vpop.f32.mrf.mxu3  ;;  %2289 = vmatmul.bf16.gmra.mxu2 %v2115_v53 }
 0x326   :  { %v1905_v27 = vadd.f32 %v1904_v20, %v1856_v49 }
 0x327   :  { %v2004_v31 = vpop.f32.mrf.mxu1 }
 0x328   :  { %v2005_v61 = vadd.f32 %v2004_v31, %v1956_v17  ;;  %v2067_v1 = vmul.f32 0.01, %v1905_v27  ;;  %vm2035_vm15 = vcmp.gt.f32.partialorder %v1905_v27, 0.0 }
 0x32a   :  { %vm2038_vm14 = vcmp.gt.f32.partialorder %v2005_v61, 0.0  ;;  %v2070_v39 = vmul.f32 0.01, %v2005_v61  ;;  %v2099_v11 = vsel %vm2035_vm15, %v1905_v27, %v2067_v1 }
 0x32c   :  { %v2102_v24 = vsel %vm2038_vm14, %v2005_v61, %v2070_v39 }
 0x32d   :  { %v1906_v36 = vpop.f32.mrf.mxu3  ;;  %v2118_v43 = vpack.c.bf16 %v2102_v24, %v2100_v12 }
 0x32e   :  { %v1907_v2 = vadd.f32 %v1906_v36, %v1858_v40 }
 0x32f   :  { %2343 = vmatmul.bf16.gmra.mxu3 %v2118_v43 }
 0x330   :  { %vm2037_vm1 = vcmp.gt.f32.partialorder %v1907_v2, 0.0  ;;  %v2069_v4 = vmul.f32 0.01, %v1907_v2 }
 0x332   :  { %v2101_v48 = vsel %vm2037_vm1, %v1907_v2, %v2069_v4 }
 0x333   :  { %v2117_v7 = vpack.c.bf16 %v2101_v48, %v2099_v11 }
 0x335   :  { %2294 = vmatmul.bf16.gmra.mxu2 %v2117_v7 }
 0x342   :  { %v2309_v6 = vpop.f32.mrf.mxu3 }
 0x348   :  { %v2260_v38 = vpop.f32.mrf.mxu2 }
 0x349   :  { %v2261_v22 = vadd.f32 %v4924_v33, %v2260_v38 }
 0x34a   :  { %v2311_v3 = vpop.f32.mrf.mxu3 }
 0x34b   :  { %v2310_v28 = vadd.f32 %v2309_v6, %v2261_v22 }
 0x34d   :  { %vm2349_vm0 = vcmp.gt.f32.partialorder %v2310_v28, 0.0  ;;  %v2365_v56 = vmul.f32 0.01, %v2310_v28 }
 0x34f   :  { %v2381_v19 = vsel %vm2349_vm0, %v2310_v28, %v2365_v56 }
 0x350   :  { %2397 = vst [vmem:[#allocation2] sm:$0xff] %v2381_v19  ;;  %v2262_v62 = vpop.f32.mrf.mxu2 }
 0x351   :  { %v2263_v32 = vadd.f32 %v4924_v33, %v2262_v62 }
 0x352   :  { %v2314_v52 = vpop.f32.mrf.mxu3 }
 0x353   :  { %v2312_v13 = vadd.f32 %v2311_v3, %v2263_v32 }
 0x355   :  { %vm2350_vm2 = vcmp.gt.f32.partialorder %v2312_v13, 0.0  ;;  %v2366_v35 = vmul.f32 0.01, %v2312_v13 }
 0x357   :  { %v2382_v34 = vsel %vm2350_vm2, %v2312_v13, %v2366_v35 }
 0x358   :  { %2398 = vst [vmem:[#allocation2 + $0x8] sm:$0xff] %v2382_v34  ;;  %v2265_v29 = vpop.f32.mrf.mxu2 }
 0x359   :  { %v2266_v18 = vadd.f32 %v4924_v33, %v2265_v29 }
 0x35a   :  { %v2316_v21 = vpop.f32.mrf.mxu3 }
 0x35b   :  { %v2315_v58 = vadd.f32 %v2314_v52, %v2266_v18 }
 0x35d   :  { %vm2351_vm3 = vcmp.gt.f32.partialorder %v2315_v58, 0.0  ;;  %v2367_v5 = vmul.f32 0.01, %v2315_v58 }
 0x35f   :  { %v2383_v8 = vsel %vm2351_vm3, %v2315_v58, %v2367_v5 }
 0x360   :  { %2399 = vst [vmem:[#allocation2 + $0x10] sm:$0xff] %v2383_v8  ;;  %v2267_v14 = vpop.f32.mrf.mxu2 }
 0x361   :  { %v2268_v50 = vadd.f32 %v4924_v33, %v2267_v14 }
 0x362   :  { %v2319_v10 = vpop.f32.mrf.mxu3 }
 0x363   :  { %v2317_v9 = vadd.f32 %v2316_v21, %v2268_v50 }
 0x365   :  { %vm2352_vm4 = vcmp.gt.f32.partialorder %v2317_v9, 0.0  ;;  %v2368_v47 = vmul.f32 0.01, %v2317_v9 }
 0x367   :  { %v2384_v59 = vsel %vm2352_vm4, %v2317_v9, %v2368_v47 }
 0x368   :  { %2400 = vst [vmem:[#allocation2 + $0x18] sm:$0xff] %v2384_v59  ;;  %v2270_v63 = vpop.f32.mrf.mxu2 }
 0x369   :  { %v2271_v51 = vadd.f32 %v4924_v33, %v2270_v63 }
 0x36a   :  { %v2321_v0 = vpop.f32.mrf.mxu3 }
 0x36b   :  { %v2320_v42 = vadd.f32 %v2319_v10, %v2271_v51 }
 0x36d   :  { %vm2353_vm5 = vcmp.gt.f32.partialorder %v2320_v42, 0.0  ;;  %v2369_v46 = vmul.f32 0.01, %v2320_v42 }
 0x36f   :  { %v2385_v44 = vsel %vm2353_vm5, %v2320_v42, %v2369_v46 }
 0x370   :  { %2401 = vst [vmem:[#allocation2 + $0x20] sm:$0xff] %v2385_v44  ;;  %v2272_v54 = vpop.f32.mrf.mxu2 }
 0x371   :  { %v2273_v25 = vadd.f32 %v4924_v33, %v2272_v54 }
 0x372   :  { %v2324_v37 = vpop.f32.mrf.mxu3 }
 0x373   :  { %v2322_v30 = vadd.f32 %v2321_v0, %v2273_v25 }
 0x375   :  { %vm2354_vm6 = vcmp.gt.f32.partialorder %v2322_v30, 0.0  ;;  %v2370_v60 = vmul.f32 0.01, %v2322_v30 }
 0x377   :  { %v2386_v15 = vsel %vm2354_vm6, %v2322_v30, %v2370_v60 }
 0x378   :  { %2402 = vst [vmem:[#allocation2 + $0x28] sm:$0xff] %v2386_v15  ;;  %v2275_v57 = vpop.f32.mrf.mxu2 }
 0x379   :  { %v2276_v55 = vadd.f32 %v4924_v33, %v2275_v57 }
 0x37a   :  { %v2326_v45 = vpop.f32.mrf.mxu3 }
 0x37b   :  { %v2325_v41 = vadd.f32 %v2324_v37, %v2276_v55 }
 0x37d   :  { %vm2355_vm7 = vcmp.gt.f32.partialorder %v2325_v41, 0.0  ;;  %v2371_v53 = vmul.f32 0.01, %v2325_v41 }
 0x37f   :  { %v2387_v26 = vsel %vm2355_vm7, %v2325_v41, %v2371_v53 }
 0x380   :  { %2403 = vst [vmem:[#allocation2 + $0x30] sm:$0xff] %v2387_v26  ;;  %v2277_v20 = vpop.f32.mrf.mxu2 }
 0x381   :  { %v2278_v17 = vadd.f32 %v4924_v33, %v2277_v20 }
 0x382   :  { %v2329_v31 = vpop.f32.mrf.mxu3 }
 0x383   :  { %v2327_v49 = vadd.f32 %v2326_v45, %v2278_v17 }
 0x385   :  { %vm2356_vm8 = vcmp.gt.f32.partialorder %v2327_v49, 0.0  ;;  %v2372_v23 = vmul.f32 0.01, %v2327_v49 }
 0x387   :  { %v2388_v61 = vsel %vm2356_vm8, %v2327_v49, %v2372_v23 }
 0x388   :  { %2404 = vst [vmem:[#allocation2 + $0x38] sm:$0xff] %v2388_v61  ;;  %v2280_v16 = vpop.f32.mrf.mxu2 }
 0x389   :  { %v2281_v27 = vadd.f32 %v4924_v33, %v2280_v16 }
 0x38a   :  { %v2331_v39 = vpop.f32.mrf.mxu3 }
 0x38b   :  { %v2330_v40 = vadd.f32 %v2329_v31, %v2281_v27 }
 0x38d   :  { %vm2357_vm9 = vcmp.gt.f32.partialorder %v2330_v40, 0.0  ;;  %v2373_v12 = vmul.f32 0.01, %v2330_v40 }
 0x38f   :  { %v2389_v24 = vsel %vm2357_vm9, %v2330_v40, %v2373_v12 }
 0x390   :  { %2405 = vst [vmem:[#allocation2 + $0x40] sm:$0xff] %v2389_v24  ;;  %v2282_v36 = vpop.f32.mrf.mxu2 }
 0x391   :  { %v2283_v43 = vadd.f32 %v4924_v33, %v2282_v36 }
 0x392   :  { %v2334_v1 = vpop.f32.mrf.mxu3 }
 0x393   :  { %v2332_v2 = vadd.f32 %v2331_v39, %v2283_v43 }
 0x395   :  { %vm2358_vm10 = vcmp.gt.f32.partialorder %v2332_v2, 0.0  ;;  %v2374_v4 = vmul.f32 0.01, %v2332_v2 }
 0x397   :  { %v2390_v11 = vsel %vm2358_vm10, %v2332_v2, %v2374_v4 }
 0x398   :  { %2406 = vst [vmem:[#allocation2 + $0x48] sm:$0xff] %v2390_v11  ;;  %v2285_v48 = vpop.f32.mrf.mxu2 }
 0x399   :  { %v2286_v7 = vadd.f32 %v4924_v33, %v2285_v48 }
 0x39a   :  { %v2336_v6 = vpop.f32.mrf.mxu3 }
 0x39b   :  { %v2335_v38 = vadd.f32 %v2334_v1, %v2286_v7 }
 0x39d   :  { %vm2359_vm11 = vcmp.gt.f32.partialorder %v2335_v38, 0.0  ;;  %v2375_v22 = vmul.f32 0.01, %v2335_v38 }
 0x39f   :  { %v2391_v3 = vsel %vm2359_vm11, %v2335_v38, %v2375_v22 }
 0x3a0   :  { %2407 = vst [vmem:[#allocation2 + $0x50] sm:$0xff] %v2391_v3  ;;  %v2287_v28 = vpop.f32.mrf.mxu2 }
 0x3a1   :  { %v2288_v56 = vadd.f32 %v4924_v33, %v2287_v28 }
 0x3a2   :  { %v2339_v62 = vpop.f32.mrf.mxu3 }
 0x3a3   :  { %v2337_v19 = vadd.f32 %v2336_v6, %v2288_v56 }
 0x3a5   :  { %vm2360_vm12 = vcmp.gt.f32.partialorder %v2337_v19, 0.0  ;;  %v2376_v32 = vmul.f32 0.01, %v2337_v19 }
 0x3a7   :  { %v2392_v52 = vsel %vm2360_vm12, %v2337_v19, %v2376_v32 }
 0x3a8   :  { %2408 = vst [vmem:[#allocation2 + $0x58] sm:$0xff] %v2392_v52  ;;  %v2290_v13 = vpop.f32.mrf.mxu2 }
 0x3a9   :  { %v2291_v35 = vadd.f32 %v4924_v33, %v2290_v13 }
 0x3aa   :  { %v2341_v18 = vpop.f32.mrf.mxu3 }
 0x3ab   :  { %v2340_v34 = vadd.f32 %v2339_v62, %v2291_v35 }
 0x3ad   :  { %vm2361_vm13 = vcmp.gt.f32.partialorder %v2340_v34, 0.0  ;;  %v2377_v29 = vmul.f32 0.01, %v2340_v34 }
 0x3af   :  { %v2393_v21 = vsel %vm2361_vm13, %v2340_v34, %v2377_v29 }
 0x3b0   :  { %2409 = vst [vmem:[#allocation2 + $0x60] sm:$0xff] %v2393_v21  ;;  %v2292_v58 = vpop.f32.mrf.mxu2 }
 0x3b1   :  { %v2293_v5 = vadd.f32 %v4924_v33, %v2292_v58 }
 0x3b2   :  { %v2344_v10 = vpop.f32.mrf.mxu3 }
 0x3b3   :  { %v2342_v8 = vadd.f32 %v2341_v18, %v2293_v5 }
 0x3b5   :  { %vm2362_vm14 = vcmp.gt.f32.partialorder %v2342_v8, 0.0  ;;  %v2378_v14 = vmul.f32 0.01, %v2342_v8 }
 0x3b7   :  { %v2394_v50 = vsel %vm2362_vm14, %v2342_v8, %v2378_v14 }
 0x3b8   :  { %2410 = vst [vmem:[#allocation2 + $0x68] sm:$0xff] %v2394_v50  ;;  %v2295_v9 = vpop.f32.mrf.mxu2 }
 0x3b9   :  { %v2296_v47 = vadd.f32 %v4924_v33, %v2295_v9 }
 0x3ba   :  { %v2346_v46 = vpop.f32.mrf.mxu3 }
 0x3bb   :  { %v2345_v59 = vadd.f32 %v2344_v10, %v2296_v47 }
 0x3bd   :  { %vm2363_vm15 = vcmp.gt.f32.partialorder %v2345_v59, 0.0  ;;  %v2379_v63 = vmul.f32 0.01, %v2345_v59 }
 0x3bf   :  { %v2395_v51 = vsel %vm2363_vm15, %v2345_v59, %v2379_v63 }
 0x3c0   :  { %2411 = vst [vmem:[#allocation2 + $0x70] sm:$0xff] %v2395_v51  ;;  %v2297_v0 = vpop.f32.mrf.mxu2 }
 0x3c1   :  { %v2298_v42 = vadd.f32 %v4924_v33, %v2297_v0 }
 0x3c3   :  { %v2347_v44 = vadd.f32 %v2346_v46, %v2298_v42 }
 0x3c5   :  { %vm2364_vm1 = vcmp.gt.f32.partialorder %v2347_v44, 0.0  ;;  %v2380_v54 = vmul.f32 0.01, %v2347_v44 }
 0x3c7   :  { %v2396_v25 = vsel %vm2364_vm1, %v2347_v44, %v2380_v54 }
 0x3c8   :  { %2412 = vst [vmem:[#allocation2 + $0x78] sm:$0xff] %v2396_v25 }
 0x3c9   :  { %2425 = dma.vmem_to_hbm [thread:$0]  %s2418_s26, 2048, %s2420_s29, [#allocation3], %s3209_s30, %s3209_s30, %s3210_s8  }
 0x3ca   :  { %3206 = dma.done.wait [#allocation3], 2048  }
 0x3cb   :  { %3207 = vsyncadd [#allocation3], 4294965248 }
 0x3cc   :  { %2430 = vsyncpa [#allocation3], 1 }

// kernel: tpu_custom_call.1
= control target key start
LH: loop header
LB: loop body
LE: loop exit
PB: predicated region body
PF: predicated region fallthrough
CT: control target
= control target key end

     0   :  { %s4945_s0 = inlined_call_operand.vmem [shape: f32[128,784], index: 0, kind: input, shape index: {}]   ;;  %s4946_s1 = inlined_call_operand.vmem [shape: bf16[784,256], index: 1, kind: input, shape index: {}]   ;;  %s4947_s2 = inlined_call_operand.vmem [shape: f32[1,256], index: 2, kind: input, shape index: {}]   ;;  %s4948_s3 = inlined_call_operand.vmem [shape: bf16[256,256], index: 3, kind: input, shape index: {}]   ;;  %s4949_s4 = inlined_call_operand.vmem [shape: f32[1,256], index: 4, kind: input, shape index: {}]   ;;  %s4950_s5 = inlined_call_operand.vmem [shape: bf16[256,128], index: 5, kind: input, shape index: {}]   ;;  %s4951_s6 = inlined_call_operand.vmem [shape: f32[1,128], index: 6, kind: input, shape index: {}]   ;;  %s4952_s7 = inlined_call_operand.hbm [shape: f32[128,128], index: 7, kind: output, shape index: {}]  }
   0x1   :  { %v2489_v0 = vld [vmem:[%s4946_s1 + $0x70] sm:$0xf]  ;;  %v3046_v1 = vld [vmem:[%s4946_s1 + $0x74] sm:$0xf0]  ;;  %v2481_v11 = vld [vmem:[%s4946_s1 + $0x60] sm:$0xf] }
   0x2   :  { %v2553_v2 = vld [vmem:[%s4946_s1 + $0xf0] sm:$0xf]  ;;  %v2490_v3 = vor.u32 %v3046_v1, %v2489_v0  ;;  %v3062_v4 = vld [vmem:[%s4946_s1 + $0xf4] sm:$0xf0]  ;;  %v3044_v13 = vld [vmem:[%s4946_s1 + $0x64] sm:$0xf0] }
   0x3   :  { %v2617_v5 = vld [vmem:[%s4946_s1 + $0x170] sm:$0xf]  ;;  %v3078_v6 = vld [vmem:[%s4946_s1 + $0x174] sm:$0xf0]  ;;  %v2554_v7 = vor.u32 %v3062_v4, %v2553_v2  ;;  %v2545_v14 = vld [vmem:[%s4946_s1 + $0xe0] sm:$0xf]  ;;  %v2482_v16 = vor.u32 %v3044_v13, %v2481_v11 }
   0x4   :  { %v2618_v8 = vor.u32 %v3078_v6, %v2617_v5  ;;  %v2681_v9 = vld [vmem:[%s4946_s1 + $0x1f0] sm:$0xf]  ;;  %v3094_v10 = vld [vmem:[%s4946_s1 + $0x1f4] sm:$0xf0]  ;;  %815 = vmatpush.bf16.msra.mxu0 %v2490_v3  ;;  %v3060_v15 = vld [vmem:[%s4946_s1 + $0xe4] sm:$0xf0] }
   0x5   :  { %v2682_v12 = vor.u32 %v3094_v10, %v2681_v9  ;;  %864 = vmatpush.bf16.msra.mxu1 %v2554_v7  ;;  %v2546_v17 = vor.u32 %v3060_v15, %v2545_v14  ;;  %v2609_v18 = vld [vmem:[%s4946_s1 + $0x160] sm:$0xf]  ;;  %v3076_v19 = vld [vmem:[%s4946_s1 + $0x164] sm:$0xf0]  ;;  %v2473_v23 = vld [vmem:[%s4946_s1 + $0x50] sm:$0xf] }
   0x6   :  { %913 = vmatpush.bf16.msra.mxu2 %v2618_v8  ;;  %v2673_v20 = vld [vmem:[%s4946_s1 + $0x1e0] sm:$0xf]  ;;  %v2610_v21 = vor.u32 %v3076_v19, %v2609_v18  ;;  %v3092_v22 = vld [vmem:[%s4946_s1 + $0x1e4] sm:$0xf0]  ;;  %v3042_v24 = vld [vmem:[%s4946_s1 + $0x54] sm:$0xf0] }
   0x7   :  { %962 = vmatpush.bf16.msra.mxu3 %v2682_v12  ;;  %v2674_v25 = vor.u32 %v3092_v22, %v2673_v20  ;;  %v2537_v26 = vld [vmem:[%s4946_s1 + $0xd0] sm:$0xf]  ;;  %v3058_v27 = vld [vmem:[%s4946_s1 + $0xd4] sm:$0xf0]  ;;  %v2474_v29 = vor.u32 %v3042_v24, %v2473_v23  ;;  %v2465_v35 = vld [vmem:[%s4946_s1 + $0x40] sm:$0xf] }
   0x8   :  { %v2601_v28 = vld [vmem:[%s4946_s1 + $0x150] sm:$0xf]  ;;  %816 = vmatpush.bf16.msra.mxu0 %v2482_v16  ;;  %v3074_v30 = vld [vmem:[%s4946_s1 + $0x154] sm:$0xf0]  ;;  %v2538_v33 = vor.u32 %v3058_v27, %v2537_v26  ;;  %v3040_v36 = vld [vmem:[%s4946_s1 + $0x44] sm:$0xf0] }
   0x9   :  { %v2665_v31 = vld [vmem:[%s4946_s1 + $0x1d0] sm:$0xf]  ;;  %v3090_v32 = vld [vmem:[%s4946_s1 + $0x1d4] sm:$0xf0]  ;;  %865 = vmatpush.bf16.msra.mxu1 %v2546_v17  ;;  %v2602_v34 = vor.u32 %v3074_v30, %v2601_v28  ;;  %v2529_v37 = vld [vmem:[%s4946_s1 + $0xc0] sm:$0xf]  ;;  %v2466_v44 = vor.u32 %v3040_v36, %v2465_v35 }
   0xa   :  { %914 = vmatpush.bf16.msra.mxu2 %v2610_v21  ;;  %v2666_v38 = vor.u32 %v3090_v32, %v2665_v31  ;;  %v3056_v39 = vld [vmem:[%s4946_s1 + $0xc4] sm:$0xf0]  ;;  %v2593_v40 = vld [vmem:[%s4946_s1 + $0x140] sm:$0xf]  ;;  %v2457_v47 = vld [vmem:[%s4946_s1 + $0x30] sm:$0xf] }
   0xb   :  { %963 = vmatpush.bf16.msra.mxu3 %v2674_v25  ;;  %v3072_v41 = vld [vmem:[%s4946_s1 + $0x144] sm:$0xf0]  ;;  %v2657_v42 = vld [vmem:[%s4946_s1 + $0x1c0] sm:$0xf]  ;;  %v2530_v45 = vor.u32 %v3056_v39, %v2529_v37  ;;  %v3038_v48 = vld [vmem:[%s4946_s1 + $0x34] sm:$0xf0] }
   0xc   :  { %v3088_v43 = vld [vmem:[%s4946_s1 + $0x1c4] sm:$0xf0]  ;;  %817 = vmatpush.bf16.msra.mxu0 %v2474_v29  ;;  %v2594_v46 = vor.u32 %v3072_v41, %v2593_v40  ;;  %v2521_v49 = vld [vmem:[%s4946_s1 + $0xb0] sm:$0xf]  ;;  %v3054_v51 = vld [vmem:[%s4946_s1 + $0xb4] sm:$0xf0]  ;;  %v2458_v56 = vor.u32 %v3038_v48, %v2457_v47 }
   0xd   :  { %866 = vmatpush.bf16.msra.mxu1 %v2538_v33  ;;  %v2658_v50 = vor.u32 %v3088_v43, %v2657_v42  ;;  %v2585_v52 = vld [vmem:[%s4946_s1 + $0x130] sm:$0xf]  ;;  %v3070_v53 = vld [vmem:[%s4946_s1 + $0x134] sm:$0xf0]  ;;  %v2522_v57 = vor.u32 %v3054_v51, %v2521_v49  ;;  %v2449_v59 = vld [vmem:[%s4946_s1 + $0x20] sm:$0xf] }
   0xe   :  { %915 = vmatpush.bf16.msra.mxu2 %v2602_v34  ;;  %v2649_v54 = vld [vmem:[%s4946_s1 + $0x1b0] sm:$0xf]  ;;  %v3086_v55 = vld [vmem:[%s4946_s1 + $0x1b4] sm:$0xf0]  ;;  %v2586_v58 = vor.u32 %v3070_v53, %v2585_v52  ;;  %v3036_v60 = vld [vmem:[%s4946_s1 + $0x24] sm:$0xf0] }
   0xf   :  { %964 = vmatpush.bf16.msra.mxu3 %v2666_v38  ;;  %v2513_v61 = vld [vmem:[%s4946_s1 + $0xa0] sm:$0xf]  ;;  %v2650_v62 = vor.u32 %v3086_v55, %v2649_v54  ;;  %v3052_v63 = vld [vmem:[%s4946_s1 + $0xa4] sm:$0xf0]  ;;  %v2450_v4 = vor.u32 %v3036_v60, %v2449_v59  ;;  %v2441_v7 = vld [vmem:[%s4946_s1 + $0x10] sm:$0xf] }
  0x10   :  { %818 = vmatpush.bf16.msra.mxu0 %v2466_v44  ;;  %v2577_v0 = vld [vmem:[%s4946_s1 + $0x120] sm:$0xf]  ;;  %v3068_v1 = vld [vmem:[%s4946_s1 + $0x124] sm:$0xf0]  ;;  %v2514_v5 = vor.u32 %v3052_v63, %v2513_v61  ;;  %v3034_v8 = vld [vmem:[%s4946_s1 + $0x14] sm:$0xf0] }
  0x11   :  { %867 = vmatpush.bf16.msra.mxu1 %v2530_v45  ;;  %v2641_v2 = vld [vmem:[%s4946_s1 + $0x1a0] sm:$0xf]  ;;  %v3084_v3 = vld [vmem:[%s4946_s1 + $0x1a4] sm:$0xf0]  ;;  %v2578_v6 = vor.u32 %v3068_v1, %v2577_v0  ;;  %v2505_v9 = vld [vmem:[%s4946_s1 + $0x90] sm:$0xf]  ;;  %v2442_v16 = vor.u32 %v3034_v8, %v2441_v7 }
  0x12   :  { %916 = vmatpush.bf16.msra.mxu2 %v2594_v46  ;;  %v2642_v10 = vor.u32 %v3084_v3, %v2641_v2  ;;  %v3050_v11 = vld [vmem:[%s4946_s1 + $0x94] sm:$0xf0]  ;;  %v2569_v12 = vld [vmem:[%s4946_s1 + $0x110] sm:$0xf]  ;;  %v2433_v17 = vld [vmem:[%s4946_s1] sm:$0xf] }
  0x13   :  { %965 = vmatpush.bf16.msra.mxu3 %v2658_v50  ;;  %v3066_v13 = vld [vmem:[%s4946_s1 + $0x114] sm:$0xf0]  ;;  %v2633_v14 = vld [vmem:[%s4946_s1 + $0x190] sm:$0xf]  ;;  %v3032_v18 = vld [vmem:[%s4946_s1 + $0x4] sm:$0xf0]  ;;  %v2506_v20 = vor.u32 %v3050_v11, %v2505_v9 }
  0x14   :  { %819 = vmatpush.bf16.msra.mxu0 %v2458_v56  ;;  %v3082_v15 = vld [vmem:[%s4946_s1 + $0x194] sm:$0xf0]  ;;  %v2497_v19 = vld [vmem:[%s4946_s1 + $0x80] sm:$0xf]  ;;  %v2570_v21 = vor.u32 %v3066_v13, %v2569_v12  ;;  %v3048_v22 = vld [vmem:[%s4946_s1 + $0x84] sm:$0xf0]  ;;  %v2434_v32 = vor.u32 %v3032_v18, %v2433_v17 }
  0x15   :  { %868 = vmatpush.bf16.msra.mxu1 %v2522_v57  ;;  %v2561_v23 = vld [vmem:[%s4946_s1 + $0x100] sm:$0xf]  ;;  %v3064_v24 = vld [vmem:[%s4946_s1 + $0x104] sm:$0xf0]  ;;  %v2634_v25 = vor.u32 %v3082_v15, %v2633_v14  ;;  %v35_v29 = vld [vmem:[%s4945_s0 + $0x38] sm:$0xff]  ;;  %v2498_v36 = vor.u32 %v3048_v22, %v2497_v19 }
  0x16   :  { %917 = vmatpush.bf16.msra.mxu2 %v2586_v58  ;;  %v2625_v26 = vld [vmem:[%s4946_s1 + $0x180] sm:$0xf]  ;;  %v3080_v27 = vld [vmem:[%s4946_s1 + $0x184] sm:$0xf0]  ;;  %v2745_v30 = vld [vmem:[%s4946_s1 + $0x270] sm:$0xf]  ;;  %v2562_v37 = vor.u32 %v3064_v24, %v2561_v23 }
  0x17   :  { %966 = vmatpush.bf16.msra.mxu3 %v2650_v62  ;;  %v28_v28 = vld [vmem:[%s4945_s0] sm:$0xff]  ;;  %v3110_v31 = vld [vmem:[%s4946_s1 + $0x274] sm:$0xf0]  ;;  %v29_v33 = vld [vmem:[%s4945_s0 + $0x8] sm:$0xff]  ;;  %v2626_v41 = vor.u32 %v3080_v27, %v2625_v26 }
  0x18   :  { %820 = vmatpush.bf16.msra.mxu0 %v2450_v4  ;;  %v2809_v34 = vld [vmem:[%s4946_s1 + $0x2f0] sm:$0xf]  ;;  %v3126_v35 = vld [vmem:[%s4946_s1 + $0x2f4] sm:$0xf0]  ;;  %v36_v38 = vld [vmem:[%s4945_s0 + $0x40] sm:$0xff]  ;;  %v2746_v42 = vor.u32 %v3110_v31, %v2745_v30  ;;  %v3482_v46 = vpack.c.bf16 %v35_v29, %v28_v28 }
  0x19   :  { %869 = vmatpush.bf16.msra.mxu1 %v2514_v5  ;;  %v30_v39 = vld [vmem:[%s4945_s0 + $0x10] sm:$0xff]  ;;  %v37_v40 = vld [vmem:[%s4945_s0 + $0x48] sm:$0xff]  ;;  %v31_v43 = vld [vmem:[%s4945_s0 + $0x18] sm:$0xff]  ;;  %v2810_v47 = vor.u32 %v3126_v35, %v2809_v34 }
  0x1a   :  { %918 = vmatpush.bf16.msra.mxu2 %v2578_v6  ;;  %v38_v44 = vld [vmem:[%s4945_s0 + $0x50] sm:$0xff]  ;;  %v2737_v45 = vld [vmem:[%s4946_s1 + $0x260] sm:$0xf]  ;;  %v3108_v48 = vld [vmem:[%s4946_s1 + $0x264] sm:$0xf0] }
  0x1b   :  { %967 = vmatpush.bf16.msra.mxu3 %v2642_v10 }
  0x1c   :  { %821 = vmatpush.bf16.msra.mxu0 %v2442_v16 }
  0x1d   :  { %870 = vmatpush.bf16.msra.mxu1 %v2506_v20 }
  0x1e   :  { %919 = vmatpush.bf16.msra.mxu2 %v2570_v21 }
  0x1f   :  { %968 = vmatpush.bf16.msra.mxu3 %v2634_v25 }
  0x20   :  { %12 = vsyncpa [#allocation3], 0  ;;  %822 = vmatpush.bf16.msra.mxu0 %v2434_v32  ;;  %v3487_v49 = vpack.c.bf16 %v36_v38, %v29_v33  ;;  %v3489_v50 = vpack.c.bf16 %v37_v40, %v30_v39  ;;  %v2801_v51 = vld [vmem:[%s4946_s1 + $0x2e0] sm:$0xf]  ;;  %v3124_v52 = vld [vmem:[%s4946_s1 + $0x2e4] sm:$0xf0]  ;;  %v3497_v53 = vpack.c.bf16 %v38_v44, %v31_v43  ;;  %v2738_v54 = vor.u32 %v3108_v48, %v2737_v45 }
  0x21   :  { %871 = vmatpush.bf16.msra.mxu1 %v2498_v36  ;;  %v2802_v55 = vor.u32 %v3124_v52, %v2801_v51  ;;  %v2729_v56 = vld [vmem:[%s4946_s1 + $0x250] sm:$0xf]  ;;  %v3106_v57 = vld [vmem:[%s4946_s1 + $0x254] sm:$0xf0]  ;;  %v49_v63 = vld [vmem:[%s4945_s0 + $0xa8] sm:$0xff]  ;;  %vm790_vm0 = vcmask 130048  }
  0x22   :  { %920 = vmatpush.bf16.msra.mxu2 %v2562_v37  ;;  %v2793_v58 = vld [vmem:[%s4946_s1 + $0x2d0] sm:$0xf]  ;;  %v3122_v59 = vld [vmem:[%s4946_s1 + $0x2d4] sm:$0xf0]  ;;  %v2730_v60 = vor.u32 %v3106_v57, %v2729_v56  ;;  %v44_v2 = vld [vmem:[%s4945_s0 + $0x80] sm:$0xff]  ;;  %s2419_s29 = sshll.u32 %s4952_s7, 4  ;;  %s2420_s29 = int_to_ptr.hbm [resolvable:$true] %s2419_s29 }
  0x23   :  { %969 = vmatpush.bf16.msra.mxu3 %v2626_v41  ;;  %823 = vmatmul.bf16.vlgmr.msra.gmra.mxu0 %v3482_v46  ;;  %v2794_v61 = vor.u32 %v3122_v59, %v2793_v58  ;;  %v42_v62 = vld [vmem:[%s4945_s0 + $0x70] sm:$0xff]  ;;  %v43_v0 = vld [vmem:[%s4945_s0 + $0x78] sm:$0xff]  ;;  %v45_v4 = vld [vmem:[%s4945_s0 + $0x88] sm:$0xff]  ;;  %s3209_s30 = smov 128   ;;  %s3210_s8 = smov 8  }
  0x24   :  { %1011 = vmatpush.bf16.msrb.mxu0 %v2746_v42  ;;  %872 = vmatmul.bf16.vlgmr.msra.gmra.mxu1 %v3487_v49  ;;  %v50_v1 = vld [vmem:[%s4945_s0 + $0xb0] sm:$0xff]  ;;  %v51_v3 = vld [vmem:[%s4945_s0 + $0xb8] sm:$0xff]  ;;  %v52_v5 = vld [vmem:[%s4945_s0 + $0xc0] sm:$0xff]  ;;  %v3539_v6 = vpack.c.bf16 %v49_v63, %v42_v62 }
  0x25   :  { %1060 = vmatpush.bf16.msrb.mxu1 %v2810_v47  ;;  %921 = vmatmul.bf16.vlgmr.msra.gmra.mxu2 %v3489_v50  ;;  %v3541_v7 = vpack.c.bf16 %v50_v1, %v43_v0  ;;  %v3543_v8 = vpack.c.bf16 %v51_v3, %v44_v2  ;;  %v3545_v9 = vpack.c.bf16 %v52_v5, %v45_v4  ;;  %v2721_v10 = vld [vmem:[%s4946_s1 + $0x240] sm:$0xf]  ;;  %v3104_v11 = vld [vmem:[%s4946_s1 + $0x244] sm:$0xf0]  ;;  %v63_v17 = vld [vmem:[%s4945_s0 + $0x118] sm:$0xff] }
  0x26   :  { %970 = vmatmul.bf16.vlgmr.msra.gmra.mxu3 %v3497_v53  ;;  %v2722_v12 = vor.u32 %v3104_v11, %v2721_v10  ;;  %v2785_v13 = vld [vmem:[%s4946_s1 + $0x2c0] sm:$0xf]  ;;  %v3120_v14 = vld [vmem:[%s4946_s1 + $0x2c4] sm:$0xf0]  ;;  %v58_v20 = vld [vmem:[%s4945_s0 + $0xf0] sm:$0xff] }
  0x27   :  { %v2786_v15 = vor.u32 %v3120_v14, %v2785_v13  ;;  %v56_v16 = vld [vmem:[%s4945_s0 + $0xe0] sm:$0xff]  ;;  %v57_v18 = vld [vmem:[%s4945_s0 + $0xe8] sm:$0xff]  ;;  %v59_v22 = vld [vmem:[%s4945_s0 + $0xf8] sm:$0xff] }
  0x28   :  { %1012 = vmatpush.bf16.msrb.mxu0 %v2738_v54  ;;  %v64_v19 = vld [vmem:[%s4945_s0 + $0x120] sm:$0xff]  ;;  %v65_v21 = vld [vmem:[%s4945_s0 + $0x128] sm:$0xff]  ;;  %v66_v23 = vld [vmem:[%s4945_s0 + $0x130] sm:$0xff]  ;;  %v3587_v24 = vpack.c.bf16 %v63_v17, %v56_v16 }
  0x29   :  { %1061 = vmatpush.bf16.msrb.mxu1 %v2802_v55  ;;  %v3589_v25 = vpack.c.bf16 %v64_v19, %v57_v18  ;;  %v3591_v26 = vpack.c.bf16 %v65_v21, %v58_v20  ;;  %v3593_v27 = vpack.c.bf16 %v66_v23, %v59_v22  ;;  %v2713_v28 = vld [vmem:[%s4946_s1 + $0x230] sm:$0xf]  ;;  %v3102_v29 = vld [vmem:[%s4946_s1 + $0x234] sm:$0xf0]  ;;  %v77_v35 = vld [vmem:[%s4945_s0 + $0x188] sm:$0xff] }
  0x2a   :  { %v2714_v30 = vor.u32 %v3102_v29, %v2713_v28  ;;  %v2777_v31 = vld [vmem:[%s4946_s1 + $0x2b0] sm:$0xf]  ;;  %v3118_v32 = vld [vmem:[%s4946_s1 + $0x2b4] sm:$0xf0]  ;;  %v72_v38 = vld [vmem:[%s4945_s0 + $0x160] sm:$0xff] }
  0x2b   :  { %v2778_v33 = vor.u32 %v3118_v32, %v2777_v31  ;;  %v70_v34 = vld [vmem:[%s4945_s0 + $0x150] sm:$0xff]  ;;  %v71_v36 = vld [vmem:[%s4945_s0 + $0x158] sm:$0xff]  ;;  %v73_v40 = vld [vmem:[%s4945_s0 + $0x168] sm:$0xff] }
  0x2c   :  { %1013 = vmatpush.bf16.msrb.mxu0 %v2730_v60  ;;  %v78_v37 = vld [vmem:[%s4945_s0 + $0x190] sm:$0xff]  ;;  %v79_v39 = vld [vmem:[%s4945_s0 + $0x198] sm:$0xff]  ;;  %v80_v41 = vld [vmem:[%s4945_s0 + $0x1a0] sm:$0xff]  ;;  %v3635_v42 = vpack.c.bf16 %v77_v35, %v70_v34 }
  0x2d   :  { %1062 = vmatpush.bf16.msrb.mxu1 %v2794_v61  ;;  %v3637_v43 = vpack.c.bf16 %v78_v37, %v71_v36  ;;  %v3639_v44 = vpack.c.bf16 %v79_v39, %v72_v38  ;;  %v3641_v45 = vpack.c.bf16 %v80_v41, %v73_v40  ;;  %v2705_v47 = vld [vmem:[%s4946_s1 + $0x220] sm:$0xf]  ;;  %v3100_v48 = vld [vmem:[%s4946_s1 + $0x224] sm:$0xf0]  ;;  %v91_v57 = vld [vmem:[%s4945_s0 + $0x1f8] sm:$0xff] }
  0x2e   :  { %v2706_v51 = vor.u32 %v3100_v48, %v2705_v47  ;;  %v2769_v52 = vld [vmem:[%s4946_s1 + $0x2a0] sm:$0xf]  ;;  %v3116_v54 = vld [vmem:[%s4946_s1 + $0x2a4] sm:$0xf0]  ;;  %v86_v60 = vld [vmem:[%s4945_s0 + $0x1d0] sm:$0xff] }
  0x2f   :  { %v2770_v55 = vor.u32 %v3116_v54, %v2769_v52  ;;  %v84_v56 = vld [vmem:[%s4945_s0 + $0x1c0] sm:$0xff]  ;;  %v85_v58 = vld [vmem:[%s4945_s0 + $0x1c8] sm:$0xff]  ;;  %v87_v62 = vld [vmem:[%s4945_s0 + $0x1d8] sm:$0xff] }
  0x30   :  { %1014 = vmatpush.bf16.msrb.mxu0 %v2722_v12  ;;  %v92_v59 = vld [vmem:[%s4945_s0 + $0x200] sm:$0xff]  ;;  %v93_v61 = vld [vmem:[%s4945_s0 + $0x208] sm:$0xff]  ;;  %v94_v63 = vld [vmem:[%s4945_s0 + $0x210] sm:$0xff]  ;;  %v3683_v0 = vpack.c.bf16 %v91_v57, %v84_v56 }
  0x31   :  { %1063 = vmatpush.bf16.msrb.mxu1 %v2786_v15  ;;  %v3685_v1 = vpack.c.bf16 %v92_v59, %v85_v58  ;;  %v3687_v2 = vpack.c.bf16 %v93_v61, %v86_v60  ;;  %v3689_v3 = vpack.c.bf16 %v94_v63, %v87_v62  ;;  %v2697_v4 = vld [vmem:[%s4946_s1 + $0x210] sm:$0xf]  ;;  %v3098_v5 = vld [vmem:[%s4946_s1 + $0x214] sm:$0xf0]  ;;  %v3045_v10 = vld [vmem:[%s4946_s1 + $0x74] sm:$0xf] }
  0x32   :  { %v2698_v11 = vor.u32 %v3098_v5, %v2697_v4  ;;  %v2761_v12 = vld [vmem:[%s4946_s1 + $0x290] sm:$0xf]  ;;  %v3114_v13 = vld [vmem:[%s4946_s1 + $0x294] sm:$0xf0]  ;;  %v2491_v14 = vld [vmem:[%s4946_s1 + $0x78] sm:$0xf0] }
  0x33   :  { %828 = vmatmul.bf16.gmra.mxu0 %v3539_v6  ;;  %v2762_v15 = vor.u32 %v3114_v13, %v2761_v12  ;;  %v2494_v16 = vor.u32 %v3045_v10, %v2491_v14  ;;  %v3043_v17 = vld [vmem:[%s4946_s1 + $0x64] sm:$0xf]  ;;  %v2483_v18 = vld [vmem:[%s4946_s1 + $0x68] sm:$0xf0]  ;;  %v3041_v20 = vld [vmem:[%s4946_s1 + $0x54] sm:$0xf] }
  0x34   :  { %877 = vmatmul.bf16.gmra.mxu1 %v3541_v7  ;;  %1015 = vmatpush.bf16.msrb.mxu0 %v2714_v30  ;;  %v2486_v19 = vor.u32 %v3043_v17, %v2483_v18  ;;  %v2475_v21 = vld [vmem:[%s4946_s1 + $0x58] sm:$0xf0]  ;;  %v98_v22 = vld [vmem:[%s4945_s0 + $0x230] sm:$0xff]  ;;  %v105_v23 = vld [vmem:[%s4945_s0 + $0x268] sm:$0xff] }
  0x35   :  { %926 = vmatmul.bf16.gmra.mxu2 %v3543_v8  ;;  %1064 = vmatpush.bf16.msrb.mxu1 %v2778_v33  ;;  %v99_v28 = vld [vmem:[%s4945_s0 + $0x238] sm:$0xff]  ;;  %v2478_v29 = vor.u32 %v3041_v20, %v2475_v21  ;;  %v106_v30 = vld [vmem:[%s4945_s0 + $0x270] sm:$0xff]  ;;  %v100_v31 = vld [vmem:[%s4945_s0 + $0x240] sm:$0xff]  ;;  %v3749_v35 = vpack.c.bf16 %v105_v23, %v98_v22 }
  0x36   :  { %975 = vmatmul.bf16.gmra.mxu3 %v3545_v9  ;;  %v107_v32 = vld [vmem:[%s4945_s0 + $0x278] sm:$0xff]  ;;  %v101_v33 = vld [vmem:[%s4945_s0 + $0x248] sm:$0xff]  ;;  %v108_v34 = vld [vmem:[%s4945_s0 + $0x280] sm:$0xff]  ;;  %v3757_v38 = vpack.c.bf16 %v106_v30, %v99_v28 }
  0x37   :  { %1158 = vmatpush.bf16.msrb.mxu3 %v2494_v16  ;;  %v3039_v36 = vld [vmem:[%s4946_s1 + $0x44] sm:$0xf]  ;;  %v2467_v37 = vld [vmem:[%s4946_s1 + $0x48] sm:$0xf0]  ;;  %v3759_v39 = vpack.c.bf16 %v107_v32, %v100_v31  ;;  %v3761_v40 = vpack.c.bf16 %v108_v34, %v101_v33  ;;  %v2689_v47 = vld [vmem:[%s4946_s1 + $0x200] sm:$0xf] }
  0x38   :  { %1016 = vmatpush.bf16.msrb.mxu0 %v2706_v51  ;;  %v2470_v41 = vor.u32 %v3039_v36, %v2467_v37  ;;  %v3096_v48 = vld [vmem:[%s4946_s1 + $0x204] sm:$0xf0]  ;;  %v3037_v51 = vld [vmem:[%s4946_s1 + $0x34] sm:$0xf]  ;;  %v2753_v54 = vld [vmem:[%s4946_s1 + $0x280] sm:$0xf] }
  0x39   :  { %1065 = vmatpush.bf16.msrb.mxu1 %v2770_v55  ;;  %v2690_v52 = vor.u32 %v3096_v48, %v2689_v47  ;;  %v3112_v55 = vld [vmem:[%s4946_s1 + $0x284] sm:$0xf0]  ;;  %v2459_v56 = vld [vmem:[%s4946_s1 + $0x38] sm:$0xf0]  ;;  %v2817_v59 = vld [vmem:[%s4946_s1 + $0x300] sm:$0xf] }
  0x3a   :  { %v2754_v57 = vor.u32 %v3112_v55, %v2753_v54  ;;  %v2462_v58 = vor.u32 %v3037_v51, %v2459_v56  ;;  %v3128_v60 = vld [vmem:[%s4946_s1 + $0x304] sm:$0xf0]  ;;  %v3035_v62 = vld [vmem:[%s4946_s1 + $0x24] sm:$0xf]  ;;  %v2451_v63 = vld [vmem:[%s4946_s1 + $0x28] sm:$0xf0] }
  0x3b   :  { %1159 = vmatpush.bf16.msrb.mxu3 %v2486_v19  ;;  %v2818_v61 = vor.u32 %v3128_v60, %v2817_v59  ;;  %v2454_v4 = vor.u32 %v3035_v62, %v2451_v63  ;;  %v3033_v5 = vld [vmem:[%s4946_s1 + $0x14] sm:$0xf]  ;;  %v2443_v10 = vld [vmem:[%s4946_s1 + $0x18] sm:$0xf0]  ;;  %v113_v13 = vld [vmem:[%s4945_s0 + $0x2a8] sm:$0xff] }
  0x3c   :  { %1017 = vmatpush.bf16.msrb.mxu0 %v2698_v11  ;;  %v112_v11 = vld [vmem:[%s4945_s0 + $0x2a0] sm:$0xff]  ;;  %v119_v12 = vld [vmem:[%s4945_s0 + $0x2d8] sm:$0xff]  ;;  %v121_v16 = vld [vmem:[%s4945_s0 + $0x2e8] sm:$0xff]  ;;  %v2446_v19 = vor.u32 %v3033_v5, %v2443_v10 }
  0x3d   :  { %1066 = vmatpush.bf16.msrb.mxu1 %v2762_v15  ;;  %1116 = vmatpush.bf16.msrb.mxu2 %v2818_v61  ;;  %v120_v14 = vld [vmem:[%s4945_s0 + $0x2e0] sm:$0xff]  ;;  %v114_v15 = vld [vmem:[%s4945_s0 + $0x2b0] sm:$0xff]  ;;  %v115_v17 = vld [vmem:[%s4945_s0 + $0x2b8] sm:$0xff]  ;;  %v3827_v20 = vpack.c.bf16 %v119_v12, %v112_v11 }
  0x3e   :  { %v122_v18 = vld [vmem:[%s4945_s0 + $0x2f0] sm:$0xff]  ;;  %v3829_v21 = vpack.c.bf16 %v120_v14, %v113_v13  ;;  %v3831_v22 = vpack.c.bf16 %v121_v16, %v114_v15  ;;  %v3031_v23 = vld [vmem:[%s4946_s1 + $0x4] sm:$0xf]  ;;  %v2435_v28 = vld [vmem:[%s4946_s1 + $0x8] sm:$0xf0] }
  0x3f   :  { %1160 = vmatpush.bf16.msrb.mxu3 %v2478_v29  ;;  %v3839_v29 = vpack.c.bf16 %v122_v18, %v115_v17  ;;  %v2438_v30 = vor.u32 %v3031_v23, %v2435_v28  ;;  %v3061_v31 = vld [vmem:[%s4946_s1 + $0xf4] sm:$0xf]  ;;  %v2555_v32 = vld [vmem:[%s4946_s1 + $0xf8] sm:$0xf0]  ;;  %v133_v47 = vld [vmem:[%s4945_s0 + $0x348] sm:$0xff] }
  0x40   :  { %1018 = vmatpush.bf16.msrb.mxu0 %v2690_v52  ;;  %v2558_v33 = vor.u32 %v3061_v31, %v2555_v32  ;;  %v3077_v34 = vld [vmem:[%s4946_s1 + $0x174] sm:$0xf]  ;;  %v2619_v36 = vld [vmem:[%s4946_s1 + $0x178] sm:$0xf0]  ;;  %v128_v52 = vld [vmem:[%s4945_s0 + $0x320] sm:$0xff] }
  0x41   :  { %1067 = vmatpush.bf16.msrb.mxu1 %v2754_v57  ;;  %v2622_v37 = vor.u32 %v3077_v34, %v2619_v36  ;;  %v127_v48 = vld [vmem:[%s4945_s0 + $0x318] sm:$0xff]  ;;  %v134_v51 = vld [vmem:[%s4945_s0 + $0x350] sm:$0xff]  ;;  %v129_v55 = vld [vmem:[%s4945_s0 + $0x328] sm:$0xff] }
  0x42   :  { %v135_v54 = vld [vmem:[%s4945_s0 + $0x358] sm:$0xff]  ;;  %v136_v56 = vld [vmem:[%s4945_s0 + $0x360] sm:$0xff]  ;;  %v2547_v62 = vld [vmem:[%s4946_s1 + $0xe8] sm:$0xf0] }
  0x43   :  { %833 = vmatmul.bf16.gmra.mxu0 %v3587_v24  ;;  %1161 = vmatpush.bf16.msrb.mxu3 %v2470_v41  ;;  %v126_v41 = vld [vmem:[%s4945_s0 + $0x310] sm:$0xff]  ;;  %v3885_v59 = vpack.c.bf16 %v135_v54, %v128_v52  ;;  %v3887_v60 = vpack.c.bf16 %v136_v56, %v129_v55  ;;  %v3059_v61 = vld [vmem:[%s4946_s1 + $0xe4] sm:$0xf]  ;;  %v2611_v5 = vld [vmem:[%s4946_s1 + $0x168] sm:$0xf0] }
  0x44   :  { %882 = vmatmul.bf16.gmra.mxu1 %v3589_v25  ;;  %1207 = vmatpush.bf16.msra.mxu0 %v2558_v33  ;;  %v3881_v57 = vpack.c.bf16 %v133_v47, %v126_v41  ;;  %v2550_v63 = vor.u32 %v3059_v61, %v2547_v62  ;;  %v294_v11 = vld [vmem:[%s4947_s2] sm:$0x3]  ;;  %v39_v13 = vld [vmem:[%s4945_s0 + $0x58] sm:$0xff]  ;;  %v33_v14 = vld [vmem:[%s4945_s0 + $0x28] sm:$0xff] }
  0x45   :  { %931 = vmatmul.bf16.gmra.mxu2 %v3591_v26  ;;  %1256 = vmatpush.bf16.msra.mxu1 %v2622_v37  ;;  %4971 = vst [vmem:[#allocation5_spill] sm:$0xff] %v3887_v60  ;;  %v32_v12 = vld [vmem:[%s4945_s0 + $0x20] sm:$0xff]  ;;  %v3917_v15 = vperm.slane %v294_v11, 0  ;;  %v34_v17 = vld [vmem:[%s4945_s0 + $0x30] sm:$0xff]  ;;  %v41_v18 = vld [vmem:[%s4945_s0 + $0x68] sm:$0xff] }
  0x46   :  { %980 = vmatmul.bf16.gmra.mxu3 %v3593_v27  ;;  %v40_v16 = vld [vmem:[%s4945_s0 + $0x60] sm:$0xff]  ;;  %v3057_v34 = vld [vmem:[%s4946_s1 + $0xd4] sm:$0xf]  ;;  %v2539_v36 = vld [vmem:[%s4946_s1 + $0xd8] sm:$0xf0] }
  0x47   :  { %1162 = vmatpush.bf16.msrb.mxu3 %v2462_v58  ;;  %v3883_v58 = vpack.c.bf16 %v134_v51, %v127_v48  ;;  %v3930_v28 = vpack.c.bf16 %v40_v16, %v33_v14  ;;  %v2542_v37 = vor.u32 %v3057_v34, %v2539_v36  ;;  %v3073_v41 = vld [vmem:[%s4946_s1 + $0x154] sm:$0xf]  ;;  %v2603_v47 = vld [vmem:[%s4946_s1 + $0x158] sm:$0xf0]  ;;  %v48_v11 = vld [vmem:[%s4945_s0 + $0xa0] sm:$0xff] }
  0x48   :  { %1208 = vmatpush.bf16.msra.mxu0 %v2550_v63  ;;  %v2606_v48 = vor.u32 %v3073_v41, %v2603_v47  ;;  %v46_v63 = vld [vmem:[%s4945_s0 + $0x90] sm:$0xff]  ;;  %v2531_v41 = vld [vmem:[%s4946_s1 + $0xc8] sm:$0xf0] }
  0x49   :  { %4972 = vst [vmem:[#allocation6_spill] sm:$0xff] %v3930_v28 }
  0x4b   :  { %1163 = vmatpush.bf16.msrb.mxu3 %v2454_v4  ;;  %v3075_v4 = vld [vmem:[%s4946_s1 + $0x164] sm:$0xf] }
  0x4c   :  { %v2614_v10 = vor.u32 %v3075_v4, %v2611_v5  ;;  %1209 = vmatpush.bf16.msra.mxu0 %v2542_v37  ;;  %v53_v4 = vld [vmem:[%s4945_s0 + $0xc8] sm:$0xff]  ;;  %v47_v5 = vld [vmem:[%s4945_s0 + $0x98] sm:$0xff]  ;;  %v3055_v37 = vld [vmem:[%s4946_s1 + $0xc4] sm:$0xf] }
  0x4d   :  { %v3973_v14 = vpack.c.bf16 %v53_v4, %v46_v63  ;;  %v2534_v47 = vor.u32 %v3055_v37, %v2531_v41 }
  0x4e   :  { %1257 = vmatpush.bf16.msra.mxu1 %v2614_v10  ;;  %v54_v10 = vld [vmem:[%s4945_s0 + $0xd0] sm:$0xff] }
  0x4f   :  { %1164 = vmatpush.bf16.msrb.mxu3 %v2446_v19  ;;  %v3928_v19 = vpack.c.bf16 %v39_v13, %v32_v12  ;;  %v55_v12 = vld [vmem:[%s4945_s0 + $0xd8] sm:$0xff] }
  0x50   :  { %1210 = vmatpush.bf16.msra.mxu0 %v2534_v47 }
  0x52   :  { %1258 = vmatpush.bf16.msra.mxu1 %v2606_v48  ;;  %v3071_v48 = vld [vmem:[%s4946_s1 + $0x144] sm:$0xf] }
  0x53   :  { %838 = vmatmul.bf16.gmra.mxu0 %v3635_v42  ;;  %1165 = vmatpush.bf16.msrb.mxu3 %v2438_v30  ;;  %v3932_v30 = vpack.c.bf16 %v41_v18, %v34_v17 }
  0x54   :  { %887 = vmatmul.bf16.gmra.mxu1 %v3637_v43 }
  0x55   :  { %936 = vmatmul.bf16.gmra.mxu2 %v3639_v44  ;;  %4973 = vst [vmem:[#allocation7_spill] sm:$0xff] %v3932_v30 }
  0x56   :  { %985 = vmatmul.bf16.gmra.mxu3 %v3641_v45 }
  0x63   :  { %843 = vmatmul.bf16.gmra.mxu0 %v3683_v0 }
  0x64   :  { %892 = vmatmul.bf16.gmra.mxu1 %v3685_v1 }
  0x65   :  { %941 = vmatmul.bf16.gmra.mxu2 %v3687_v2 }
  0x66   :  { %990 = vmatmul.bf16.gmra.mxu3 %v3689_v3 }
  0x73   :  { %848 = vmatmul.bf16.gmra.mxu0 %v3749_v35 }
  0x74   :  { %897 = vmatmul.bf16.gmra.mxu1 %v3757_v38 }
  0x75   :  { %946 = vmatmul.bf16.gmra.mxu2 %v3759_v39 }
  0x76   :  { %995 = vmatmul.bf16.gmra.mxu3 %v3761_v40 }
  0x83   :  { %853 = vmatmul.bf16.gmra.mxu0 %v3827_v20 }
  0x84   :  { %902 = vmatmul.bf16.gmra.mxu1 %v3829_v21 }
  0x85   :  { %951 = vmatmul.bf16.gmra.mxu2 %v3831_v22 }
  0x86   :  { %1000 = vmatmul.bf16.gmra.mxu3 %v3839_v29 }
  0x93   :  { %858 = vmatmul.bf16.gmra.mxu0 %v3881_v57 }
  0x94   :  { %907 = vmatmul.bf16.gmra.mxu1 %v3883_v58 }
  0x95   :  { %956 = vmatmul.bf16.gmra.mxu2 %v3885_v59 }
  0x96   :  { %1005 = vmatmul.bf16.gmra.mxu3 %v3887_v60 }
  0xa0   :  { %v824_v23 = vpop.f32.mrf.mxu0 }
  0xa1   :  { %v825_v31 = vadd.f32 %v824_v23, %v3917_v15  ;;  %v873_v32 = vpop.f32.mrf.mxu1  ;;  %v3975_v23 = vpack.c.bf16 %v54_v10, %v47_v5  ;;  %v60_v5 = vld [vmem:[%s4945_s0 + $0x100] sm:$0xff]  ;;  %v67_v10 = vld [vmem:[%s4945_s0 + $0x138] sm:$0xff] }
  0xa3   :  { %v874_v33 = vadd.f32 %v873_v32, %v825_v31  ;;  %1019 = vmatmul.bf16.vlgmr.msrb.gmra.mxu0 %v3928_v19  ;;  %4974 = vst [vmem:[#allocation8_spill] sm:$0xff] %v3975_v23  ;;  %v3977_v31 = vpack.c.bf16 %v55_v12, %v48_v11  ;;  %v61_v11 = vld [vmem:[%s4945_s0 + $0x108] sm:$0xff]  ;;  %v68_v12 = vld [vmem:[%s4945_s0 + $0x140] sm:$0xff] }
  0xa4   :  { %1068 = vmatmul.bf16.vlgmr.msrb.gmra.mxu1 %v3930_v28  ;;  %v4022_v37 = vpack.c.bf16 %v68_v12, %v61_v11 }
  0xa5   :  { %2823 = vmatmul.msk.bf16.vlgmr.msrb.gmra.mxu2 %vm790_vm0, %v3932_v30  ;;  %4975 = vst [vmem:[#allocation9_spill] sm:$0xff] %v3977_v31 }
  0xa6   :  { %1166 = vmatmul.bf16.vlgmr.msrb.gmra.mxu3 %v3482_v46  ;;  %4976 = vst [vmem:[#allocation10_spill] sm:$0xff] %v4022_v37 }
  0xa8   :  { %v922_v51 = vpop.f32.mrf.mxu2  ;;  %v826_v54 = vpop.f32.mrf.mxu0 }
  0xa9   :  { %v923_v52 = vadd.f32 %v922_v51, %v874_v33  ;;  %v971_v55 = vpop.f32.mrf.mxu3  ;;  %v827_v56 = vadd.f32 %v826_v54, %v3917_v15  ;;  %v875_v61 = vpop.f32.mrf.mxu1  ;;  %v2595_v51 = vld [vmem:[%s4946_s1 + $0x148] sm:$0xf0] }
  0xab   :  { %v3953_v46 = vadd.f32 %v971_v55, %v923_v52  ;;  %v876_v62 = vadd.f32 %v875_v61, %v827_v56  ;;  %v2598_v52 = vor.u32 %v3071_v48, %v2595_v51 }
  0xad   :  { %1259 = vmatpush.bf16.msra.mxu1 %v2598_v52 }
  0xb0   :  { %v924_v13 = vpop.f32.mrf.mxu2  ;;  %v829_v17 = vpop.f32.mrf.mxu0 }
  0xb1   :  { %v925_v16 = vadd.f32 %v924_v13, %v876_v62  ;;  %v973_v18 = vpop.f32.mrf.mxu3  ;;  %v830_v32 = vadd.f32 %v829_v17, %v3917_v15  ;;  %v878_v33 = vpop.f32.mrf.mxu1  ;;  %v62_v13 = vld [vmem:[%s4945_s0 + $0x110] sm:$0xff] }
  0xb3   :  { %v3980_v34 = vadd.f32 %v973_v18, %v925_v16  ;;  %v879_v36 = vadd.f32 %v878_v33, %v830_v32  ;;  %1024 = vmatmul.bf16.gmra.mxu0 %v3973_v14  ;;  %v69_v16 = vld [vmem:[%s4945_s0 + $0x148] sm:$0xff]  ;;  %v4020_v18 = vpack.c.bf16 %v67_v10, %v60_v5 }
  0xb4   :  { %1073 = vmatmul.bf16.gmra.mxu1 %v3975_v23  ;;  %v4024_v41 = vpack.c.bf16 %v69_v16, %v62_v13 }
  0xb5   :  { %2824 = vmatmul.msk.bf16.gmra.mxu2 %vm790_vm0, %v3977_v31 }
  0xb6   :  { %1171 = vmatmul.bf16.gmra.mxu3 %v3539_v6  ;;  %4977 = vst [vmem:[#allocation11_spill] sm:$0xff] %v4024_v41 }
  0xb8   :  { %v927_v54 = vpop.f32.mrf.mxu2  ;;  %v831_v56 = vpop.f32.mrf.mxu0 }
  0xb9   :  { %v928_v55 = vadd.f32 %v927_v54, %v879_v36  ;;  %v976_v61 = vpop.f32.mrf.mxu3  ;;  %v832_v62 = vadd.f32 %v831_v56, %v3917_v15  ;;  %v880_v63 = vpop.f32.mrf.mxu1  ;;  %v3053_v54 = vld [vmem:[%s4946_s1 + $0xb4] sm:$0xf] }
  0xbb   :  { %v4000_v6 = vadd.f32 %v976_v61, %v928_v55  ;;  %v881_v4 = vadd.f32 %v880_v63, %v832_v62  ;;  %v2523_v55 = vld [vmem:[%s4946_s1 + $0xb8] sm:$0xf0]  ;;  %v3069_v61 = vld [vmem:[%s4946_s1 + $0x134] sm:$0xf] }
  0xbc   :  { %v2526_v56 = vor.u32 %v3053_v54, %v2523_v55  ;;  %v2587_v62 = vld [vmem:[%s4946_s1 + $0x138] sm:$0xf0] }
  0xbd   :  { %v2590_v63 = vor.u32 %v3069_v61, %v2587_v62 }
  0xbe   :  { %1211 = vmatpush.bf16.msra.mxu0 %v2526_v56 }
  0xbf   :  { %1260 = vmatpush.bf16.msra.mxu1 %v2590_v63 }
  0xc0   :  { %v929_v17 = vpop.f32.mrf.mxu2  ;;  %v834_v33 = vpop.f32.mrf.mxu0 }
  0xc1   :  { %v930_v32 = vadd.f32 %v929_v17, %v881_v4  ;;  %v978_v36 = vpop.f32.mrf.mxu3  ;;  %v835_v47 = vadd.f32 %v834_v33, %v3917_v15  ;;  %v883_v48 = vpop.f32.mrf.mxu1  ;;  %v74_v17 = vld [vmem:[%s4945_s0 + $0x170] sm:$0xff]  ;;  %v75_v33 = vld [vmem:[%s4945_s0 + $0x178] sm:$0xff] }
  0xc3   :  { %v4027_v51 = vadd.f32 %v978_v36, %v930_v32  ;;  %v884_v52 = vadd.f32 %v883_v48, %v835_v47  ;;  %1029 = vmatmul.bf16.gmra.mxu0 %v4020_v18  ;;  %v81_v32 = vld [vmem:[%s4945_s0 + $0x1a8] sm:$0xff]  ;;  %v82_v36 = vld [vmem:[%s4945_s0 + $0x1b0] sm:$0xff]  ;;  %v76_v47 = vld [vmem:[%s4945_s0 + $0x180] sm:$0xff] }
  0xc4   :  { %1078 = vmatmul.bf16.gmra.mxu1 %v4022_v37  ;;  %v83_v48 = vld [vmem:[%s4945_s0 + $0x1b8] sm:$0xff]  ;;  %v4067_v54 = vpack.c.bf16 %v81_v32, %v74_v17  ;;  %v4069_v62 = vpack.c.bf16 %v82_v36, %v75_v33  ;;  %v3067_v17 = vld [vmem:[%s4946_s1 + $0x124] sm:$0xf]  ;;  %v2579_v32 = vld [vmem:[%s4946_s1 + $0x128] sm:$0xf0] }
  0xc5   :  { %2825 = vmatmul.msk.bf16.gmra.mxu2 %vm790_vm0, %v4024_v41  ;;  %v4071_v63 = vpack.c.bf16 %v83_v48, %v76_v47  ;;  %v2582_v33 = vor.u32 %v3067_v17, %v2579_v32 }
  0xc6   :  { %1176 = vmatmul.bf16.gmra.mxu3 %v3587_v24  ;;  %4978 = vst [vmem:[#allocation12_spill] sm:$0xff] %v4069_v62 }
  0xc7   :  { %4979 = vst [vmem:[#allocation13_spill] sm:$0xff] %v4071_v63  ;;  %1261 = vmatpush.bf16.msra.mxu1 %v2582_v33 }
  0xc8   :  { %v932_v4 = vpop.f32.mrf.mxu2  ;;  %v836_v10 = vpop.f32.mrf.mxu0 }
  0xc9   :  { %v933_v5 = vadd.f32 %v932_v4, %v884_v52  ;;  %v981_v11 = vpop.f32.mrf.mxu3  ;;  %v837_v12 = vadd.f32 %v836_v10, %v3917_v15  ;;  %v885_v13 = vpop.f32.mrf.mxu1 }
  0xcb   :  { %v4047_v24 = vadd.f32 %v981_v11, %v933_v5  ;;  %v886_v16 = vadd.f32 %v885_v13, %v837_v12  ;;  %v3051_v12 = vld [vmem:[%s4946_s1 + $0xa4] sm:$0xf]  ;;  %v2515_v13 = vld [vmem:[%s4946_s1 + $0xa8] sm:$0xf0] }
  0xd0   :  { %v934_v52 = vpop.f32.mrf.mxu2  ;;  %v839_v56 = vpop.f32.mrf.mxu0 }
  0xd1   :  { %v935_v55 = vadd.f32 %v934_v52, %v886_v16  ;;  %v983_v61 = vpop.f32.mrf.mxu3  ;;  %v840_v4 = vadd.f32 %v839_v56, %v3917_v15  ;;  %v888_v5 = vpop.f32.mrf.mxu1  ;;  %v2518_v16 = vor.u32 %v3051_v12, %v2515_v13  ;;  %v96_v12 = vld [vmem:[%s4945_s0 + $0x220] sm:$0xff]  ;;  %v90_v13 = vld [vmem:[%s4945_s0 + $0x1f0] sm:$0xff] }
  0xd3   :  { %v4074_v10 = vadd.f32 %v983_v61, %v935_v55  ;;  %v889_v11 = vadd.f32 %v888_v5, %v840_v4  ;;  %1034 = vmatmul.bf16.gmra.mxu0 %v4067_v54  ;;  %v88_v4 = vld [vmem:[%s4945_s0 + $0x1e0] sm:$0xff]  ;;  %v95_v5 = vld [vmem:[%s4945_s0 + $0x218] sm:$0xff] }
  0xd4   :  { %1083 = vmatmul.bf16.gmra.mxu1 %v4069_v62  ;;  %1212 = vmatpush.bf16.msra.mxu0 %v2518_v16  ;;  %v97_v16 = vld [vmem:[%s4945_s0 + $0x228] sm:$0xff]  ;;  %v4114_v32 = vpack.c.bf16 %v95_v5, %v88_v4  ;;  %v3093_v4 = vld [vmem:[%s4946_s1 + $0x1f4] sm:$0xf] }
  0xd5   :  { %2826 = vmatmul.msk.bf16.gmra.mxu2 %vm790_vm0, %v4071_v63  ;;  %v3049_v5 = vld [vmem:[%s4946_s1 + $0x94] sm:$0xf] }
  0xd6   :  { %1181 = vmatmul.bf16.gmra.mxu3 %v3635_v42 }
  0xd8   :  { %v937_v36 = vpop.f32.mrf.mxu2  ;;  %v841_v48 = vpop.f32.mrf.mxu0 }
  0xd9   :  { %v938_v47 = vadd.f32 %v937_v36, %v889_v11  ;;  %v986_v52 = vpop.f32.mrf.mxu3  ;;  %v842_v55 = vadd.f32 %v841_v48, %v3917_v15  ;;  %v890_v56 = vpop.f32.mrf.mxu1  ;;  %v89_v11 = vld [vmem:[%s4945_s0 + $0x1e8] sm:$0xff] }
  0xda   :  { %v4116_v48 = vpack.c.bf16 %v96_v12, %v89_v11  ;;  %v2507_v11 = vld [vmem:[%s4946_s1 + $0x98] sm:$0xf0] }
  0xdb   :  { %v4094_v42 = vadd.f32 %v986_v52, %v938_v47  ;;  %v891_v61 = vadd.f32 %v890_v56, %v842_v55  ;;  %v4118_v52 = vpack.c.bf16 %v97_v16, %v90_v13  ;;  %v3109_v13 = vld [vmem:[%s4946_s1 + $0x274] sm:$0xf]  ;;  %v2510_v16 = vor.u32 %v3049_v5, %v2507_v11 }
  0xdc   :  { %4980 = vst [vmem:[#allocation14_spill] sm:$0xff] %v4116_v48 }
  0xdd   :  { %4981 = vst [vmem:[#allocation15_spill] sm:$0xff] %v4118_v52  ;;  %1213 = vmatpush.bf16.msra.mxu0 %v2510_v16  ;;  %v2667_v16 = vld [vmem:[%s4946_s1 + $0x1d8] sm:$0xf0] }
  0xe0   :  { %v939_v17 = vpop.f32.mrf.mxu2  ;;  %v844_v36 = vpop.f32.mrf.mxu0 }
  0xe1   :  { %v940_v33 = vadd.f32 %v939_v17, %v891_v61  ;;  %v988_v47 = vpop.f32.mrf.mxu3  ;;  %v845_v55 = vadd.f32 %v844_v36, %v3917_v15  ;;  %v893_v56 = vpop.f32.mrf.mxu1  ;;  %v2683_v61 = vld [vmem:[%s4946_s1 + $0x1f8] sm:$0xf0]  ;;  %v3065_v17 = vld [vmem:[%s4946_s1 + $0x114] sm:$0xf] }
  0xe2   :  { %v2686_v12 = vor.u32 %v3093_v4, %v2683_v61  ;;  %v2747_v36 = vld [vmem:[%s4946_s1 + $0x278] sm:$0xf0] }
  0xe3   :  { %v4121_v63 = vadd.f32 %v988_v47, %v940_v33  ;;  %v894_v62 = vadd.f32 %v893_v56, %v845_v55  ;;  %1039 = vmatmul.bf16.gmra.mxu0 %v4114_v32  ;;  %v2571_v33 = vld [vmem:[%s4946_s1 + $0x118] sm:$0xf0]  ;;  %v2750_v55 = vor.u32 %v3109_v13, %v2747_v36  ;;  %v2675_v56 = vld [vmem:[%s4946_s1 + $0x1e8] sm:$0xf0] }
  0xe4   :  { %1088 = vmatmul.bf16.gmra.mxu1 %v4116_v48  ;;  %1305 = vmatpush.bf16.msra.mxu2 %v2686_v12  ;;  %v2574_v47 = vor.u32 %v3065_v17, %v2571_v33  ;;  %v3107_v12 = vld [vmem:[%s4946_s1 + $0x264] sm:$0xf]  ;;  %v2739_v13 = vld [vmem:[%s4946_s1 + $0x268] sm:$0xf0] }
  0xe5   :  { %2827 = vmatmul.msk.bf16.gmra.mxu2 %vm790_vm0, %v4118_v52  ;;  %1354 = vmatpush.bf16.msra.mxu3 %v2750_v55  ;;  %v2742_v36 = vor.u32 %v3107_v12, %v2739_v13  ;;  %v102_v55 = vld [vmem:[%s4945_s0 + $0x250] sm:$0xff]  ;;  %v111_v12 = vld [vmem:[%s4945_s0 + $0x298] sm:$0xff] }
  0xe6   :  { %1186 = vmatmul.bf16.gmra.mxu3 %v3683_v0  ;;  %v3091_v0 = vld [vmem:[%s4946_s1 + $0x1e4] sm:$0xf]  ;;  %1262 = vmatpush.bf16.msra.mxu1 %v2574_v47 }
  0xe7   :  { %v2678_v61 = vor.u32 %v3091_v0, %v2675_v56  ;;  %v109_v0 = vld [vmem:[%s4945_s0 + $0x288] sm:$0xff]  ;;  %v103_v56 = vld [vmem:[%s4945_s0 + $0x258] sm:$0xff] }
  0xe8   :  { %v942_v4 = vpop.f32.mrf.mxu2  ;;  %v846_v11 = vpop.f32.mrf.mxu0 }
  0xe9   :  { %v943_v5 = vadd.f32 %v942_v4, %v894_v62  ;;  %v991_v52 = vpop.f32.mrf.mxu3  ;;  %v847_v17 = vadd.f32 %v846_v11, %v3917_v15  ;;  %v895_v33 = vpop.f32.mrf.mxu1  ;;  %1306 = vmatpush.bf16.msra.mxu2 %v2678_v61  ;;  %v3089_v62 = vld [vmem:[%s4946_s1 + $0x1d4] sm:$0xf]  ;;  %1355 = vmatpush.bf16.msra.mxu3 %v2742_v36  ;;  %v2731_v61 = vld [vmem:[%s4946_s1 + $0x258] sm:$0xf0]  ;;  %v104_v11 = vld [vmem:[%s4945_s0 + $0x260] sm:$0xff] }
  0xea   :  { %v3105_v4 = vld [vmem:[%s4946_s1 + $0x254] sm:$0xf]  ;;  %v4207_v30 = vpack.c.bf16 %v111_v12, %v104_v11  ;;  %v2651_v11 = vld [vmem:[%s4946_s1 + $0x1b8] sm:$0xf0] }
  0xeb   :  { %v4165_v48 = vadd.f32 %v991_v52, %v943_v5  ;;  %v896_v47 = vadd.f32 %v895_v33, %v847_v17  ;;  %v2670_v52 = vor.u32 %v3089_v62, %v2667_v16  ;;  %v110_v5 = vld [vmem:[%s4945_s0 + $0x290] sm:$0xff]  ;;  %v2734_v13 = vor.u32 %v3105_v4, %v2731_v61  ;;  %v3087_v17 = vld [vmem:[%s4946_s1 + $0x1c4] sm:$0xf]  ;;  %v2659_v33 = vld [vmem:[%s4946_s1 + $0x1c8] sm:$0xf0] }
  0xec   :  { %v4203_v62 = vpack.c.bf16 %v109_v0, %v102_v55  ;;  %v2662_v16 = vor.u32 %v3087_v17, %v2659_v33  ;;  %v4205_v23 = vpack.c.bf16 %v110_v5, %v103_v56  ;;  %4983 = vst [vmem:[#allocation17_spill] sm:$0xff] %v4207_v30  ;;  %v2723_v4 = vld [vmem:[%s4946_s1 + $0x248] sm:$0xf0]  ;;  %v3085_v5 = vld [vmem:[%s4946_s1 + $0x1b4] sm:$0xf] }
  0xed   :  { %1307 = vmatpush.bf16.msra.mxu2 %v2670_v52  ;;  %1356 = vmatpush.bf16.msra.mxu3 %v2734_v13  ;;  %v3103_v52 = vld [vmem:[%s4946_s1 + $0x244] sm:$0xf]  ;;  %v3101_v12 = vld [vmem:[%s4946_s1 + $0x234] sm:$0xf]  ;;  %v2563_v33 = vld [vmem:[%s4946_s1 + $0x108] sm:$0xf0] }
  0xee   :  { %4982 = vst [vmem:[#allocation16_spill] sm:$0xff] %v4205_v23  ;;  %v3063_v17 = vld [vmem:[%s4946_s1 + $0x104] sm:$0xf] }
  0xf0   :  { %v944_v36 = vpop.f32.mrf.mxu2  ;;  %v849_v37 = vpop.f32.mrf.mxu0 }
  0xf1   :  { %v945_v41 = vadd.f32 %v944_v36, %v896_v47  ;;  %v993_v31 = vpop.f32.mrf.mxu3  ;;  %v850_v55 = vadd.f32 %v849_v37, %v3917_v15  ;;  %v898_v0 = vpop.f32.mrf.mxu1  ;;  %1308 = vmatpush.bf16.msra.mxu2 %v2662_v16  ;;  %v2726_v47 = vor.u32 %v3103_v52, %v2723_v4  ;;  %v2499_v37 = vld [vmem:[%s4946_s1 + $0x88] sm:$0xf0]  ;;  %v2715_v36 = vld [vmem:[%s4946_s1 + $0x238] sm:$0xf0]  ;;  %v2566_v16 = vor.u32 %v3063_v17, %v2563_v33 }
  0xf2   :  { %v2718_v52 = vor.u32 %v3101_v12, %v2715_v36  ;;  %v2643_v4 = vld [vmem:[%s4946_s1 + $0x1a8] sm:$0xf0]  ;;  %v2635_v33 = vld [vmem:[%s4946_s1 + $0x198] sm:$0xf0] }
  0xf3   :  { %v4216_v61 = vadd.f32 %v993_v31, %v945_v41  ;;  %v899_v56 = vadd.f32 %v898_v0, %v850_v55  ;;  %1044 = vmatmul.bf16.gmra.mxu0 %v4203_v62  ;;  %v3047_v31 = vld [vmem:[%s4946_s1 + $0x84] sm:$0xf]  ;;  %v2654_v41 = vor.u32 %v3085_v5, %v2651_v11  ;;  %1357 = vmatpush.bf16.msra.mxu3 %v2726_v47 }
  0xf4   :  { %1093 = vmatmul.bf16.gmra.mxu1 %v4205_v23  ;;  %v2502_v13 = vor.u32 %v3047_v31, %v2499_v37  ;;  %v3099_v47 = vld [vmem:[%s4946_s1 + $0x224] sm:$0xf]  ;;  %v2707_v37 = vld [vmem:[%s4946_s1 + $0x228] sm:$0xf0] }
  0xf5   :  { %2828 = vmatmul.msk.bf16.gmra.mxu2 %vm790_vm0, %v4207_v30  ;;  %1263 = vmatpush.bf16.msra.mxu1 %v2566_v16  ;;  %v116_v16 = vld [vmem:[%s4945_s0 + $0x2c0] sm:$0xff] }
  0xf6   :  { %1191 = vmatmul.bf16.gmra.mxu3 %v3749_v35  ;;  %1309 = vmatpush.bf16.msra.mxu2 %v2654_v41  ;;  %v3083_v35 = vld [vmem:[%s4946_s1 + $0x1a4] sm:$0xf] }
  0xf7   :  { %1214 = vmatpush.bf16.msra.mxu0 %v2502_v13  ;;  %v2646_v0 = vor.u32 %v3083_v35, %v2643_v4  ;;  %1358 = vmatpush.bf16.msra.mxu3 %v2718_v52  ;;  %v2710_v13 = vor.u32 %v3099_v47, %v2707_v37  ;;  %v123_v35 = vld [vmem:[%s4945_s0 + $0x2f8] sm:$0xff]  ;;  %v117_v4 = vld [vmem:[%s4945_s0 + $0x2c8] sm:$0xff]  ;;  %v3079_v37 = vld [vmem:[%s4946_s1 + $0x184] sm:$0xf] }
  0xf8   :  { %v947_v55 = vpop.f32.mrf.mxu2  ;;  %v851_v11 = vpop.f32.mrf.mxu0 }
  0xf9   :  { %v948_v5 = vadd.f32 %v947_v55, %v899_v56  ;;  %v996_v31 = vpop.f32.mrf.mxu3  ;;  %v852_v41 = vadd.f32 %v851_v11, %v3917_v15  ;;  %v900_v12 = vpop.f32.mrf.mxu1  ;;  %v3081_v56 = vld [vmem:[%s4946_s1 + $0x194] sm:$0xf] }
  0xfa   :  { %1310 = vmatpush.bf16.msra.mxu2 %v2646_v0  ;;  %v2638_v52 = vor.u32 %v3081_v56, %v2635_v33  ;;  %v3097_v55 = vld [vmem:[%s4946_s1 + $0x214] sm:$0xf]  ;;  %v2699_v0 = vld [vmem:[%s4946_s1 + $0x218] sm:$0xf0]  ;;  %v4298_v56 = vpack.c.bf16 %v123_v35, %v116_v16 }
  0xfb   :  { %v4260_v17 = vadd.f32 %v996_v31, %v948_v5  ;;  %v901_v36 = vadd.f32 %v900_v12, %v852_v41  ;;  %v124_v5 = vld [vmem:[%s4945_s0 + $0x300] sm:$0xff]  ;;  %v118_v11 = vld [vmem:[%s4945_s0 + $0x2d0] sm:$0xff]  ;;  %v125_v31 = vld [vmem:[%s4945_s0 + $0x308] sm:$0xff]  ;;  %1359 = vmatpush.bf16.msra.mxu3 %v2710_v13  ;;  %v2702_v47 = vor.u32 %v3097_v55, %v2699_v0 }
  0xfc   :  { %v2627_v41 = vld [vmem:[%s4946_s1 + $0x188] sm:$0xf0]  ;;  %v4300_v60 = vpack.c.bf16 %v124_v5, %v117_v4  ;;  %v4302_v13 = vpack.c.bf16 %v125_v31, %v118_v11  ;;  %v3125_v5 = vld [vmem:[%s4946_s1 + $0x2f4] sm:$0xf] }
  0xfd   :  { %v2630_v33 = vor.u32 %v3079_v37, %v2627_v41  ;;  %v2691_v55 = vld [vmem:[%s4946_s1 + $0x208] sm:$0xf0] }
  0xfe   :  { %1311 = vmatpush.bf16.msra.mxu2 %v2638_v52  ;;  %4984 = vst [vmem:[#allocation18_spill] sm:$0xff] %v4300_v60  ;;  %v3095_v52 = vld [vmem:[%s4946_s1 + $0x204] sm:$0xf]  ;;  %v2819_v11 = vld [vmem:[%s4946_s1 + $0x308] sm:$0xf0] }
  0xff   :  { %4985 = vst [vmem:[#allocation19_spill] sm:$0xff] %v4302_v13  ;;  %1360 = vmatpush.bf16.msra.mxu3 %v2702_v47 }
 0x100   :  { %v949_v12 = vpop.f32.mrf.mxu2  ;;  %v854_v23 = vpop.f32.mrf.mxu0 }
 0x101   :  { %v950_v30 = vadd.f32 %v949_v12, %v901_v36  ;;  %v998_v28 = vpop.f32.mrf.mxu3  ;;  %v855_v0 = vadd.f32 %v854_v23, %v3917_v15  ;;  %v903_v16 = vpop.f32.mrf.mxu1  ;;  %v2694_v36 = vor.u32 %v3095_v52, %v2691_v55  ;;  %v3127_v23 = vld [vmem:[%s4946_s1 + $0x304] sm:$0xf] }
 0x102   :  { %1312 = vmatpush.bf16.msra.mxu2 %v2630_v33  ;;  %v2822_v31 = vor.u32 %v3127_v23, %v2819_v11 }
 0x103   :  { %v4311_v35 = vadd.f32 %v998_v28, %v950_v30  ;;  %v904_v4 = vadd.f32 %v903_v16, %v855_v0  ;;  %1049 = vmatmul.bf16.gmra.mxu0 %v4298_v56  ;;  %v2811_v28 = vld [vmem:[%s4946_s1 + $0x2f8] sm:$0xf0]  ;;  %1361 = vmatpush.bf16.msra.mxu3 %v2694_v36  ;;  %v130_v0 = vld [vmem:[%s4945_s0 + $0x330] sm:$0xff]  ;;  %v137_v16 = vld [vmem:[%s4945_s0 + $0x368] sm:$0xff] }
 0x104   :  { %1098 = vmatmul.bf16.gmra.mxu1 %v4300_v60  ;;  %v2814_v30 = vor.u32 %v3125_v5, %v2811_v28  ;;  %v131_v36 = vld [vmem:[%s4945_s0 + $0x338] sm:$0xff]  ;;  %v132_v5 = vld [vmem:[%s4945_s0 + $0x340] sm:$0xff]  ;;  %v4351_v23 = vpack.c.bf16 %v137_v16, %v130_v0  ;;  %v2803_v0 = vld [vmem:[%s4946_s1 + $0x2e8] sm:$0xf0] }
 0x105   :  { %2829 = vmatmul.msk.bf16.gmra.mxu2 %vm790_vm0, %v4302_v13  ;;  %1459 = vmatpush.bf16.msrb.mxu1 %v2822_v31  ;;  %v139_v28 = vld [vmem:[%s4945_s0 + $0x378] sm:$0xff] }
 0x106   :  { %1196 = vmatmul.bf16.gmra.mxu3 %v3827_v20  ;;  %1403 = vmatpush.bf16.msrb.mxu0 %v2814_v30  ;;  %4986 = vst [vmem:[#allocation20_spill] sm:$0xff] %v4351_v23 }
 0x108   :  { %v952_v47 = vpop.f32.mrf.mxu2  ;;  %v856_v41 = vpop.f32.mrf.mxu0 }
 0x109   :  { %v953_v37 = vadd.f32 %v952_v47, %v904_v4  ;;  %v1001_v12 = vpop.f32.mrf.mxu3  ;;  %v857_v33 = vadd.f32 %v856_v41, %v3917_v15  ;;  %v905_v20 = vpop.f32.mrf.mxu1  ;;  %v138_v4 = vld [vmem:[%s4945_s0 + $0x370] sm:$0xff]  ;;  %v4355_v41 = vpack.c.bf16 %v139_v28, %v132_v5 }
 0x10b   :  { %v4331_v52 = vadd.f32 %v1001_v12, %v953_v37  ;;  %v906_v55 = vadd.f32 %v905_v20, %v857_v33  ;;  %v4353_v37 = vpack.c.bf16 %v138_v4, %v131_v36  ;;  %4988 = vst [vmem:[#allocation22_spill] sm:$0xff] %v4355_v41 }
 0x10d   :  { %4987 = vst [vmem:[#allocation21_spill] sm:$0xff] %v4353_v37 }
 0x110   :  { %v954_v30 = vpop.f32.mrf.mxu2  ;;  %v859_v31 = vpop.f32.mrf.mxu0 }
 0x111   :  { %v955_v11 = vadd.f32 %v954_v30, %v906_v55  ;;  %v1003_v47 = vpop.f32.mrf.mxu3  ;;  %v860_v12 = vadd.f32 %v859_v31, %v3917_v15  ;;  %v908_v33 = vpop.f32.mrf.mxu1  ;;  %v3123_v55 = vld [vmem:[%s4946_s1 + $0x2e4] sm:$0xf] }
 0x112   :  { %v2806_v16 = vor.u32 %v3123_v55, %v2803_v0 }
 0x113   :  { %v4358_v20 = vadd.f32 %v1003_v47, %v955_v11  ;;  %v909_v13 = vadd.f32 %v908_v33, %v860_v12  ;;  %1054 = vmatmul.bf16.gmra.mxu0 %v4351_v23 }
 0x114   :  { %1103 = vmatmul.bf16.gmra.mxu1 %v4353_v37  ;;  %1404 = vmatpush.bf16.msrb.mxu0 %v2806_v16 }
 0x115   :  { %2830 = vmatmul.msk.bf16.gmra.mxu2 %vm790_vm0, %v4355_v41 }
 0x116   :  { %1201 = vmatmul.bf16.gmra.mxu3 %v3881_v57 }
 0x118   :  { %v957_v36 = vpop.f32.mrf.mxu2  ;;  %v861_v5 = vpop.f32.mrf.mxu0 }
 0x119   :  { %v958_v4 = vadd.f32 %v957_v36, %v909_v13  ;;  %v1006_v28 = vpop.f32.mrf.mxu3  ;;  %v862_v30 = vadd.f32 %v861_v5, %v3917_v15  ;;  %v910_v11 = vpop.f32.mrf.mxu1  ;;  %v3121_v15 = vld [vmem:[%s4946_s1 + $0x2d4] sm:$0xf]  ;;  %v2795_v13 = vld [vmem:[%s4946_s1 + $0x2d8] sm:$0xf0] }
 0x11b   :  { %v4372_v31 = vadd.f32 %v1006_v28, %v958_v4  ;;  %v911_v57 = vadd.f32 %v910_v11, %v862_v30 }
 0x120   :  { %v959_v47 = vpop.f32.mrf.mxu2  ;;  %v1020_v41 = vpop.f32.mrf.mxu0 }
 0x121   :  { %v960_v12 = vadd.f32 %v959_v47, %v911_v57  ;;  %v1008_v33 = vpop.f32.mrf.mxu3  ;;  %v1021_v37 = vadd.f32 %v1020_v41, %v3953_v46  ;;  %v1069_v60 = vpop.f32.mrf.mxu1  ;;  %v2798_v46 = vor.u32 %v3121_v15, %v2795_v13 }
 0x123   :  { %v4375_v23 = vadd.f32 %v1008_v33, %v960_v12  ;;  %v1070_v55 = vadd.f32 %v1069_v60, %v1021_v37  ;;  %1215 = vmatmul.bf16.vlgmr.msra.gmra.mxu0 %v3487_v49 }
 0x124   :  { %1264 = vmatmul.bf16.vlgmr.msra.gmra.mxu1 %v3489_v50  ;;  %1405 = vmatpush.bf16.msrb.mxu0 %v2798_v46 }
 0x125   :  { %1313 = vmatmul.bf16.vlgmr.msra.gmra.mxu2 %v3497_v53 }
 0x126   :  { %1362 = vmatmul.bf16.vlgmr.msra.gmra.mxu3 %v3928_v19 }
 0x128   :  { %v1118_v41 = vpop.f32.mrf.mxu2  ;;  %v1022_v37 = vpop.f32.mrf.mxu0 }
 0x129   :  { %v1119_v60 = vadd.f32 %v1118_v41, %v1070_v55  ;;  %v1023_v49 = vadd.f32 %v1022_v37, %v3980_v34  ;;  %v1071_v50 = vpop.f32.mrf.mxu1  ;;  %v3119_v34 = vld [vmem:[%s4946_s1 + $0x2c4] sm:$0xf] }
 0x12b   :  { %v1072_v0 = vadd.f32 %v1071_v50, %v1023_v49  ;;  %v1533_v16 = vmul.f32 0.01, %v1119_v60  ;;  %vm1501_vm1 = vcmp.gt.f32.partialorder %v1119_v60, 0.0 }
 0x12d   :  { %v1565_v11 = vsel %vm1501_vm1, %v1119_v60, %v1533_v16 }
 0x130   :  { %v1120_v53 = vpop.f32.mrf.mxu2  ;;  %v1025_v4 = vpop.f32.mrf.mxu0 }
 0x131   :  { %v1121_v36 = vadd.f32 %v1120_v53, %v1072_v0  ;;  %v1026_v5 = vadd.f32 %v1025_v4, %v4000_v6  ;;  %v1074_v28 = vpop.f32.mrf.mxu1  ;;  %v2787_v6 = vld [vmem:[%s4946_s1 + $0x2c8] sm:$0xf0]  ;;  %v2779_v0 = vld [vmem:[%s4946_s1 + $0x2b8] sm:$0xf0] }
 0x132   :  { %v2790_v12 = vor.u32 %v3119_v34, %v2787_v6 }
 0x133   :  { %vm1503_vm2 = vcmp.gt.f32.partialorder %v1121_v36, 0.0  ;;  %v1535_v30 = vmul.f32 0.01, %v1121_v36  ;;  %v1075_v19 = vadd.f32 %v1074_v28, %v1026_v5  ;;  %1220 = vmatmul.bf16.gmra.mxu0 %v3541_v7 }
 0x134   :  { %1269 = vmatmul.bf16.gmra.mxu1 %v3543_v8  ;;  %1406 = vmatpush.bf16.msrb.mxu0 %v2790_v12 }
 0x135   :  { %v1567_v57 = vsel %vm1503_vm2, %v1121_v36, %v1535_v30  ;;  %1318 = vmatmul.bf16.gmra.mxu2 %v3545_v9  ;;  %v4416_v30 = vpop.f32.mrf.mxu3 }
 0x136   :  { %v4398_v47 = vpack.c.bf16 %v1567_v57, %v1565_v11  ;;  %1367 = vmatmul.bf16.gmra.mxu3 %v3973_v14 }
 0x138   :  { %v1123_v7 = vpop.f32.mrf.mxu2  ;;  %v1027_v55 = vpop.f32.mrf.mxu0 }
 0x139   :  { %v1124_v33 = vadd.f32 %v1123_v7, %v1075_v19  ;;  %v1028_v8 = vadd.f32 %v1027_v55, %v4027_v51  ;;  %v1076_v9 = vpop.f32.mrf.mxu1  ;;  %v3117_v51 = vld [vmem:[%s4946_s1 + $0x2b4] sm:$0xf] }
 0x13a   :  { %v2782_v16 = vor.u32 %v3117_v51, %v2779_v0  ;;  %v2897_v0 = vld [vmem:[%s4948_s3 + $0x70] sm:$0xf] }
 0x13b   :  { %v1077_v15 = vadd.f32 %v1076_v9, %v1028_v8  ;;  %v1537_v46 = vmul.f32 0.01, %v1124_v33  ;;  %vm1505_vm3 = vcmp.gt.f32.partialorder %v1124_v33, 0.0 }
 0x13c   :  { %1407 = vmatpush.bf16.msrb.mxu0 %v2782_v16  ;;  %v2763_v16 = vld [vmem:[%s4946_s1 + $0x298] sm:$0xf0] }
 0x13d   :  { %v1569_v53 = vsel %vm1505_vm3, %v1124_v33, %v1537_v46  ;;  %v2771_v33 = vld [vmem:[%s4946_s1 + $0x2a8] sm:$0xf0] }
 0x140   :  { %v1125_v13 = vpop.f32.mrf.mxu2  ;;  %v1030_v60 = vpop.f32.mrf.mxu0 }
 0x141   :  { %v1126_v41 = vadd.f32 %v1125_v13, %v1077_v15  ;;  %v1031_v37 = vadd.f32 %v1030_v60, %v4047_v24  ;;  %v1079_v49 = vpop.f32.mrf.mxu1 }
 0x143   :  { %vm1507_vm4 = vcmp.gt.f32.partialorder %v1126_v41, 0.0  ;;  %v1539_v50 = vmul.f32 0.01, %v1126_v41  ;;  %v1080_v14 = vadd.f32 %v1079_v49, %v1031_v37  ;;  %1225 = vmatmul.bf16.gmra.mxu0 %v3589_v25 }
 0x144   :  { %1274 = vmatmul.bf16.gmra.mxu1 %v3591_v26 }
 0x145   :  { %1323 = vmatmul.bf16.gmra.mxu2 %v3593_v27  ;;  %v1571_v24 = vsel %vm1507_vm4, %v1126_v41, %v1539_v50 }
 0x146   :  { %1372 = vmatmul.bf16.gmra.mxu3 %v4020_v18  ;;  %v4413_v36 = vpack.c.bf16 %v1571_v24, %v1569_v53 }
 0x148   :  { %v1128_v25 = vpop.f32.mrf.mxu2  ;;  %v1032_v4 = vpop.f32.mrf.mxu0 }
 0x149   :  { %v1129_v26 = vadd.f32 %v1128_v25, %v1080_v14  ;;  %v1033_v27 = vadd.f32 %v1032_v4, %v4074_v10  ;;  %v1081_v5 = vpop.f32.mrf.mxu1  ;;  %v3115_v10 = vld [vmem:[%s4946_s1 + $0x2a4] sm:$0xf] }
 0x14a   :  { %v2774_v8 = vor.u32 %v3115_v10, %v2771_v33  ;;  %v2873_v10 = vld [vmem:[%s4948_s3 + $0x40] sm:$0xf] }
 0x14b   :  { %v1082_v28 = vadd.f32 %v1081_v5, %v1033_v27  ;;  %v1541_v11 = vmul.f32 0.01, %v1129_v26  ;;  %vm1509_vm5 = vcmp.gt.f32.partialorder %v1129_v26, 0.0 }
 0x14c   :  { %1408 = vmatpush.bf16.msrb.mxu0 %v2774_v8 }
 0x14d   :  { %v1573_v55 = vsel %vm1509_vm5, %v1129_v26, %v1541_v11 }
 0x150   :  { %v1130_v19 = vpop.f32.mrf.mxu2  ;;  %v1035_v34 = vpop.f32.mrf.mxu0 }
 0x151   :  { %v1131_v57 = vadd.f32 %v1130_v19, %v1082_v28  ;;  %v1036_v18 = vadd.f32 %v1035_v34, %v4094_v42  ;;  %v1084_v6 = vpop.f32.mrf.mxu1  ;;  %v2881_v34 = vld [vmem:[%s4948_s3 + $0x50] sm:$0xf] }
 0x153   :  { %vm1511_vm6 = vcmp.gt.f32.partialorder %v1131_v57, 0.0  ;;  %v1543_v12 = vmul.f32 0.01, %v1131_v57  ;;  %v1085_v7 = vadd.f32 %v1084_v6, %v1036_v18  ;;  %1230 = vmatmul.bf16.gmra.mxu0 %v3637_v43  ;;  %v3140_v6 = vld [vmem:[%s4948_s3 + $0x54] sm:$0xf0] }
 0x154   :  { %1279 = vmatmul.bf16.gmra.mxu1 %v3639_v44 }
 0x155   :  { %1328 = vmatmul.bf16.gmra.mxu2 %v3641_v45  ;;  %v1575_v42 = vsel %vm1511_vm6, %v1131_v57, %v1543_v12  ;;  %v4431_v45 = vpop.f32.mrf.mxu3  ;;  %v2882_v12 = vor.u32 %v3140_v6, %v2881_v34 }
 0x156   :  { %1377 = vmatmul.bf16.gmra.mxu3 %v4067_v54  ;;  %v4429_v9 = vpack.c.bf16 %v1575_v42, %v1573_v55 }
 0x158   :  { %v1133_v43 = vpop.f32.mrf.mxu2  ;;  %v1037_v15 = vpop.f32.mrf.mxu0 }
 0x159   :  { %v1134_v44 = vadd.f32 %v1133_v43, %v1085_v7  ;;  %v1038_v13 = vadd.f32 %v1037_v15, %v4121_v63  ;;  %v1086_v46 = vpop.f32.mrf.mxu1  ;;  %v3144_v63 = vld [vmem:[%s4948_s3 + $0x74] sm:$0xf0] }
 0x15a   :  { %v2898_v25 = vor.u32 %v3144_v63, %v2897_v0 }
 0x15b   :  { %v1087_v41 = vadd.f32 %v1086_v46, %v1038_v13  ;;  %v1545_v37 = vmul.f32 0.01, %v1134_v44  ;;  %vm1513_vm7 = vcmp.gt.f32.partialorder %v1134_v44, 0.0  ;;  %v2865_v46 = vld [vmem:[%s4948_s3 + $0x30] sm:$0xf] }
 0x15c   :  { %1811 = vmatpush.bf16.msrb.mxu2 %v2898_v25  ;;  %v2849_v25 = vld [vmem:[%s4948_s3 + $0x10] sm:$0xf] }
 0x15d   :  { %v4438_v53 = vpop.f32.mrf.mxu3  ;;  %v1577_v26 = vsel %vm1513_vm7, %v1134_v44, %v1545_v37  ;;  %v2755_v37 = vld [vmem:[%s4946_s1 + $0x288] sm:$0xf0] }
 0x160   :  { %v1135_v60 = vpop.f32.mrf.mxu2  ;;  %v1040_v50 = vpop.f32.mrf.mxu0 }
 0x161   :  { %v1136_v49 = vadd.f32 %v1135_v60, %v1087_v41  ;;  %v1041_v54 = vadd.f32 %v1040_v50, %v4165_v48  ;;  %v1089_v14 = vpop.f32.mrf.mxu1  ;;  %v3113_v48 = vld [vmem:[%s4946_s1 + $0x294] sm:$0xf]  ;;  %v3136_v60 = vld [vmem:[%s4948_s3 + $0x34] sm:$0xf0] }
 0x163   :  { %vm1515_vm8 = vcmp.gt.f32.partialorder %v1136_v49, 0.0  ;;  %v1547_v51 = vmul.f32 0.01, %v1136_v49  ;;  %v1090_v24 = vadd.f32 %v1089_v14, %v1041_v54  ;;  %1235 = vmatmul.bf16.gmra.mxu0 %v3685_v1  ;;  %v2766_v1 = vor.u32 %v3113_v48, %v2763_v16 }
 0x164   :  { %1284 = vmatmul.bf16.gmra.mxu1 %v3687_v2  ;;  %v2889_v2 = vld [vmem:[%s4948_s3 + $0x60] sm:$0xf] }
 0x165   :  { %1333 = vmatmul.bf16.gmra.mxu2 %v3689_v3  ;;  %v1579_v4 = vsel %vm1515_vm8, %v1136_v49, %v1547_v51  ;;  %v3142_v3 = vld [vmem:[%s4948_s3 + $0x64] sm:$0xf0]  ;;  %1409 = vmatpush.bf16.msrb.mxu0 %v2766_v1  ;;  %v4468_v7 = vpop.f32.mrf.mxu3  ;;  %v2866_v49 = vor.u32 %v3136_v60, %v2865_v46  ;;  %v3160_v60 = vld [vmem:[%s4948_s3 + $0xf4] sm:$0xf0] }
 0x166   :  { %1382 = vmatmul.bf16.gmra.mxu3 %v4114_v32  ;;  %v4453_v27 = vpack.c.bf16 %v1579_v4, %v1577_v26  ;;  %v2890_v28 = vor.u32 %v3142_v3, %v2889_v2  ;;  %v3132_v4 = vld [vmem:[%s4948_s3 + $0x14] sm:$0xf0]  ;;  %v2841_v2 = vld [vmem:[%s4948_s3] sm:$0xf] }
 0x167   :  { %v2850_v1 = vor.u32 %v3132_v4, %v2849_v25  ;;  %v3159_v25 = vld [vmem:[%s4948_s3 + $0xf4] sm:$0xf]  ;;  %v2963_v4 = vld [vmem:[%s4948_s3 + $0xf8] sm:$0xf0] }
 0x168   :  { %v1138_v5 = vpop.f32.mrf.mxu2  ;;  %v1042_v11 = vpop.f32.mrf.mxu0  ;;  %1812 = vmatpush.bf16.msrb.mxu2 %v2890_v28 }
 0x169   :  { %v1139_v19 = vadd.f32 %v1138_v5, %v1090_v24  ;;  %v1043_v57 = vadd.f32 %v1042_v11, %v4216_v61  ;;  %v1091_v32 = vpop.f32.mrf.mxu1  ;;  %v3138_v61 = vld [vmem:[%s4948_s3 + $0x44] sm:$0xf0] }
 0x16a   :  { %v2874_v55 = vor.u32 %v3138_v61, %v2873_v10 }
 0x16b   :  { %v1092_v18 = vadd.f32 %v1091_v32, %v1043_v57  ;;  %v1549_v42 = vmul.f32 0.01, %v1139_v19  ;;  %vm1517_vm9 = vcmp.gt.f32.partialorder %v1139_v19, 0.0 }
 0x16c   :  { %1813 = vmatpush.bf16.msrb.mxu2 %v2882_v12 }
 0x16d   :  { %v1581_v50 = vsel %vm1517_vm9, %v1139_v19, %v1549_v42  ;;  %v4501_v51 = vpop.f32.mrf.mxu3 }
 0x170   :  { %v1140_v33 = vpop.f32.mrf.mxu2  ;;  %v1045_v43 = vpop.f32.mrf.mxu0  ;;  %1814 = vmatpush.bf16.msrb.mxu2 %v2874_v55 }
 0x171   :  { %v1141_v8 = vadd.f32 %v1140_v33, %v1092_v18  ;;  %v1046_v44 = vadd.f32 %v1045_v43, %v4260_v17  ;;  %v1094_v15 = vpop.f32.mrf.mxu1  ;;  %v3111_v17 = vld [vmem:[%s4946_s1 + $0x284] sm:$0xf] }
 0x173   :  { %vm1519_vm10 = vcmp.gt.f32.partialorder %v1141_v8, 0.0  ;;  %v1551_v13 = vmul.f32 0.01, %v1141_v8  ;;  %v1095_v41 = vadd.f32 %v1094_v15, %v1046_v44  ;;  %1240 = vmatmul.bf16.gmra.mxu0 %v3757_v38  ;;  %v2758_v38 = vor.u32 %v3111_v17, %v2755_v37  ;;  %v4989_v17 = vld [vmem:[#allocation5_spill] sm:$0xff] }
 0x174   :  { %1289 = vmatmul.bf16.gmra.mxu1 %v3759_v39  ;;  %1815 = vmatpush.bf16.msrb.mxu2 %v2866_v49  ;;  %v2857_v39 = vld [vmem:[%s4948_s3 + $0x20] sm:$0xf] }
 0x175   :  { %1338 = vmatmul.bf16.gmra.mxu2 %v3761_v40  ;;  %v1583_v54 = vsel %vm1519_vm10, %v1141_v8, %v1551_v13  ;;  %v3134_v40 = vld [vmem:[%s4948_s3 + $0x24] sm:$0xf0]  ;;  %1410 = vmatpush.bf16.msrb.mxu0 %v2758_v38  ;;  %v4516_v57 = vpop.f32.mrf.mxu3 }
 0x176   :  { %1387 = vmatmul.bf16.gmra.mxu3 %v4203_v62  ;;  %v4493_v14 = vpack.c.bf16 %v1583_v54, %v1581_v50  ;;  %v2858_v24 = vor.u32 %v3134_v40, %v2857_v39  ;;  %v4990_v54 = vld [vmem:[#allocation20_spill] sm:$0xff] }
 0x178   :  { %v1143_v0 = vpop.f32.mrf.mxu2  ;;  %v1047_v48 = vpop.f32.mrf.mxu0  ;;  %1816 = vmatpush.bf16.msrb.mxu2 %v2858_v24 }
 0x179   :  { %v1144_v63 = vadd.f32 %v1143_v0, %v1095_v41  ;;  %v1048_v62 = vadd.f32 %v1047_v48, %v4311_v35  ;;  %v1096_v16 = vpop.f32.mrf.mxu1  ;;  %v3130_v35 = vld [vmem:[%s4948_s3 + $0x4] sm:$0xf0]  ;;  %v3181_v0 = vld [vmem:[%s4947_s2] sm:$0x3] }
 0x17a   :  { %v2842_v5 = vor.u32 %v3130_v35, %v2841_v2 }
 0x17b   :  { %v1097_v26 = vadd.f32 %v1096_v16, %v1048_v62  ;;  %v1553_v28 = vmul.f32 0.01, %v1144_v63  ;;  %vm1521_vm11 = vcmp.gt.f32.partialorder %v1144_v63, 0.0  ;;  %v3143_v62 = vld [vmem:[%s4948_s3 + $0x74] sm:$0xf] }
 0x17c   :  { %1817 = vmatpush.bf16.msrb.mxu2 %v2850_v1  ;;  %v2899_v16 = vld [vmem:[%s4948_s3 + $0x78] sm:$0xf0]  ;;  %v2966_v1 = vor.u32 %v3159_v25, %v2963_v4 }
 0x17d   :  { %v1585_v12 = vsel %vm1521_vm11, %v1144_v63, %v1553_v28  ;;  %v4526_v43 = vpop.f32.mrf.mxu3 }
 0x17e   :  { %1958 = vmatpush.bf16.msra.mxu1 %v2966_v1  ;;  %v3139_v1 = vld [vmem:[%s4948_s3 + $0x54] sm:$0xf] }
 0x180   :  { %v1145_v3 = vpop.f32.mrf.mxu2  ;;  %v1050_v11 = vpop.f32.mrf.mxu0  ;;  %1818 = vmatpush.bf16.msrb.mxu2 %v2842_v5 }
 0x181   :  { %v1146_v19 = vadd.f32 %v1145_v3, %v1097_v26  ;;  %v1051_v32 = vadd.f32 %v1050_v11, %v4331_v52  ;;  %v1099_v34 = vpop.f32.mrf.mxu1  ;;  %v2902_v26 = vor.u32 %v3143_v62, %v2899_v16 }
 0x183   :  { %vm1523_vm12 = vcmp.gt.f32.partialorder %v1146_v19, 0.0  ;;  %v1555_v18 = vmul.f32 0.01, %v1146_v19  ;;  %v1100_v6 = vadd.f32 %v1099_v34, %v1051_v32  ;;  %1245 = vmatmul.bf16.gmra.mxu0 %v3829_v21  ;;  %v4991_v34 = vld [vmem:[#allocation6_spill] sm:$0xff] }
 0x184   :  { %1294 = vmatmul.bf16.gmra.mxu1 %v3831_v22  ;;  %1909 = vmatpush.bf16.msra.mxu0 %v2902_v26 }
 0x185   :  { %1343 = vmatmul.bf16.gmra.mxu2 %v3839_v29  ;;  %v1587_v10 = vsel %vm1523_vm12, %v1146_v19, %v1555_v18  ;;  %v4538_v50 = vpop.f32.mrf.mxu3  ;;  %v2953_v18 = vld [vmem:[%s4948_s3 + $0xe0] sm:$0xf] }
 0x186   :  { %1392 = vmatmul.bf16.gmra.mxu3 %v4298_v56  ;;  %v4523_v61 = vpack.c.bf16 %v1587_v10, %v1585_v12 }
 0x188   :  { %v1148_v33 = vpop.f32.mrf.mxu2  ;;  %v1052_v52 = vpop.f32.mrf.mxu0 }
 0x189   :  { %v1149_v55 = vadd.f32 %v1148_v33, %v1100_v6  ;;  %v1053_v42 = vadd.f32 %v1052_v52, %v4358_v20  ;;  %v1101_v8 = vpop.f32.mrf.mxu1  ;;  %v2961_v20 = vld [vmem:[%s4948_s3 + $0xf0] sm:$0xf] }
 0x18a   :  { %v2962_v37 = vor.u32 %v3160_v60, %v2961_v20  ;;  %v4992_v6 = vld [vmem:[#allocation7_spill] sm:$0xff] }
 0x18b   :  { %v1102_v44 = vadd.f32 %v1101_v8, %v1053_v42  ;;  %v1557_v15 = vmul.f32 0.01, %v1149_v55  ;;  %vm1525_vm13 = vcmp.gt.f32.partialorder %v1149_v55, 0.0 }
 0x18c   :  { %1860 = vmatpush.bf16.msrb.mxu3 %v2962_v37 }
 0x18d   :  { %v4593_v60 = vpop.f32.mrf.mxu3 }
 0x190   :  { %v1150_v21 = vpop.f32.mrf.mxu2  ;;  %v1055_v13 = vpop.f32.mrf.mxu0 }
 0x191   :  { %v1151_v22 = vadd.f32 %v1150_v21, %v1102_v44  ;;  %v1056_v29 = vadd.f32 %v1055_v13, %v4372_v31  ;;  %v1104_v46 = vpop.f32.mrf.mxu1  ;;  %v1589_v31 = vsel %vm1525_vm13, %v1149_v55, %v1557_v15  ;;  %v3141_v13 = vld [vmem:[%s4948_s3 + $0x64] sm:$0xf] }
 0x193   :  { %vm1527_vm14 = vcmp.gt.f32.partialorder %v1151_v22, 0.0  ;;  %v1559_v56 = vmul.f32 0.01, %v1151_v22  ;;  %v1105_v41 = vadd.f32 %v1104_v46, %v1056_v29  ;;  %1250 = vmatmul.bf16.gmra.mxu0 %v3883_v58  ;;  %v2891_v29 = vld [vmem:[%s4948_s3 + $0x68] sm:$0xf0] }
 0x194   :  { %1299 = vmatmul.bf16.gmra.mxu1 %v3885_v59  ;;  %v4546_v59 = vperm.slane %v3181_v0, 1  ;;  %v3157_v46 = vld [vmem:[%s4948_s3 + $0xe4] sm:$0xf] }
 0x195   :  { %1348 = vmatmul.bf16.gmra.mxu2 %v4989_v17  ;;  %v1591_v49 = vsel %vm1527_vm14, %v1151_v22, %v1559_v56  ;;  %v2955_v56 = vld [vmem:[%s4948_s3 + $0xe8] sm:$0xf0]  ;;  %v4994_v0 = vld [vmem:[#allocation9_spill] sm:$0xff]  ;;  %v4609_v62 = vpop.f32.mrf.mxu3 }
 0x196   :  { %1397 = vmatmul.bf16.gmra.mxu3 %v4990_v54  ;;  %v4541_v58 = vpack.c.bf16 %v1591_v49, %v1589_v31  ;;  %v1170_v52 = vadd.f32 %v4431_v45, %v4546_v59  ;;  %v2894_v45 = vor.u32 %v3141_v13, %v2891_v29  ;;  %v2958_v20 = vor.u32 %v3157_v46, %v2955_v56  ;;  %v3137_v46 = vld [vmem:[%s4948_s3 + $0x44] sm:$0xf] }
 0x197   :  { %v3153_v56 = vld [vmem:[%s4948_s3 + $0xc4] sm:$0xf] }
 0x198   :  { %v1153_v38 = vpop.f32.mrf.mxu2  ;;  %v1057_v40 = vpop.f32.mrf.mxu0  ;;  %1910 = vmatpush.bf16.msra.mxu0 %v2894_v45  ;;  %1959 = vmatpush.bf16.msra.mxu1 %v2958_v20  ;;  %v2875_v45 = vld [vmem:[%s4948_s3 + $0x48] sm:$0xf0] }
 0x199   :  { %v1154_v39 = vadd.f32 %v1153_v38, %v1105_v41  ;;  %v1058_v24 = vadd.f32 %v1057_v40, %v4375_v23  ;;  %v1106_v63 = vpop.f32.mrf.mxu1  ;;  %v1168_v23 = vadd.f32 %v4416_v30, %v4546_v59  ;;  %v3158_v30 = vld [vmem:[%s4948_s3 + $0xe4] sm:$0xf0]  ;;  %v1173_v41 = vadd.f32 %v4438_v53, %v4546_v59  ;;  %v2945_v40 = vld [vmem:[%s4948_s3 + $0xd0] sm:$0xf]  ;;  %v3156_v53 = vld [vmem:[%s4948_s3 + $0xd4] sm:$0xf0] }
 0x19a   :  { %v2954_v12 = vor.u32 %v3158_v30, %v2953_v18  ;;  %v2939_v20 = vld [vmem:[%s4948_s3 + $0xc8] sm:$0xf0] }
 0x19b   :  { %v1107_v48 = vadd.f32 %v1106_v63, %v1058_v24  ;;  %v1561_v35 = vmul.f32 0.01, %v1154_v39  ;;  %vm1529_vm15 = vcmp.gt.f32.partialorder %v1154_v39, 0.0  ;;  %v2946_v24 = vor.u32 %v3156_v53, %v2945_v40 }
 0x19c   :  { %1861 = vmatpush.bf16.msrb.mxu3 %v2954_v12  ;;  %v1175_v63 = vadd.f32 %v4468_v7, %v4546_v59  ;;  %v3155_v7 = vld [vmem:[%s4948_s3 + $0xd4] sm:$0xf]  ;;  %v4995_v12 = vld [vmem:[#allocation10_spill] sm:$0xff] }
 0x19d   :  { %v1593_v10 = vsel %vm1529_vm15, %v1154_v39, %v1561_v35  ;;  %v4993_v39 = vld [vmem:[#allocation8_spill] sm:$0xff]  ;;  %v4629_v30 = vpop.f32.mrf.mxu3 }
 0x1a0   :  { %v1155_v2 = vpop.f32.mrf.mxu2  ;;  %v1216_v5 = vpop.f32.mrf.mxu0  ;;  %1862 = vmatpush.bf16.msrb.mxu3 %v2946_v24  ;;  %v2929_v24 = vld [vmem:[%s4948_s3 + $0xb0] sm:$0xf] }
 0x1a1   :  { %v1156_v3 = vadd.f32 %v1155_v2, %v1107_v48  ;;  %v1217_v28 = vadd.f32 %v1216_v5, %v1168_v23  ;;  %v1265_v19 = vpop.f32.mrf.mxu1  ;;  %v2883_v2 = vld [vmem:[%s4948_s3 + $0x58] sm:$0xf0]  ;;  %v1178_v5 = vadd.f32 %v4501_v51, %v4546_v59  ;;  %v3154_v51 = vld [vmem:[%s4948_s3 + $0xc4] sm:$0xf0] }
 0x1a2   :  { %v2886_v35 = vor.u32 %v3139_v1, %v2883_v2 }
 0x1a3   :  { %vm1531_vm1 = vcmp.gt.f32.partialorder %v1156_v3, 0.0  ;;  %v1563_v11 = vmul.f32 0.01, %v1156_v3  ;;  %v1266_v32 = vadd.f32 %v1265_v19, %v1217_v28  ;;  %1411 = vmatmul.bf16.vlgmr.msrb.gmra.mxu0 %v4991_v34 }
 0x1a4   :  { %2831 = vmatmul.msk.bf16.vlgmr.msrb.gmra.mxu1 %vm790_vm0, %v4992_v6  ;;  %1911 = vmatpush.bf16.msra.mxu0 %v2886_v35 }
 0x1a5   :  { %1819 = vmatmul.bf16.vlgmr.msrb.gmra.mxu2 %v4398_v47  ;;  %v1595_v33 = vsel %vm1531_vm1, %v1156_v3, %v1563_v11  ;;  %v2947_v3 = vld [vmem:[%s4948_s3 + $0xd8] sm:$0xf0] }
 0x1a6   :  { %v4573_v55 = vpack.c.bf16 %v1595_v33, %v1593_v10  ;;  %v2950_v28 = vor.u32 %v3155_v7, %v2947_v3  ;;  %v2937_v10 = vld [vmem:[%s4948_s3 + $0xc0] sm:$0xf]  ;;  %v4996_v33 = vld [vmem:[#allocation11_spill] sm:$0xff] }
 0x1a7   :  { %v3135_v3 = vld [vmem:[%s4948_s3 + $0x34] sm:$0xf] }
 0x1a8   :  { %v1314_v42 = vpop.f32.mrf.mxu2  ;;  %v1218_v44 = vpop.f32.mrf.mxu0  ;;  %1960 = vmatpush.bf16.msra.mxu1 %v2950_v28  ;;  %v3151_v28 = vld [vmem:[%s4948_s3 + $0xb4] sm:$0xf] }
 0x1a9   :  { %v4577_v8 = vadd.f32 %v1314_v42, %v1266_v32  ;;  %v1219_v21 = vadd.f32 %v1218_v44, %v1170_v52  ;;  %v1267_v15 = vpop.f32.mrf.mxu1  ;;  %v2938_v52 = vor.u32 %v3154_v51, %v2937_v10  ;;  %v1180_v42 = vadd.f32 %v4516_v57, %v4546_v59  ;;  %v4654_v57 = vpop.f32.mrf.mxu3 }
 0x1ab   :  { %v1268_v22 = vadd.f32 %v1267_v15, %v1219_v21  ;;  %1863 = vmatpush.bf16.msrb.mxu3 %v2938_v52 }
 0x1b0   :  { %v1316_v17 = vpop.f32.mrf.mxu2  ;;  %v1221_v31 = vpop.f32.mrf.mxu0 }
 0x1b1   :  { %v4595_v37 = vadd.f32 %v1316_v17, %v1268_v22  ;;  %v1222_v49 = vadd.f32 %v1221_v31, %v1173_v41  ;;  %v1270_v54 = vpop.f32.mrf.mxu1  ;;  %v2878_v41 = vor.u32 %v3137_v46, %v2875_v45  ;;  %v1183_v17 = vadd.f32 %v4526_v43, %v4546_v59  ;;  %v3152_v43 = vld [vmem:[%s4948_s3 + $0xb4] sm:$0xf0]  ;;  %v3133_v45 = vld [vmem:[%s4948_s3 + $0x24] sm:$0xf] }
 0x1b2   :  { %v2942_v31 = vor.u32 %v3153_v56, %v2939_v20  ;;  %v2859_v56 = vld [vmem:[%s4948_s3 + $0x28] sm:$0xf0] }
 0x1b3   :  { %v1271_v38 = vadd.f32 %v1270_v54, %v1222_v49  ;;  %1416 = vmatmul.bf16.gmra.mxu0 %v4993_v39  ;;  %v2862_v20 = vor.u32 %v3133_v45, %v2859_v56 }
 0x1b4   :  { %2832 = vmatmul.msk.bf16.gmra.mxu1 %vm790_vm0, %v4994_v0  ;;  %1912 = vmatpush.bf16.msra.mxu0 %v2878_v41  ;;  %v4997_v0 = vld [vmem:[#allocation12_spill] sm:$0xff]  ;;  %v3149_v41 = vld [vmem:[%s4948_s3 + $0xa4] sm:$0xf] }
 0x1b5   :  { %1824 = vmatmul.bf16.gmra.mxu2 %v4413_v36  ;;  %1961 = vmatpush.bf16.msra.mxu1 %v2942_v31  ;;  %v1193_v31 = vadd.f32 %v4629_v30, %v4546_v59  ;;  %v5002_v30 = vld [vmem:[#allocation17_spill] sm:$0xff] }
 0x1b8   :  { %v1319_v48 = vpop.f32.mrf.mxu2  ;;  %v1223_v25 = vpop.f32.mrf.mxu0 }
 0x1b9   :  { %v4611_v16 = vadd.f32 %v1319_v48, %v1271_v38  ;;  %v1224_v26 = vadd.f32 %v1223_v25, %v1175_v63  ;;  %v1272_v4 = vpop.f32.mrf.mxu1  ;;  %v4998_v63 = vld [vmem:[#allocation13_spill] sm:$0xff]  ;;  %v2930_v48 = vor.u32 %v3152_v43, %v2929_v24  ;;  %v4673_v25 = vpop.f32.mrf.mxu3  ;;  %v2913_v24 = vld [vmem:[%s4948_s3 + $0x90] sm:$0xf]  ;;  %v3148_v43 = vld [vmem:[%s4948_s3 + $0x94] sm:$0xf0] }
 0x1bb   :  { %v1273_v23 = vadd.f32 %v1272_v4, %v1224_v26  ;;  %1864 = vmatpush.bf16.msrb.mxu3 %v2930_v48  ;;  %v1185_v26 = vadd.f32 %v4538_v50, %v4546_v59  ;;  %v2914_v48 = vor.u32 %v3148_v43, %v2913_v24  ;;  %v5005_v24 = vld [vmem:[#allocation21_spill] sm:$0xff]  ;;  %v5006_v43 = vld [vmem:[#allocation22_spill] sm:$0xff] }
 0x1c0   :  { %v1321_v19 = vpop.f32.mrf.mxu2  ;;  %v1226_v32 = vpop.f32.mrf.mxu0 }
 0x1c1   :  { %v4627_v11 = vadd.f32 %v1321_v19, %v1273_v23  ;;  %v1227_v34 = vadd.f32 %v1226_v32, %v1178_v5  ;;  %v1275_v18 = vpop.f32.mrf.mxu1  ;;  %v2867_v5 = vld [vmem:[%s4948_s3 + $0x38] sm:$0xf0]  ;;  %v1188_v32 = vadd.f32 %v4593_v60, %v4546_v59  ;;  %v3150_v60 = vld [vmem:[%s4948_s3 + $0xa4] sm:$0xf0] }
 0x1c2   :  { %v2870_v50 = vor.u32 %v3135_v3, %v2867_v5  ;;  %v2931_v19 = vld [vmem:[%s4948_s3 + $0xb8] sm:$0xf0] }
 0x1c3   :  { %v1276_v6 = vadd.f32 %v1275_v18, %v1227_v34  ;;  %1421 = vmatmul.bf16.gmra.mxu0 %v4995_v12  ;;  %v2934_v34 = vor.u32 %v3151_v28, %v2931_v19  ;;  %v2915_v3 = vld [vmem:[%s4948_s3 + $0x98] sm:$0xf0]  ;;  %v1198_v28 = vadd.f32 %v4673_v25, %v4546_v59  ;;  %v3129_v19 = vld [vmem:[%s4948_s3 + $0x4] sm:$0xf]  ;;  %v5004_v25 = vld [vmem:[#allocation19_spill] sm:$0xff] }
 0x1c4   :  { %2833 = vmatmul.msk.bf16.gmra.mxu1 %vm790_vm0, %v4996_v33  ;;  %1913 = vmatpush.bf16.msra.mxu0 %v2870_v50 }
 0x1c5   :  { %1829 = vmatmul.bf16.gmra.mxu2 %v4429_v9  ;;  %1962 = vmatpush.bf16.msra.mxu1 %v2934_v34 }
 0x1c8   :  { %v1324_v44 = vpop.f32.mrf.mxu2  ;;  %v1228_v15 = vpop.f32.mrf.mxu0  ;;  %1914 = vmatpush.bf16.msra.mxu0 %v2862_v20  ;;  %v3145_v20 = vld [vmem:[%s4948_s3 + $0x84] sm:$0xf] }
 0x1c9   :  { %v4643_v21 = vadd.f32 %v1324_v44, %v1276_v6  ;;  %v1229_v22 = vadd.f32 %v1228_v15, %v1180_v42  ;;  %v1277_v13 = vpop.f32.mrf.mxu1  ;;  %v4693_v6 = vpop.f32.mrf.mxu3  ;;  %v4999_v42 = vld [vmem:[#allocation14_spill] sm:$0xff]  ;;  %v2921_v44 = vld [vmem:[%s4948_s3 + $0xa0] sm:$0xf]  ;;  %v5000_v15 = vld [vmem:[#allocation15_spill] sm:$0xff] }
 0x1cb   :  { %v1278_v29 = vadd.f32 %v1277_v13, %v1229_v22  ;;  %v2922_v22 = vor.u32 %v3150_v60, %v2921_v44  ;;  %v2905_v44 = vld [vmem:[%s4948_s3 + $0x80] sm:$0xf]  ;;  %v3146_v60 = vld [vmem:[%s4948_s3 + $0x84] sm:$0xf0] }
 0x1cc   :  { %v2906_v45 = vor.u32 %v3146_v60, %v2905_v44 }
 0x1cd   :  { %1865 = vmatpush.bf16.msrb.mxu3 %v2922_v22 }
 0x1d0   :  { %v1326_v49 = vpop.f32.mrf.mxu2  ;;  %v1231_v38 = vpop.f32.mrf.mxu0 }
 0x1d1   :  { %v4661_v54 = vadd.f32 %v1326_v49, %v1278_v29  ;;  %v1232_v39 = vadd.f32 %v1231_v38, %v1183_v17  ;;  %v1280_v40 = vpop.f32.mrf.mxu1  ;;  %v1202_v46 = vpop.f32.mrf.mxu3  ;;  %v2923_v17 = vld [vmem:[%s4948_s3 + $0xa8] sm:$0xf0]  ;;  %1866 = vmatpush.bf16.msrb.mxu3 %v2914_v48 }
 0x1d2   :  { %v2926_v49 = vor.u32 %v3149_v41, %v2923_v17  ;;  %v1203_v41 = vadd.f32 %v1202_v46, %v4546_v59  ;;  %v2907_v17 = vld [vmem:[%s4948_s3 + $0x88] sm:$0xf0] }
 0x1d3   :  { %v1281_v53 = vadd.f32 %v1280_v40, %v1232_v39  ;;  %1426 = vmatmul.bf16.gmra.mxu0 %v4997_v0  ;;  %v5001_v0 = vld [vmem:[#allocation16_spill] sm:$0xff] }
 0x1d4   :  { %2834 = vmatmul.msk.bf16.gmra.mxu1 %vm790_vm0, %v4998_v63 }
 0x1d5   :  { %1834 = vmatmul.bf16.gmra.mxu2 %v4453_v27  ;;  %1963 = vmatpush.bf16.msra.mxu1 %v2926_v49 }
 0x1d6   :  { %1867 = vmatpush.bf16.msrb.mxu3 %v2906_v45 }
 0x1d8   :  { %v1329_v4 = vpop.f32.mrf.mxu2  ;;  %v1233_v1 = vpop.f32.mrf.mxu0 }
 0x1d9   :  { %v4677_v23 = vadd.f32 %v1329_v4, %v1281_v53  ;;  %v1234_v2 = vadd.f32 %v1233_v1, %v1185_v26  ;;  %v1282_v7 = vpop.f32.mrf.mxu1  ;;  %v4736_v63 = vpop.f32.mrf.mxu3  ;;  %v3131_v1 = vld [vmem:[%s4948_s3 + $0x14] sm:$0xf] }
 0x1db   :  { %v1283_v35 = vadd.f32 %v1282_v7, %v1234_v2  ;;  %v2851_v2 = vld [vmem:[%s4948_s3 + $0x18] sm:$0xf0] }
 0x1dc   :  { %v2854_v7 = vor.u32 %v3131_v1, %v2851_v2 }
 0x1de   :  { %1915 = vmatpush.bf16.msra.mxu0 %v2854_v7 }
 0x1e0   :  { %v1331_v18 = vpop.f32.mrf.mxu2  ;;  %v1236_v10 = vpop.f32.mrf.mxu0 }
 0x1e1   :  { %v4695_v12 = vadd.f32 %v1331_v18, %v1283_v35  ;;  %v1237_v51 = vadd.f32 %v1236_v10, %v1188_v32  ;;  %v1285_v33 = vpop.f32.mrf.mxu1  ;;  %v3147_v35 = vld [vmem:[%s4948_s3 + $0x94] sm:$0xf]  ;;  %v1363_v50 = vpop.f32.mrf.mxu3  ;;  %v2843_v32 = vld [vmem:[%s4948_s3 + $0x8] sm:$0xf0] }
 0x1e2   :  { %v2918_v5 = vor.u32 %v3147_v35, %v2915_v3  ;;  %v2846_v34 = vor.u32 %v3129_v19, %v2843_v32  ;;  %v1364_v2 = vadd.f32 %v1363_v50, %v4577_v8  ;;  %v3168_v3 = vld [vmem:[%s4950_s5 + $0x38] sm:$0xff] }
 0x1e3   :  { %v4697_v52 = vadd.f32 %v1285_v33, %v1237_v51  ;;  %1431 = vmatmul.bf16.gmra.mxu0 %v4999_v42  ;;  %v5003_v42 = vld [vmem:[#allocation18_spill] sm:$0xff]  ;;  %2251 = vmatpush.bf16.msra.mxu2 %v3168_v3 }
 0x1e4   :  { %2835 = vmatmul.msk.bf16.gmra.mxu1 %vm790_vm0, %v5000_v15  ;;  %1916 = vmatpush.bf16.msra.mxu0 %v2846_v34  ;;  %v3176_v34 = vld [vmem:[%s4950_s5 + $0x78] sm:$0xff] }
 0x1e5   :  { %1839 = vmatmul.bf16.gmra.mxu2 %v4493_v14  ;;  %1964 = vmatpush.bf16.msra.mxu1 %v2918_v5 }
 0x1e6   :  { %2300 = vmatpush.bf16.msra.mxu3 %v3176_v34 }
 0x1e8   :  { %v4709_v13 = vpop.f32.mrf.mxu0 }
 0x1e9   :  { %v4711_v29 = vpop.f32.mrf.mxu1  ;;  %v1365_v15 = vpop.f32.mrf.mxu3 }
 0x1f0   :  { %v1241_v38 = vpop.f32.mrf.mxu0 }
 0x1f1   :  { %v1242_v39 = vadd.f32 %v1241_v38, %v1193_v31  ;;  %v1290_v40 = vpop.f32.mrf.mxu1  ;;  %v2910_v31 = vor.u32 %v3145_v20, %v2907_v17 }
 0x1f3   :  { %v4727_v53 = vadd.f32 %v1290_v40, %v1242_v39  ;;  %1436 = vmatmul.bf16.gmra.mxu0 %v5001_v0  ;;  %1965 = vmatpush.bf16.msra.mxu1 %v2910_v31  ;;  %v1368_v40 = vpop.f32.mrf.mxu3 }
 0x1f4   :  { %2836 = vmatmul.msk.bf16.gmra.mxu1 %vm790_vm0, %v5002_v30  ;;  %v1369_v60 = vadd.f32 %v1368_v40, %v4611_v16 }
 0x1f5   :  { %1844 = vmatmul.bf16.gmra.mxu2 %v4523_v61 }
 0x1f8   :  { %v4741_v26 = vpop.f32.mrf.mxu0 }
 0x1f9   :  { %v4743_v4 = vpop.f32.mrf.mxu1 }
 0x1fb   :  { %v1370_v48 = vpop.f32.mrf.mxu3 }
 0x1fc   :  { %v1371_v20 = vadd.f32 %v1370_v48, %v4627_v11 }
 0x200   :  { %v1246_v18 = vpop.f32.mrf.mxu0 }
 0x201   :  { %v1247_v10 = vadd.f32 %v1246_v18, %v1198_v28  ;;  %v1295_v51 = vpop.f32.mrf.mxu1  ;;  %v1366_v28 = vadd.f32 %v1365_v15, %v4595_v37 }
 0x203   :  { %v4765_v33 = vadd.f32 %v1295_v51, %v1247_v10  ;;  %1441 = vmatmul.bf16.gmra.mxu0 %v5003_v42  ;;  %v1373_v5 = vpop.f32.mrf.mxu3 }
 0x204   :  { %2837 = vmatmul.msk.bf16.gmra.mxu1 %vm790_vm0, %v5004_v25  ;;  %v1374_v48 = vadd.f32 %v1373_v5, %v4643_v21  ;;  %v3174_v21 = vld [vmem:[%s4950_s5 + $0x68] sm:$0xff] }
 0x205   :  { %1849 = vmatmul.bf16.gmra.mxu2 %v4541_v58 }
 0x208   :  { %v4777_v22 = vpop.f32.mrf.mxu0 }
 0x209   :  { %v4779_v56 = vpop.f32.mrf.mxu1 }
 0x20b   :  { %v1375_v25 = vpop.f32.mrf.mxu3 }
 0x210   :  { %v1251_v49 = vpop.f32.mrf.mxu0 }
 0x211   :  { %v1252_v38 = vadd.f32 %v1251_v49, %v1203_v41  ;;  %v1300_v39 = vpop.f32.mrf.mxu1  ;;  %v3167_v41 = vld [vmem:[%s4950_s5 + $0x30] sm:$0xff] }
 0x212   :  { %2252 = vmatpush.bf16.msra.mxu2 %v3167_v41  ;;  %v3175_v49 = vld [vmem:[%s4950_s5 + $0x70] sm:$0xff] }
 0x213   :  { %v4788_v0 = vadd.f32 %v1300_v39, %v1252_v38  ;;  %1446 = vmatmul.bf16.gmra.mxu0 %v5005_v24  ;;  %v1378_v39 = vpop.f32.mrf.mxu3  ;;  %2301 = vmatpush.bf16.msra.mxu3 %v3175_v49 }
 0x214   :  { %2838 = vmatmul.msk.bf16.gmra.mxu1 %vm790_vm0, %v5006_v43 }
 0x215   :  { %1854 = vmatmul.bf16.gmra.mxu2 %v4573_v55 }
 0x217   :  { %2302 = vmatpush.bf16.msra.mxu3 %v3174_v21 }
 0x218   :  { %v4794_v46 = vpop.f32.mrf.mxu0 }
 0x219   :  { %v4796_v30 = vpop.f32.mrf.mxu1 }
 0x220   :  { %v1412_v1 = vpop.f32.mrf.mxu0 }
 0x221   :  { %v1461_v7 = vpop.f32.mrf.mxu1  ;;  %v1413_v35 = vadd.f32 %v1412_v1, %v1364_v2 }
 0x223   :  { %1917 = vmatmul.bf16.vlgmr.msra.gmra.mxu0 %v4398_v47  ;;  %v1462_v19 = vadd.f32 %v1461_v7, %v1413_v35  ;;  %v1334_v35 = vpop.f32.mrf.mxu2 }
 0x225   :  { %v1534_v50 = vmul.f32 0.01, %v1462_v19  ;;  %vm1502_vm0 = vcmp.gt.f32.partialorder %v1462_v19, 0.0 }
 0x227   :  { %v1566_v51 = vsel %vm1502_vm0, %v1462_v19, %v1534_v50  ;;  %v3166_v19 = vld [vmem:[%s4950_s5 + $0x28] sm:$0xff] }
 0x228   :  { %v1414_v32 = vpop.f32.mrf.mxu0  ;;  %2253 = vmatpush.bf16.msra.mxu2 %v3166_v19 }
 0x229   :  { %v1415_v18 = vadd.f32 %v1414_v32, %v1366_v28  ;;  %v1463_v8 = vpop.f32.mrf.mxu1  ;;  %v1380_v28 = vpop.f32.mrf.mxu3  ;;  %v1376_v32 = vadd.f32 %v1375_v25, %v4661_v54 }
 0x22a   :  { %v1381_v41 = vadd.f32 %v1380_v28, %v4695_v12  ;;  %v1335_v12 = vadd.f32 %v1334_v35, %v4697_v52  ;;  %v3164_v52 = vld [vmem:[%s4950_s5 + $0x18] sm:$0xff] }
 0x22b   :  { %v1464_v10 = vadd.f32 %v1463_v8, %v1415_v18 }
 0x22d   :  { %vm1504_vm2 = vcmp.gt.f32.partialorder %v1464_v10, 0.0  ;;  %v1536_v47 = vmul.f32 0.01, %v1464_v10 }
 0x22f   :  { %v1568_v42 = vsel %vm1504_vm2, %v1464_v10, %v1536_v47 }
 0x230   :  { %v1598_v44 = vpack.c.bf16 %v1568_v42, %v1566_v51  ;;  %v1417_v37 = vpop.f32.mrf.mxu0 }
 0x231   :  { %v1466_v15 = vpop.f32.mrf.mxu1  ;;  %v1418_v45 = vadd.f32 %v1417_v37, %v1369_v60  ;;  %v1383_v51 = vpop.f32.mrf.mxu3  ;;  %v1379_v37 = vadd.f32 %v1378_v39, %v4677_v23  ;;  %v3173_v23 = vld [vmem:[%s4950_s5 + $0x60] sm:$0xff] }
 0x232   :  { %1868 = vmatmul.bf16.vlgmr.msrb.gmra.mxu3 %v1598_v44  ;;  %1966 = vmatmul.bf16.vlgmr.msra.gmra.mxu1 %v1598_v44 }
 0x233   :  { %1922 = vmatmul.bf16.gmra.mxu0 %v4413_v36  ;;  %v1467_v17 = vadd.f32 %v1466_v15, %v1418_v45  ;;  %v3165_v45 = vld [vmem:[%s4950_s5 + $0x20] sm:$0xff]  ;;  %2303 = vmatpush.bf16.msra.mxu3 %v3173_v23 }
 0x234   :  { %2254 = vmatpush.bf16.msra.mxu2 %v3165_v45 }
 0x235   :  { %v1538_v40 = vmul.f32 0.01, %v1467_v17  ;;  %vm1506_vm3 = vcmp.gt.f32.partialorder %v1467_v17, 0.0 }
 0x237   :  { %v1570_v43 = vsel %vm1506_vm3, %v1467_v17, %v1538_v40 }
 0x238   :  { %v1419_v31 = vpop.f32.mrf.mxu0  ;;  %2255 = vmatpush.bf16.msra.mxu2 %v3164_v52 }
 0x239   :  { %v1420_v16 = vadd.f32 %v1419_v31, %v1371_v20  ;;  %v1468_v38 = vpop.f32.mrf.mxu1  ;;  %v1385_v31 = vpop.f32.mrf.mxu3 }
 0x23b   :  { %v1469_v24 = vadd.f32 %v1468_v38, %v1420_v16 }
 0x23d   :  { %vm1508_vm4 = vcmp.gt.f32.partialorder %v1469_v24, 0.0  ;;  %v1540_v36 = vmul.f32 0.01, %v1469_v24 }
 0x23f   :  { %v1572_v1 = vsel %vm1508_vm4, %v1469_v24, %v1540_v36 }
 0x240   :  { %v1422_v2 = vpop.f32.mrf.mxu0  ;;  %v1600_v11 = vpack.c.bf16 %v1572_v1, %v1570_v43 }
 0x241   :  { %v1471_v7 = vpop.f32.mrf.mxu1  ;;  %v1423_v3 = vadd.f32 %v1422_v2, %v1374_v48  ;;  %v1388_v19 = vpop.f32.mrf.mxu3 }
 0x242   :  { %1873 = vmatmul.bf16.gmra.mxu3 %v1600_v11  ;;  %1971 = vmatmul.bf16.gmra.mxu1 %v1600_v11 }
 0x243   :  { %1927 = vmatmul.bf16.gmra.mxu0 %v4429_v9  ;;  %v1472_v34 = vadd.f32 %v1471_v7, %v1423_v3  ;;  %v1336_v9 = vpop.f32.mrf.mxu2  ;;  %v1384_v7 = vadd.f32 %v1383_v51, %v1335_v12 }
 0x245   :  { %v1542_v50 = vmul.f32 0.01, %v1472_v34  ;;  %vm1510_vm5 = vcmp.gt.f32.partialorder %v1472_v34, 0.0 }
 0x247   :  { %v1574_v42 = vsel %vm1510_vm5, %v1472_v34, %v1542_v50 }
 0x248   :  { %v1424_v18 = vpop.f32.mrf.mxu0 }
 0x249   :  { %v1425_v5 = vadd.f32 %v1424_v18, %v1376_v32  ;;  %v1473_v8 = vpop.f32.mrf.mxu1 }
 0x24b   :  { %v1474_v10 = vadd.f32 %v1473_v8, %v1425_v5  ;;  %v1339_v20 = vpop.f32.mrf.mxu2  ;;  %v1195_v5 = vadd.f32 %v4654_v57, %v4546_v59 }
 0x24d   :  { %vm1512_vm6 = vcmp.gt.f32.partialorder %v1474_v10, 0.0  ;;  %v1544_v47 = vmul.f32 0.01, %v1474_v10 }
 0x24f   :  { %v1576_v44 = vsel %vm1512_vm6, %v1474_v10, %v1544_v47  ;;  %v1390_v10 = vpop.f32.mrf.mxu3  ;;  %v1244_v47 = vadd.f32 %v4741_v26, %v1195_v5 }
 0x250   :  { %v1427_v54 = vpop.f32.mrf.mxu0  ;;  %v1602_v25 = vpack.c.bf16 %v1576_v44, %v1574_v42 }
 0x251   :  { %v1476_v60 = vpop.f32.mrf.mxu1  ;;  %v1428_v15 = vadd.f32 %v1427_v54, %v1379_v37  ;;  %v1293_v37 = vadd.f32 %v4743_v4, %v1244_v47  ;;  %v3171_v4 = vld [vmem:[%s4950_s5 + $0x50] sm:$0xff] }
 0x252   :  { %1878 = vmatmul.bf16.gmra.mxu3 %v1602_v25  ;;  %1976 = vmatmul.bf16.gmra.mxu1 %v1602_v25 }
 0x253   :  { %1932 = vmatmul.bf16.gmra.mxu0 %v4453_v27  ;;  %v1477_v17 = vadd.f32 %v1476_v60, %v1428_v15  ;;  %v1190_v27 = vadd.f32 %v4609_v62, %v4546_v59  ;;  %v1341_v3 = vpop.f32.mrf.mxu2 }
 0x254   :  { %v1342_v57 = vadd.f32 %v1341_v3, %v1293_v37  ;;  %v3161_v37 = vld [vmem:[%s4950_s5] sm:$0xff] }
 0x255   :  { %v1546_v39 = vmul.f32 0.01, %v1477_v17  ;;  %vm1514_vm7 = vcmp.gt.f32.partialorder %v1477_v17, 0.0  ;;  %v1239_v24 = vadd.f32 %v4709_v13, %v1190_v27 }
 0x257   :  { %v1578_v43 = vsel %vm1514_vm7, %v1477_v17, %v1546_v39  ;;  %v1288_v48 = vadd.f32 %v4711_v29, %v1239_v24  ;;  %v3172_v29 = vld [vmem:[%s4950_s5 + $0x58] sm:$0xff]  ;;  %v1393_v26 = vpop.f32.mrf.mxu3 }
 0x258   :  { %v1429_v49 = vpop.f32.mrf.mxu0  ;;  %2304 = vmatpush.bf16.msra.mxu3 %v3172_v29 }
 0x259   :  { %v1430_v16 = vadd.f32 %v1429_v49, %v1381_v41  ;;  %v1478_v38 = vpop.f32.mrf.mxu1  ;;  %v1337_v62 = vadd.f32 %v1336_v9, %v1288_v48  ;;  %v1340_v9 = vadd.f32 %v1339_v20, %v4727_v53  ;;  %v3163_v53 = vld [vmem:[%s4950_s5 + $0x10] sm:$0xff]  ;;  %v1391_v20 = vadd.f32 %v1390_v10, %v1342_v57 }
 0x25a   :  { %2256 = vmatpush.bf16.msra.mxu2 %v3163_v53 }
 0x25b   :  { %v1479_v40 = vadd.f32 %v1478_v38, %v1430_v16  ;;  %v1386_v13 = vadd.f32 %v1385_v31, %v1337_v62  ;;  %v1344_v8 = vpop.f32.mrf.mxu2  ;;  %v1389_v60 = vadd.f32 %v1388_v19, %v1340_v9 }
 0x25c   :  { %2305 = vmatpush.bf16.msra.mxu3 %v3171_v4  ;;  %v1345_v27 = vadd.f32 %v1344_v8, %v4765_v33  ;;  %v3170_v33 = vld [vmem:[%s4950_s5 + $0x48] sm:$0xff] }
 0x25d   :  { %vm1516_vm8 = vcmp.gt.f32.partialorder %v1479_v40, 0.0  ;;  %v1548_v36 = vmul.f32 0.01, %v1479_v40 }
 0x25e   :  { %v1394_v48 = vadd.f32 %v1393_v26, %v1345_v27 }
 0x25f   :  { %v1580_v1 = vsel %vm1516_vm8, %v1479_v40, %v1548_v36 }
 0x260   :  { %v1432_v2 = vpop.f32.mrf.mxu0  ;;  %v1604_v11 = vpack.c.bf16 %v1580_v1, %v1578_v43  ;;  %v1395_v43 = vpop.f32.mrf.mxu3  ;;  %2306 = vmatpush.bf16.msra.mxu3 %v3170_v33 }
 0x261   :  { %v1481_v28 = vpop.f32.mrf.mxu1  ;;  %v1433_v32 = vadd.f32 %v1432_v2, %v1384_v7 }
 0x262   :  { %1883 = vmatmul.bf16.gmra.mxu3 %v1604_v11  ;;  %1981 = vmatmul.bf16.gmra.mxu1 %v1604_v11 }
 0x263   :  { %1937 = vmatmul.bf16.gmra.mxu0 %v4493_v14  ;;  %v1482_v35 = vadd.f32 %v1481_v28, %v1433_v32  ;;  %v1346_v41 = vpop.f32.mrf.mxu2 }
 0x265   :  { %v1550_v14 = vmul.f32 0.01, %v1482_v35  ;;  %vm1518_vm9 = vcmp.gt.f32.partialorder %v1482_v35, 0.0 }
 0x267   :  { %v1582_v42 = vsel %vm1518_vm9, %v1482_v35, %v1550_v14  ;;  %v1205_v35 = vadd.f32 %v4736_v63, %v4546_v59 }
 0x268   :  { %v1434_v34 = vpop.f32.mrf.mxu0 }
 0x269   :  { %v1435_v18 = vadd.f32 %v1434_v34, %v1386_v13  ;;  %v1483_v21 = vpop.f32.mrf.mxu1  ;;  %v1398_v13 = vpop.f32.mrf.mxu3 }
 0x26b   :  { %v1484_v50 = vadd.f32 %v1483_v21, %v1435_v18  ;;  %v1349_v12 = vpop.f32.mrf.mxu2  ;;  %v1254_v21 = vadd.f32 %v4794_v46, %v1205_v35 }
 0x26c   :  { %v1350_v18 = vadd.f32 %v1349_v12, %v4788_v0 }
 0x26d   :  { %vm1520_vm10 = vcmp.gt.f32.partialorder %v1484_v50, 0.0  ;;  %v1552_v51 = vmul.f32 0.01, %v1484_v50  ;;  %v1303_v10 = vadd.f32 %v4796_v30, %v1254_v21 }
 0x26e   :  { %v1399_v9 = vadd.f32 %v1398_v13, %v1350_v18 }
 0x26f   :  { %v1584_v44 = vsel %vm1520_vm10, %v1484_v50, %v1552_v51 }
 0x270   :  { %v1437_v54 = vpop.f32.mrf.mxu0  ;;  %v1606_v25 = vpack.c.bf16 %v1584_v44, %v1582_v42 }
 0x271   :  { %v1486_v15 = vpop.f32.mrf.mxu1  ;;  %v1438_v45 = vadd.f32 %v1437_v54, %v1389_v60  ;;  %v1400_v0 = vpop.f32.mrf.mxu3 }
 0x272   :  { %1888 = vmatmul.bf16.gmra.mxu3 %v1606_v25  ;;  %1986 = vmatmul.bf16.gmra.mxu1 %v1606_v25 }
 0x273   :  { %1942 = vmatmul.bf16.gmra.mxu0 %v4523_v61  ;;  %v1487_v17 = vadd.f32 %v1486_v15, %v1438_v45  ;;  %v1200_v61 = vadd.f32 %v4693_v6, %v4546_v59  ;;  %v3162_v6 = vld [vmem:[%s4950_s5 + $0x8] sm:$0xff]  ;;  %v1351_v62 = vpop.f32.mrf.mxu2  ;;  %v3169_v15 = vld [vmem:[%s4950_s5 + $0x40] sm:$0xff] }
 0x274   :  { %2257 = vmatpush.bf16.msra.mxu2 %v3162_v6  ;;  %v1352_v59 = vadd.f32 %v1351_v62, %v1303_v10  ;;  %2307 = vmatpush.bf16.msra.mxu3 %v3169_v15 }
 0x275   :  { %v1554_v16 = vmul.f32 0.01, %v1487_v17  ;;  %vm1522_vm11 = vcmp.gt.f32.partialorder %v1487_v17, 0.0  ;;  %v1249_v39 = vadd.f32 %v4777_v22, %v1200_v61 }
 0x276   :  { %v1401_v42 = vadd.f32 %v1400_v0, %v1352_v59 }
 0x277   :  { %v1586_v24 = vsel %vm1522_vm11, %v1487_v17, %v1554_v16  ;;  %v1298_v11 = vadd.f32 %v4779_v56, %v1249_v39 }
 0x278   :  { %v1439_v31 = vpop.f32.mrf.mxu0  ;;  %2258 = vmatpush.bf16.msra.mxu2 %v3161_v37 }
 0x279   :  { %v1440_v49 = vadd.f32 %v1439_v31, %v1391_v20  ;;  %v1488_v23 = vpop.f32.mrf.mxu1  ;;  %v1347_v22 = vadd.f32 %v1346_v41, %v1298_v11  ;;  %v1645_v31 = vld [vmem:[%s4949_s4] sm:$0x3] }
 0x27a   :  { %v4885_v4 = vperm.slane %v1645_v31, 1 }
 0x27b   :  { %v1489_v38 = vadd.f32 %v1488_v23, %v1440_v49  ;;  %v1396_v28 = vadd.f32 %v1395_v43, %v1347_v22  ;;  %v1820_v63 = vpop.f32.mrf.mxu2 }
 0x27d   :  { %vm1524_vm12 = vcmp.gt.f32.partialorder %v1489_v38, 0.0  ;;  %v1556_v40 = vmul.f32 0.01, %v1489_v38 }
 0x27f   :  { %v1588_v36 = vsel %vm1524_vm12, %v1489_v38, %v1556_v40  ;;  %v4888_v38 = vperm.slane %v1645_v31, 0 }
 0x280   :  { %v1442_v1 = vpop.f32.mrf.mxu0  ;;  %v1608_v2 = vpack.c.bf16 %v1588_v36, %v1586_v24 }
 0x281   :  { %v1491_v7 = vpop.f32.mrf.mxu1  ;;  %v1443_v3 = vadd.f32 %v1442_v1, %v1394_v48  ;;  %v1821_v24 = vadd.f32 %v1820_v63, %v4888_v38 }
 0x282   :  { %1893 = vmatmul.bf16.gmra.mxu3 %v1608_v2  ;;  %1991 = vmatmul.bf16.gmra.mxu1 %v1608_v2 }
 0x283   :  { %1947 = vmatmul.bf16.gmra.mxu0 %v4541_v58  ;;  %v1492_v56 = vadd.f32 %v1491_v7, %v1443_v3  ;;  %v1822_v57 = vpop.f32.mrf.mxu2 }
 0x284   :  { %v1823_v7 = vadd.f32 %v1822_v57, %v4888_v38 }
 0x285   :  { %v1558_v34 = vmul.f32 0.01, %v1492_v56  ;;  %vm1526_vm13 = vcmp.gt.f32.partialorder %v1492_v56, 0.0 }
 0x287   :  { %v1590_v5 = vsel %vm1526_vm13, %v1492_v56, %v1558_v34 }
 0x288   :  { %v1444_v19 = vpop.f32.mrf.mxu0 }
 0x289   :  { %v1445_v32 = vadd.f32 %v1444_v19, %v1396_v28  ;;  %v1493_v52 = vpop.f32.mrf.mxu1 }
 0x28b   :  { %v1494_v29 = vadd.f32 %v1493_v52, %v1445_v32  ;;  %v1825_v20 = vpop.f32.mrf.mxu2 }
 0x28d   :  { %vm1528_vm14 = vcmp.gt.f32.partialorder %v1494_v29, 0.0  ;;  %v1560_v58 = vmul.f32 0.01, %v1494_v29 }
 0x28f   :  { %v1592_v8 = vsel %vm1528_vm14, %v1494_v29, %v1560_v58 }
 0x290   :  { %v1447_v14 = vpop.f32.mrf.mxu0  ;;  %v1610_v50 = vpack.c.bf16 %v1592_v8, %v1590_v5  ;;  %v1826_v8 = vadd.f32 %v1825_v20, %v4888_v38 }
 0x291   :  { %v1496_v47 = vpop.f32.mrf.mxu1  ;;  %v1448_v51 = vadd.f32 %v1447_v14, %v1399_v9 }
 0x292   :  { %1898 = vmatmul.bf16.gmra.mxu3 %v1610_v50  ;;  %1996 = vmatmul.bf16.gmra.mxu1 %v1610_v50 }
 0x293   :  { %1952 = vmatmul.bf16.gmra.mxu0 %v4573_v55  ;;  %v1497_v46 = vadd.f32 %v1496_v47, %v1448_v51  ;;  %v1827_v61 = vpop.f32.mrf.mxu2 }
 0x294   :  { %v1828_v59 = vadd.f32 %v1827_v61, %v4888_v38 }
 0x295   :  { %v1562_v30 = vmul.f32 0.01, %v1497_v46  ;;  %vm1530_vm15 = vcmp.gt.f32.partialorder %v1497_v46, 0.0 }
 0x297   :  { %v1594_v45 = vsel %vm1530_vm15, %v1497_v46, %v1562_v30 }
 0x298   :  { %v1449_v44 = vpop.f32.mrf.mxu0 }
 0x299   :  { %v1450_v54 = vadd.f32 %v1449_v44, %v1401_v42  ;;  %v1498_v25 = vpop.f32.mrf.mxu1 }
 0x29b   :  { %v1499_v60 = vadd.f32 %v1498_v25, %v1450_v54  ;;  %v1830_v48 = vpop.f32.mrf.mxu2 }
 0x29c   :  { %v1831_v20 = vadd.f32 %v1830_v48, %v4888_v38 }
 0x29d   :  { %vm1532_vm1 = vcmp.gt.f32.partialorder %v1499_v60, 0.0  ;;  %v1564_v55 = vmul.f32 0.01, %v1499_v60 }
 0x29f   :  { %v1596_v41 = vsel %vm1532_vm1, %v1499_v60, %v1564_v55 }
 0x2a0   :  { %v1918_v53 = vpop.f32.mrf.mxu0  ;;  %v1612_v26 = vpack.c.bf16 %v1596_v41, %v1594_v45 }
 0x2a1   :  { %v1919_v16 = vadd.f32 %v1918_v53, %v4885_v4 }
 0x2a2   :  { %1903 = vmatmul.bf16.gmra.mxu3 %v1612_v26  ;;  %2001 = vmatmul.bf16.gmra.mxu1 %v1612_v26 }
 0x2a3   :  { %v1832_v18 = vpop.f32.mrf.mxu2 }
 0x2a8   :  { %v1920_v17 = vpop.f32.mrf.mxu0 }
 0x2a9   :  { %v1921_v40 = vadd.f32 %v1920_v17, %v4885_v4 }
 0x2ab   :  { %v1835_v54 = vpop.f32.mrf.mxu2 }
 0x2af   :  { %v1967_v49 = vpop.f32.mrf.mxu1 }
 0x2b0   :  { %v1923_v23 = vpop.f32.mrf.mxu0  ;;  %v1968_v27 = vadd.f32 %v1967_v49, %v1919_v16 }
 0x2b1   :  { %v1924_v52 = vadd.f32 %v1923_v23, %v4885_v4 }
 0x2b2   :  { %v2040_v36 = vmul.f32 0.01, %v1968_v27  ;;  %vm2008_vm0 = vcmp.gt.f32.partialorder %v1968_v27, 0.0 }
 0x2b3   :  { %v1837_v23 = vpop.f32.mrf.mxu2 }
 0x2b4   :  { %v2072_v6 = vsel %vm2008_vm0, %v1968_v27, %v2040_v36  ;;  %v1833_v27 = vadd.f32 %v1832_v18, %v4888_v38 }
 0x2b5   :  { %v1869_v39 = vpop.f32.mrf.mxu3 }
 0x2b6   :  { %v1870_v2 = vadd.f32 %v1869_v39, %v1821_v24 }
 0x2b7   :  { %v1969_v12 = vpop.f32.mrf.mxu1 }
 0x2b8   :  { %v1970_v43 = vadd.f32 %v1969_v12, %v1921_v40  ;;  %v1925_v1 = vpop.f32.mrf.mxu0  ;;  %v2039_v28 = vmul.f32 0.01, %v1870_v2  ;;  %vm2007_vm3 = vcmp.gt.f32.partialorder %v1870_v2, 0.0 }
 0x2b9   :  { %v1926_v58 = vadd.f32 %v1925_v1, %v4885_v4 }
 0x2ba   :  { %vm2010_vm2 = vcmp.gt.f32.partialorder %v1970_v43, 0.0  ;;  %v2042_v11 = vmul.f32 0.01, %v1970_v43  ;;  %v2071_v13 = vsel %vm2007_vm3, %v1870_v2, %v2039_v28 }
 0x2bc   :  { %v2074_v33 = vsel %vm2010_vm2, %v1970_v43, %v2042_v11 }
 0x2bd   :  { %v2104_v22 = vpack.c.bf16 %v2074_v33, %v2072_v6  ;;  %v1871_v3 = vpop.f32.mrf.mxu3  ;;  %v1840_v33 = vpop.f32.mrf.mxu2 }
 0x2be   :  { %v1872_v56 = vadd.f32 %v1871_v3, %v1823_v7 }
 0x2bf   :  { %v1972_v19 = vpop.f32.mrf.mxu1  ;;  %2308 = vmatmul.bf16.vlgmr.msra.gmra.mxu3 %v2104_v22 }
 0x2c0   :  { %vm2009_vm4 = vcmp.gt.f32.partialorder %v1872_v56, 0.0  ;;  %v2041_v62 = vmul.f32 0.01, %v1872_v56  ;;  %v1928_v32 = vpop.f32.mrf.mxu0  ;;  %v1973_v29 = vadd.f32 %v1972_v19, %v1924_v52 }
 0x2c1   :  { %v1929_v60 = vadd.f32 %v1928_v32, %v4885_v4 }
 0x2c2   :  { %v2073_v35 = vsel %vm2009_vm4, %v1872_v56, %v2041_v62  ;;  %v2044_v14 = vmul.f32 0.01, %v1973_v29  ;;  %vm2012_vm5 = vcmp.gt.f32.partialorder %v1973_v29, 0.0  ;;  %v1836_v62 = vadd.f32 %v1835_v54, %v4888_v38 }
 0x2c3   :  { %v2103_v34 = vpack.c.bf16 %v2073_v35, %v2071_v13 }
 0x2c4   :  { %v2076_v63 = vsel %vm2012_vm5, %v1973_v29, %v2044_v14  ;;  %v1838_v29 = vadd.f32 %v1837_v23, %v4888_v38 }
 0x2c5   :  { %v1874_v21 = vpop.f32.mrf.mxu3  ;;  %2259 = vmatmul.bf16.vlgmr.msra.gmra.mxu2 %v2103_v34 }
 0x2c6   :  { %v1875_v9 = vadd.f32 %v1874_v21, %v1826_v8 }
 0x2c7   :  { %v1974_v5 = vpop.f32.mrf.mxu1 }
 0x2c8   :  { %v1975_v50 = vadd.f32 %v1974_v5, %v1926_v58  ;;  %v1930_v10 = vpop.f32.mrf.mxu0  ;;  %v2043_v46 = vmul.f32 0.01, %v1875_v9  ;;  %vm2011_vm7 = vcmp.gt.f32.partialorder %v1875_v9, 0.0  ;;  %v1842_v58 = vpop.f32.mrf.mxu2 }
 0x2c9   :  { %v1931_v53 = vadd.f32 %v1930_v10, %v4885_v4 }
 0x2ca   :  { %vm2014_vm6 = vcmp.gt.f32.partialorder %v1975_v50, 0.0  ;;  %v2046_v47 = vmul.f32 0.01, %v1975_v50  ;;  %v2075_v15 = vsel %vm2011_vm7, %v1875_v9, %v2043_v46 }
 0x2cc   :  { %v2078_v51 = vsel %vm2014_vm6, %v1975_v50, %v2046_v47 }
 0x2cd   :  { %v1876_v0 = vpop.f32.mrf.mxu3  ;;  %v2106_v42 = vpack.c.bf16 %v2078_v51, %v2076_v63 }
 0x2ce   :  { %v1877_v44 = vadd.f32 %v1876_v0, %v1828_v59 }
 0x2cf   :  { %v1977_v25 = vpop.f32.mrf.mxu1  ;;  %2313 = vmatmul.bf16.gmra.mxu3 %v2106_v42 }
 0x2d0   :  { %vm2013_vm8 = vcmp.gt.f32.partialorder %v1877_v44, 0.0  ;;  %v2045_v37 = vmul.f32 0.01, %v1877_v44  ;;  %v1933_v30 = vpop.f32.mrf.mxu0  ;;  %v1978_v45 = vadd.f32 %v1977_v25, %v1929_v60  ;;  %v1845_v54 = vpop.f32.mrf.mxu2 }
 0x2d1   :  { %v1934_v48 = vadd.f32 %v1933_v30, %v4885_v4 }
 0x2d2   :  { %v2077_v57 = vsel %vm2013_vm8, %v1877_v44, %v2045_v37  ;;  %v2048_v17 = vmul.f32 0.01, %v1978_v45  ;;  %vm2016_vm9 = vcmp.gt.f32.partialorder %v1978_v45, 0.0  ;;  %v1841_v37 = vadd.f32 %v1840_v33, %v4888_v38 }
 0x2d3   :  { %v2105_v55 = vpack.c.bf16 %v2077_v57, %v2075_v15 }
 0x2d4   :  { %v2080_v39 = vsel %vm2016_vm9, %v1978_v45, %v2048_v17  ;;  %v1843_v45 = vadd.f32 %v1842_v58, %v4888_v38 }
 0x2d5   :  { %v1879_v41 = vpop.f32.mrf.mxu3  ;;  %2264 = vmatmul.bf16.gmra.mxu2 %v2105_v55 }
 0x2d6   :  { %v1880_v61 = vadd.f32 %v1879_v41, %v1831_v20 }
 0x2d7   :  { %v1979_v26 = vpop.f32.mrf.mxu1 }
 0x2d8   :  { %v1980_v31 = vadd.f32 %v1979_v26, %v1931_v53  ;;  %v1935_v49 = vpop.f32.mrf.mxu0  ;;  %v2047_v36 = vmul.f32 0.01, %v1880_v61  ;;  %vm2015_vm11 = vcmp.gt.f32.partialorder %v1880_v61, 0.0 }
 0x2d9   :  { %v1936_v56 = vadd.f32 %v1935_v49, %v4885_v4 }
 0x2da   :  { %vm2018_vm10 = vcmp.gt.f32.partialorder %v1980_v31, 0.0  ;;  %v2050_v16 = vmul.f32 0.01, %v1980_v31  ;;  %v2079_v7 = vsel %vm2015_vm11, %v1880_v61, %v2047_v36  ;;  %v1847_v61 = vpop.f32.mrf.mxu2 }
 0x2dc   :  { %v2082_v40 = vsel %vm2018_vm10, %v1980_v31, %v2050_v16 }
 0x2dd   :  { %v1881_v12 = vpop.f32.mrf.mxu3  ;;  %v2108_v24 = vpack.c.bf16 %v2082_v40, %v2080_v39 }
 0x2de   :  { %v1882_v43 = vadd.f32 %v1881_v12, %v1833_v27 }
 0x2df   :  { %v1982_v1 = vpop.f32.mrf.mxu1  ;;  %2318 = vmatmul.bf16.gmra.mxu3 %v2108_v24 }
 0x2e0   :  { %vm2017_vm12 = vcmp.gt.f32.partialorder %v1882_v43, 0.0  ;;  %v2049_v2 = vmul.f32 0.01, %v1882_v43  ;;  %v1938_v11 = vpop.f32.mrf.mxu0  ;;  %v1983_v3 = vadd.f32 %v1982_v1, %v1934_v48 }
 0x2e1   :  { %v1939_v59 = vadd.f32 %v1938_v11, %v4885_v4 }
 0x2e2   :  { %v2081_v6 = vsel %vm2017_vm12, %v1882_v43, %v2049_v2  ;;  %v2052_v32 = vmul.f32 0.01, %v1983_v3  ;;  %vm2020_vm13 = vcmp.gt.f32.partialorder %v1983_v3, 0.0  ;;  %v1846_v2 = vadd.f32 %v1845_v54, %v4888_v38  ;;  %v1850_v33 = vpop.f32.mrf.mxu2 }
 0x2e3   :  { %v2107_v22 = vpack.c.bf16 %v2081_v6, %v2079_v7 }
 0x2e4   :  { %v2084_v18 = vsel %vm2020_vm13, %v1983_v3, %v2052_v32 }
 0x2e5   :  { %v1884_v28 = vpop.f32.mrf.mxu3  ;;  %2269 = vmatmul.bf16.gmra.mxu2 %v2107_v22  ;;  %v1848_v22 = vadd.f32 %v1847_v61, %v4888_v38 }
 0x2e6   :  { %v1885_v35 = vadd.f32 %v1884_v28, %v1836_v62 }
 0x2e7   :  { %v1984_v19 = vpop.f32.mrf.mxu1 }
 0x2e8   :  { %v1985_v52 = vadd.f32 %v1984_v19, %v1936_v56  ;;  %v1940_v13 = vpop.f32.mrf.mxu0  ;;  %v2051_v14 = vmul.f32 0.01, %v1885_v35  ;;  %vm2019_vm15 = vcmp.gt.f32.partialorder %v1885_v35, 0.0 }
 0x2e9   :  { %v1941_v44 = vadd.f32 %v1940_v13, %v4885_v4 }
 0x2ea   :  { %vm2022_vm14 = vcmp.gt.f32.partialorder %v1985_v52, 0.0  ;;  %v2054_v34 = vmul.f32 0.01, %v1985_v52  ;;  %v2083_v63 = vsel %vm2019_vm15, %v1885_v35, %v2051_v14 }
 0x2ec   :  { %v2086_v21 = vsel %vm2022_vm14, %v1985_v52, %v2054_v34 }
 0x2ed   :  { %v1886_v5 = vpop.f32.mrf.mxu3  ;;  %v2110_v8 = vpack.c.bf16 %v2086_v21, %v2084_v18 }
 0x2ee   :  { %v1887_v50 = vadd.f32 %v1886_v5, %v1838_v29  ;;  %v1852_v5 = vpop.f32.mrf.mxu2 }
 0x2ef   :  { %v1987_v10 = vpop.f32.mrf.mxu1  ;;  %2323 = vmatmul.bf16.gmra.mxu3 %v2110_v8 }
 0x2f0   :  { %vm2021_vm1 = vcmp.gt.f32.partialorder %v1887_v50, 0.0  ;;  %v2053_v9 = vmul.f32 0.01, %v1887_v50  ;;  %v1943_v47 = vpop.f32.mrf.mxu0  ;;  %v1988_v42 = vadd.f32 %v1987_v10, %v1939_v59  ;;  %v1851_v10 = vadd.f32 %v1850_v33, %v4888_v38  ;;  %v4924_v33 = vld [vmem:[%s4951_s6] ss:$0 sm:$0xff]  ;;  %s3208_s6 = smov [#allocation2]  }
 0x2f1   :  { %v1944_v16 = vadd.f32 %v1943_v47, %v4885_v4  ;;  %s2417_s26 = sshll.u32 %s3208_s6, 4  ;;  %s2418_s26 = int_to_ptr.vmem [resolvable:$true] %s2417_s26 }
 0x2f2   :  { %v2085_v51 = vsel %vm2021_vm1, %v1887_v50, %v2053_v9  ;;  %v2056_v30 = vmul.f32 0.01, %v1988_v42  ;;  %vm2024_vm0 = vcmp.gt.f32.partialorder %v1988_v42, 0.0 }
 0x2f3   :  { %v2109_v0 = vpack.c.bf16 %v2085_v51, %v2083_v63 }
 0x2f4   :  { %v2088_v41 = vsel %vm2024_vm0, %v1988_v42, %v2056_v30 }
 0x2f5   :  { %v1889_v46 = vpop.f32.mrf.mxu3  ;;  %2274 = vmatmul.bf16.gmra.mxu2 %v2109_v0  ;;  %v1853_v0 = vadd.f32 %v1852_v5, %v4888_v38 }
 0x2f6   :  { %v1890_v15 = vadd.f32 %v1889_v46, %v1841_v37  ;;  %v1855_v30 = vpop.f32.mrf.mxu2 }
 0x2f7   :  { %v1989_v25 = vpop.f32.mrf.mxu1 }
 0x2f8   :  { %v1990_v60 = vadd.f32 %v1989_v25, %v1941_v44  ;;  %v1945_v55 = vpop.f32.mrf.mxu0  ;;  %v2055_v17 = vmul.f32 0.01, %v1890_v15  ;;  %vm2023_vm3 = vcmp.gt.f32.partialorder %v1890_v15, 0.0 }
 0x2f9   :  { %v1946_v43 = vadd.f32 %v1945_v55, %v4885_v4 }
 0x2fa   :  { %vm2026_vm2 = vcmp.gt.f32.partialorder %v1990_v60, 0.0  ;;  %v2058_v57 = vmul.f32 0.01, %v1990_v60  ;;  %v2087_v27 = vsel %vm2023_vm3, %v1890_v15, %v2055_v17 }
 0x2fc   :  { %v2090_v53 = vsel %vm2026_vm2, %v1990_v60, %v2058_v57 }
 0x2fd   :  { %v1891_v26 = vpop.f32.mrf.mxu3  ;;  %v2112_v20 = vpack.c.bf16 %v2090_v53, %v2088_v41 }
 0x2fe   :  { %v1892_v31 = vadd.f32 %v1891_v26, %v1843_v45 }
 0x2ff   :  { %v1992_v49 = vpop.f32.mrf.mxu1  ;;  %2328 = vmatmul.bf16.gmra.mxu3 %v2112_v20 }
 0x300   :  { %vm2025_vm4 = vcmp.gt.f32.partialorder %v1892_v31, 0.0  ;;  %v2057_v23 = vmul.f32 0.01, %v1892_v31  ;;  %v1993_v12 = vadd.f32 %v1992_v49, %v1944_v16  ;;  %v1948_v24 = vpop.f32.mrf.mxu0  ;;  %v1856_v49 = vadd.f32 %v1855_v30, %v4888_v38  ;;  %v1857_v16 = vpop.f32.mrf.mxu2 }
 0x301   :  { %v1949_v34 = vadd.f32 %v1948_v24, %v4885_v4 }
 0x302   :  { %v2089_v39 = vsel %vm2025_vm4, %v1892_v31, %v2057_v23  ;;  %v2060_v11 = vmul.f32 0.01, %v1993_v12  ;;  %vm2028_vm5 = vcmp.gt.f32.partialorder %v1993_v12, 0.0 }
 0x303   :  { %v2111_v40 = vpack.c.bf16 %v2089_v39, %v2087_v27 }
 0x304   :  { %v2092_v3 = vsel %vm2028_vm5, %v1993_v12, %v2060_v11 }
 0x305   :  { %v1894_v36 = vpop.f32.mrf.mxu3  ;;  %2279 = vmatmul.bf16.gmra.mxu2 %v2111_v40  ;;  %v1858_v40 = vadd.f32 %v1857_v16, %v4888_v38 }
 0x306   :  { %v1895_v7 = vadd.f32 %v1894_v36, %v1846_v2 }
 0x307   :  { %v1994_v1 = vpop.f32.mrf.mxu1 }
 0x308   :  { %v1995_v48 = vadd.f32 %v1994_v1, %v1946_v43  ;;  %v2059_v62 = vmul.f32 0.01, %v1895_v7  ;;  %vm2027_vm7 = vcmp.gt.f32.partialorder %v1895_v7, 0.0  ;;  %v1950_v52 = vpop.f32.mrf.mxu0 }
 0x309   :  { %v1951_v14 = vadd.f32 %v1950_v52, %v4885_v4 }
 0x30a   :  { %vm2030_vm6 = vcmp.gt.f32.partialorder %v1995_v48, 0.0  ;;  %v2062_v6 = vmul.f32 0.01, %v1995_v48  ;;  %v2091_v29 = vsel %vm2027_vm7, %v1895_v7, %v2059_v62 }
 0x30c   :  { %v2094_v28 = vsel %vm2030_vm6, %v1995_v48, %v2062_v6 }
 0x30d   :  { %v1896_v56 = vpop.f32.mrf.mxu3  ;;  %v2114_v19 = vpack.c.bf16 %v2094_v28, %v2092_v3 }
 0x30e   :  { %v1897_v32 = vadd.f32 %v1896_v56, %v1848_v22 }
 0x30f   :  { %v1997_v13 = vpop.f32.mrf.mxu1  ;;  %2333 = vmatmul.bf16.gmra.mxu3 %v2114_v19 }
 0x310   :  { %vm2029_vm8 = vcmp.gt.f32.partialorder %v1897_v32, 0.0  ;;  %v2061_v35 = vmul.f32 0.01, %v1897_v32  ;;  %v1998_v58 = vadd.f32 %v1997_v13, %v1949_v34  ;;  %v1953_v59 = vpop.f32.mrf.mxu0 }
 0x311   :  { %v1954_v57 = vadd.f32 %v1953_v59, %v4885_v4 }
 0x312   :  { %v2093_v18 = vsel %vm2029_vm8, %v1897_v32, %v2061_v35  ;;  %v2064_v9 = vmul.f32 0.01, %v1998_v58  ;;  %vm2032_vm9 = vcmp.gt.f32.partialorder %v1998_v58, 0.0 }
 0x313   :  { %v2113_v21 = vpack.c.bf16 %v2093_v18, %v2091_v29 }
 0x314   :  { %v2096_v42 = vsel %vm2032_vm9, %v1998_v58, %v2064_v9 }
 0x315   :  { %v1899_v8 = vpop.f32.mrf.mxu3  ;;  %2284 = vmatmul.bf16.gmra.mxu2 %v2113_v21 }
 0x316   :  { %v1900_v63 = vadd.f32 %v1899_v8, %v1851_v10 }
 0x317   :  { %v1999_v50 = vpop.f32.mrf.mxu1 }
 0x318   :  { %v2000_v47 = vadd.f32 %v1999_v50, %v1951_v14  ;;  %v2063_v25 = vmul.f32 0.01, %v1900_v63  ;;  %vm2031_vm11 = vcmp.gt.f32.partialorder %v1900_v63, 0.0  ;;  %v1955_v41 = vpop.f32.mrf.mxu0 }
 0x319   :  { %v1956_v17 = vadd.f32 %v1955_v41, %v4885_v4 }
 0x31a   :  { %vm2034_vm10 = vcmp.gt.f32.partialorder %v2000_v47, 0.0  ;;  %v2066_v51 = vmul.f32 0.01, %v2000_v47  ;;  %v2095_v55 = vsel %vm2031_vm11, %v1900_v63, %v2063_v25 }
 0x31c   :  { %v2098_v46 = vsel %vm2034_vm10, %v2000_v47, %v2066_v51 }
 0x31d   :  { %v1901_v44 = vpop.f32.mrf.mxu3  ;;  %v2116_v54 = vpack.c.bf16 %v2098_v46, %v2096_v42 }
 0x31e   :  { %v1902_v37 = vadd.f32 %v1901_v44, %v1853_v0 }
 0x31f   :  { %v2002_v60 = vpop.f32.mrf.mxu1  ;;  %2338 = vmatmul.bf16.gmra.mxu3 %v2116_v54 }
 0x320   :  { %vm2033_vm12 = vcmp.gt.f32.partialorder %v1902_v37, 0.0  ;;  %v2065_v15 = vmul.f32 0.01, %v1902_v37  ;;  %v2003_v26 = vadd.f32 %v2002_v60, %v1954_v57 }
 0x322   :  { %v2097_v45 = vsel %vm2033_vm12, %v1902_v37, %v2065_v15  ;;  %v2068_v23 = vmul.f32 0.01, %v2003_v26  ;;  %vm2036_vm13 = vcmp.gt.f32.partialorder %v2003_v26, 0.0 }
 0x323   :  { %v2115_v53 = vpack.c.bf16 %v2097_v45, %v2095_v55 }
 0x324   :  { %v2100_v12 = vsel %vm2036_vm13, %v2003_v26, %v2068_v23 }
 0x325   :  { %v1904_v20 = vpop.f32.mrf.mxu3  ;;  %2289 = vmatmul.bf16.gmra.mxu2 %v2115_v53 }
 0x326   :  { %v1905_v27 = vadd.f32 %v1904_v20, %v1856_v49 }
 0x327   :  { %v2004_v31 = vpop.f32.mrf.mxu1 }
 0x328   :  { %v2005_v61 = vadd.f32 %v2004_v31, %v1956_v17  ;;  %v2067_v1 = vmul.f32 0.01, %v1905_v27  ;;  %vm2035_vm15 = vcmp.gt.f32.partialorder %v1905_v27, 0.0 }
 0x32a   :  { %vm2038_vm14 = vcmp.gt.f32.partialorder %v2005_v61, 0.0  ;;  %v2070_v39 = vmul.f32 0.01, %v2005_v61  ;;  %v2099_v11 = vsel %vm2035_vm15, %v1905_v27, %v2067_v1 }
 0x32c   :  { %v2102_v24 = vsel %vm2038_vm14, %v2005_v61, %v2070_v39 }
 0x32d   :  { %v1906_v36 = vpop.f32.mrf.mxu3  ;;  %v2118_v43 = vpack.c.bf16 %v2102_v24, %v2100_v12 }
 0x32e   :  { %v1907_v2 = vadd.f32 %v1906_v36, %v1858_v40 }
 0x32f   :  { %2343 = vmatmul.bf16.gmra.mxu3 %v2118_v43 }
 0x330   :  { %vm2037_vm1 = vcmp.gt.f32.partialorder %v1907_v2, 0.0  ;;  %v2069_v4 = vmul.f32 0.01, %v1907_v2 }
 0x332   :  { %v2101_v48 = vsel %vm2037_vm1, %v1907_v2, %v2069_v4 }
 0x333   :  { %v2117_v7 = vpack.c.bf16 %v2101_v48, %v2099_v11 }
 0x335   :  { %2294 = vmatmul.bf16.gmra.mxu2 %v2117_v7 }
 0x342   :  { %v2309_v6 = vpop.f32.mrf.mxu3 }
 0x348   :  { %v2260_v38 = vpop.f32.mrf.mxu2 }
 0x349   :  { %v2261_v22 = vadd.f32 %v4924_v33, %v2260_v38 }
 0x34a   :  { %v2311_v3 = vpop.f32.mrf.mxu3 }
 0x34b   :  { %v2310_v28 = vadd.f32 %v2309_v6, %v2261_v22 }
 0x34d   :  { %vm2349_vm0 = vcmp.gt.f32.partialorder %v2310_v28, 0.0  ;;  %v2365_v56 = vmul.f32 0.01, %v2310_v28 }
 0x34f   :  { %v2381_v19 = vsel %vm2349_vm0, %v2310_v28, %v2365_v56 }
 0x350   :  { %2397 = vst [vmem:[#allocation2] sm:$0xff] %v2381_v19  ;;  %v2262_v62 = vpop.f32.mrf.mxu2 }
 0x351   :  { %v2263_v32 = vadd.f32 %v4924_v33, %v2262_v62 }
 0x352   :  { %v2314_v52 = vpop.f32.mrf.mxu3 }
 0x353   :  { %v2312_v13 = vadd.f32 %v2311_v3, %v2263_v32 }
 0x355   :  { %vm2350_vm2 = vcmp.gt.f32.partialorder %v2312_v13, 0.0  ;;  %v2366_v35 = vmul.f32 0.01, %v2312_v13 }
 0x357   :  { %v2382_v34 = vsel %vm2350_vm2, %v2312_v13, %v2366_v35 }
 0x358   :  { %2398 = vst [vmem:[#allocation2 + $0x8] sm:$0xff] %v2382_v34  ;;  %v2265_v29 = vpop.f32.mrf.mxu2 }
 0x359   :  { %v2266_v18 = vadd.f32 %v4924_v33, %v2265_v29 }
 0x35a   :  { %v2316_v21 = vpop.f32.mrf.mxu3 }
 0x35b   :  { %v2315_v58 = vadd.f32 %v2314_v52, %v2266_v18 }
 0x35d   :  { %vm2351_vm3 = vcmp.gt.f32.partialorder %v2315_v58, 0.0  ;;  %v2367_v5 = vmul.f32 0.01, %v2315_v58 }
 0x35f   :  { %v2383_v8 = vsel %vm2351_vm3, %v2315_v58, %v2367_v5 }
 0x360   :  { %2399 = vst [vmem:[#allocation2 + $0x10] sm:$0xff] %v2383_v8  ;;  %v2267_v14 = vpop.f32.mrf.mxu2 }
 0x361   :  { %v2268_v50 = vadd.f32 %v4924_v33, %v2267_v14 }
 0x362   :  { %v2319_v10 = vpop.f32.mrf.mxu3 }
 0x363   :  { %v2317_v9 = vadd.f32 %v2316_v21, %v2268_v50 }
 0x365   :  { %vm2352_vm4 = vcmp.gt.f32.partialorder %v2317_v9, 0.0  ;;  %v2368_v47 = vmul.f32 0.01, %v2317_v9 }
 0x367   :  { %v2384_v59 = vsel %vm2352_vm4, %v2317_v9, %v2368_v47 }
 0x368   :  { %2400 = vst [vmem:[#allocation2 + $0x18] sm:$0xff] %v2384_v59  ;;  %v2270_v63 = vpop.f32.mrf.mxu2 }
 0x369   :  { %v2271_v51 = vadd.f32 %v4924_v33, %v2270_v63 }
 0x36a   :  { %v2321_v0 = vpop.f32.mrf.mxu3 }
 0x36b   :  { %v2320_v42 = vadd.f32 %v2319_v10, %v2271_v51 }
 0x36d   :  { %vm2353_vm5 = vcmp.gt.f32.partialorder %v2320_v42, 0.0  ;;  %v2369_v46 = vmul.f32 0.01, %v2320_v42 }
 0x36f   :  { %v2385_v44 = vsel %vm2353_vm5, %v2320_v42, %v2369_v46 }
 0x370   :  { %2401 = vst [vmem:[#allocation2 + $0x20] sm:$0xff] %v2385_v44  ;;  %v2272_v54 = vpop.f32.mrf.mxu2 }
 0x371   :  { %v2273_v25 = vadd.f32 %v4924_v33, %v2272_v54 }
 0x372   :  { %v2324_v37 = vpop.f32.mrf.mxu3 }
 0x373   :  { %v2322_v30 = vadd.f32 %v2321_v0, %v2273_v25 }
 0x375   :  { %vm2354_vm6 = vcmp.gt.f32.partialorder %v2322_v30, 0.0  ;;  %v2370_v60 = vmul.f32 0.01, %v2322_v30 }
 0x377   :  { %v2386_v15 = vsel %vm2354_vm6, %v2322_v30, %v2370_v60 }
 0x378   :  { %2402 = vst [vmem:[#allocation2 + $0x28] sm:$0xff] %v2386_v15  ;;  %v2275_v57 = vpop.f32.mrf.mxu2 }
 0x379   :  { %v2276_v55 = vadd.f32 %v4924_v33, %v2275_v57 }
 0x37a   :  { %v2326_v45 = vpop.f32.mrf.mxu3 }
 0x37b   :  { %v2325_v41 = vadd.f32 %v2324_v37, %v2276_v55 }
 0x37d   :  { %vm2355_vm7 = vcmp.gt.f32.partialorder %v2325_v41, 0.0  ;;  %v2371_v53 = vmul.f32 0.01, %v2325_v41 }
 0x37f   :  { %v2387_v26 = vsel %vm2355_vm7, %v2325_v41, %v2371_v53 }
 0x380   :  { %2403 = vst [vmem:[#allocation2 + $0x30] sm:$0xff] %v2387_v26  ;;  %v2277_v20 = vpop.f32.mrf.mxu2 }
 0x381   :  { %v2278_v17 = vadd.f32 %v4924_v33, %v2277_v20 }
 0x382   :  { %v2329_v31 = vpop.f32.mrf.mxu3 }
 0x383   :  { %v2327_v49 = vadd.f32 %v2326_v45, %v2278_v17 }
 0x385   :  { %vm2356_vm8 = vcmp.gt.f32.partialorder %v2327_v49, 0.0  ;;  %v2372_v23 = vmul.f32 0.01, %v2327_v49 }
 0x387   :  { %v2388_v61 = vsel %vm2356_vm8, %v2327_v49, %v2372_v23 }
 0x388   :  { %2404 = vst [vmem:[#allocation2 + $0x38] sm:$0xff] %v2388_v61  ;;  %v2280_v16 = vpop.f32.mrf.mxu2 }
 0x389   :  { %v2281_v27 = vadd.f32 %v4924_v33, %v2280_v16 }
 0x38a   :  { %v2331_v39 = vpop.f32.mrf.mxu3 }
 0x38b   :  { %v2330_v40 = vadd.f32 %v2329_v31, %v2281_v27 }
 0x38d   :  { %vm2357_vm9 = vcmp.gt.f32.partialorder %v2330_v40, 0.0  ;;  %v2373_v12 = vmul.f32 0.01, %v2330_v40 }
 0x38f   :  { %v2389_v24 = vsel %vm2357_vm9, %v2330_v40, %v2373_v12 }
 0x390   :  { %2405 = vst [vmem:[#allocation2 + $0x40] sm:$0xff] %v2389_v24  ;;  %v2282_v36 = vpop.f32.mrf.mxu2 }
 0x391   :  { %v2283_v43 = vadd.f32 %v4924_v33, %v2282_v36 }
 0x392   :  { %v2334_v1 = vpop.f32.mrf.mxu3 }
 0x393   :  { %v2332_v2 = vadd.f32 %v2331_v39, %v2283_v43 }
 0x395   :  { %vm2358_vm10 = vcmp.gt.f32.partialorder %v2332_v2, 0.0  ;;  %v2374_v4 = vmul.f32 0.01, %v2332_v2 }
 0x397   :  { %v2390_v11 = vsel %vm2358_vm10, %v2332_v2, %v2374_v4 }
 0x398   :  { %2406 = vst [vmem:[#allocation2 + $0x48] sm:$0xff] %v2390_v11  ;;  %v2285_v48 = vpop.f32.mrf.mxu2 }
 0x399   :  { %v2286_v7 = vadd.f32 %v4924_v33, %v2285_v48 }
 0x39a   :  { %v2336_v6 = vpop.f32.mrf.mxu3 }
 0x39b   :  { %v2335_v38 = vadd.f32 %v2334_v1, %v2286_v7 }
 0x39d   :  { %vm2359_vm11 = vcmp.gt.f32.partialorder %v2335_v38, 0.0  ;;  %v2375_v22 = vmul.f32 0.01, %v2335_v38 }
 0x39f   :  { %v2391_v3 = vsel %vm2359_vm11, %v2335_v38, %v2375_v22 }
 0x3a0   :  { %2407 = vst [vmem:[#allocation2 + $0x50] sm:$0xff] %v2391_v3  ;;  %v2287_v28 = vpop.f32.mrf.mxu2 }
 0x3a1   :  { %v2288_v56 = vadd.f32 %v4924_v33, %v2287_v28 }
 0x3a2   :  { %v2339_v62 = vpop.f32.mrf.mxu3 }
 0x3a3   :  { %v2337_v19 = vadd.f32 %v2336_v6, %v2288_v56 }
 0x3a5   :  { %vm2360_vm12 = vcmp.gt.f32.partialorder %v2337_v19, 0.0  ;;  %v2376_v32 = vmul.f32 0.01, %v2337_v19 }
 0x3a7   :  { %v2392_v52 = vsel %vm2360_vm12, %v2337_v19, %v2376_v32 }
 0x3a8   :  { %2408 = vst [vmem:[#allocation2 + $0x58] sm:$0xff] %v2392_v52  ;;  %v2290_v13 = vpop.f32.mrf.mxu2 }
 0x3a9   :  { %v2291_v35 = vadd.f32 %v4924_v33, %v2290_v13 }
 0x3aa   :  { %v2341_v18 = vpop.f32.mrf.mxu3 }
 0x3ab   :  { %v2340_v34 = vadd.f32 %v2339_v62, %v2291_v35 }
 0x3ad   :  { %vm2361_vm13 = vcmp.gt.f32.partialorder %v2340_v34, 0.0  ;;  %v2377_v29 = vmul.f32 0.01, %v2340_v34 }
 0x3af   :  { %v2393_v21 = vsel %vm2361_vm13, %v2340_v34, %v2377_v29 }
 0x3b0   :  { %2409 = vst [vmem:[#allocation2 + $0x60] sm:$0xff] %v2393_v21  ;;  %v2292_v58 = vpop.f32.mrf.mxu2 }
 0x3b1   :  { %v2293_v5 = vadd.f32 %v4924_v33, %v2292_v58 }
 0x3b2   :  { %v2344_v10 = vpop.f32.mrf.mxu3 }
 0x3b3   :  { %v2342_v8 = vadd.f32 %v2341_v18, %v2293_v5 }
 0x3b5   :  { %vm2362_vm14 = vcmp.gt.f32.partialorder %v2342_v8, 0.0  ;;  %v2378_v14 = vmul.f32 0.01, %v2342_v8 }
 0x3b7   :  { %v2394_v50 = vsel %vm2362_vm14, %v2342_v8, %v2378_v14 }
 0x3b8   :  { %2410 = vst [vmem:[#allocation2 + $0x68] sm:$0xff] %v2394_v50  ;;  %v2295_v9 = vpop.f32.mrf.mxu2 }
 0x3b9   :  { %v2296_v47 = vadd.f32 %v4924_v33, %v2295_v9 }
 0x3ba   :  { %v2346_v46 = vpop.f32.mrf.mxu3 }
 0x3bb   :  { %v2345_v59 = vadd.f32 %v2344_v10, %v2296_v47 }
 0x3bd   :  { %vm2363_vm15 = vcmp.gt.f32.partialorder %v2345_v59, 0.0  ;;  %v2379_v63 = vmul.f32 0.01, %v2345_v59 }
 0x3bf   :  { %v2395_v51 = vsel %vm2363_vm15, %v2345_v59, %v2379_v63 }
 0x3c0   :  { %2411 = vst [vmem:[#allocation2 + $0x70] sm:$0xff] %v2395_v51  ;;  %v2297_v0 = vpop.f32.mrf.mxu2 }
 0x3c1   :  { %v2298_v42 = vadd.f32 %v4924_v33, %v2297_v0 }
 0x3c3   :  { %v2347_v44 = vadd.f32 %v2346_v46, %v2298_v42 }
 0x3c5   :  { %vm2364_vm1 = vcmp.gt.f32.partialorder %v2347_v44, 0.0  ;;  %v2380_v54 = vmul.f32 0.01, %v2347_v44 }
 0x3c7   :  { %v2396_v25 = vsel %vm2364_vm1, %v2347_v44, %v2380_v54 }
 0x3c8   :  { %2412 = vst [vmem:[#allocation2 + $0x78] sm:$0xff] %v2396_v25 }
 0x3c9   :  { %2425 = dma.vmem_to_hbm [thread:$0]  %s2418_s26, 2048, %s2420_s29, [#allocation3], %s3209_s30, %s3209_s30, %s3210_s8  }
 0x3ca   :  { %3206 = dma.done.wait [#allocation3], 2048  }
 0x3cb   :  { %3207 = vsyncadd [#allocation3], 4294965248 }
 0x3cc   :  { %2430 = vsyncpa [#allocation3], 1 }

</bundles_post_ra>
